<compile_context>
chip_gen: v7x
topology: tpu7x:2x2x1
jax: 0.10.0
libtpu: 0.0.40
codegen_flags: <defaults>
</compile_context>

<pallas_src>
import functools

import numpy as np
import jax
import jax.numpy as jnp
from jax import lax
from jax.experimental import pallas as pl
from jax.experimental.pallas import tpu as pltpu

EPS = 1e-8      # WF fuse eps
BN_EPS = 1e-5   # nn.BatchNorm2d default eps


def _upsample_matrix(m_in: int) -> np.ndarray:
    """(2*m_in, m_in) interpolation matrix matching
    F.interpolate(scale_factor=2, mode='bilinear', align_corners=False)."""
    m_out = 2 * m_in
    i = np.arange(m_out)
    src = (i + 0.5) / 2.0 - 0.5
    i0 = np.floor(src).astype(np.int64)
    frac = (src - i0).astype(np.float32)
    i0c = np.clip(i0, 0, m_in - 1)
    i1c = np.clip(i0 + 1, 0, m_in - 1)
    mat = np.zeros((m_out, m_in), dtype=np.float32)
    mat[np.arange(m_out), i0c] += (1.0 - frac)
    mat[np.arange(m_out), i1c] += frac
    return mat


def wf_kernel(w_ref, x_ref, res_ref, u_ref, wpre_ref, wpost_ref,
              bnsc_ref, bnsh_ref, o_ref, pad_ref, col_ref, *, H, W, Cd):
    """One batch element.  x_ref: (1, Hs*Ws, Cd), res_ref: (1, H*W, Cin)."""
    HW = H * W
    P = 2 * W                       # fuse row offset in padded scratch (aligned, > W+1 halo)

    # fuse weights: relu + normalize (scalars from SMEM), folded into the small
    # operands instead of scaling full (HW, Cd) activations.
    w0 = jnp.maximum(w_ref[0], 0.0)
    w1 = jnp.maximum(w_ref[1], 0.0)
    inv = 1.0 / (w0 + w1 + EPS)
    fw0 = w0 * inv
    fw1 = w1 * inv

    # bilinear x2 upsample as one matmul against the interpolation matrix
    # (fw1 pre-folded into the small low-res activation tile).
    up = jnp.dot(u_ref[...], x_ref[0] * fw1, preferred_element_type=jnp.float32)

    # 1x1 conv (pre_conv) on the skip connection (fw0 folded into tiny weight).
    pre = jnp.dot(res_ref[0], wpre_ref[...] * fw0, preferred_element_type=jnp.float32)

    fuse = pre + up                                   # (HW, Cd)

    # --- 3x3 conv, padding=1: padded-scratch im2col + one K=9*Cd matmul -----
    zer = jnp.zeros((2 * W, Cd), jnp.float32)
    pad_ref[pl.ds(0, 2 * W), :] = zer                 # top halo
    pad_ref[pl.ds(P + HW, 2 * W), :] = zer            # bottom halo
    pad_ref[pl.ds(P, HW), :] = fuse                   # interior

    # column-in-row index masks, built once and reused for all 9 taps
    wcol = lax.broadcasted_iota(jnp.int32, (HW, 1), 0) % W
    mask_l = (wcol > 0).astype(jnp.float32)           # reading (w-1) is valid
    mask_r = (wcol < W - 1).astype(jnp.float32)       # reading (w+1) is valid

    t = 0
    for dy in (-1, 0, 1):
        for dx in (-1, 0, 1):
            # patch[r] = fuse[r + dy*W + dx]; rows with h+dy out of range hit
            # the zero halo, rows with w+dx out of range are masked below.
            patch = pad_ref[pl.ds(P + dy * W + dx, HW), :]
            if dx == -1:
                patch = patch * mask_l
            elif dx == 1:
                patch = patch * mask_r
            col_ref[:, pl.ds(t * Cd, Cd)] = patch
            t += 1

    y = jnp.dot(col_ref[...], wpost_ref[...], preferred_element_type=jnp.float32)

    # folded BatchNorm (inference stats) + ReLU6
    y = y * bnsc_ref[...] + bnsh_ref[...]
    o_ref[0] = jnp.clip(y, 0.0, 6.0)


def wf_forward(x_nchw, res_nchw, params):
    N, Cd, Hs, Ws = x_nchw.shape
    _, Cin, H, W = res_nchw.shape
    assert H == 2 * Hs and W == 2 * Ws
    HW = H * W

    # NCHW -> flattened NHWC (glue)
    x2 = jnp.transpose(x_nchw, (0, 2, 3, 1)).reshape(N, Hs * Ws, Cd)
    res2 = jnp.transpose(res_nchw, (0, 2, 3, 1)).reshape(N, H * W, Cin)

    # structural constants / parameter setup (glue)
    u = jnp.asarray(np.kron(_upsample_matrix(Hs), _upsample_matrix(Ws)))   # (HW, Hs*Ws)
    wpre = params['w_pre'].reshape(Cin, Cd)              # HWIO 1x1 -> (Cin, Cd)
    wpost = params['w_post'].reshape(9 * Cd, Cd)         # (ky,kx,ci) flattened rows
    bn_scale = (params['bn_gamma'] / jnp.sqrt(params['bn_var'] + BN_EPS)).reshape(1, Cd)
    bn_shift = (params['bn_beta'] - params['bn_mean'] * bn_scale[0]).reshape(1, Cd)

    kernel = functools.partial(wf_kernel, H=H, W=W, Cd=Cd)
    out = pl.pallas_call(
        kernel,
        out_shape=jax.ShapeDtypeStruct((N, HW, Cd), jnp.float32),
        grid=(N,),
        in_specs=[
            pl.BlockSpec(memory_space=pltpu.MemorySpace.SMEM),        # fuse weights (2,)
            pl.BlockSpec((1, Hs * Ws, Cd), lambda b: (b, 0, 0)),      # x (low res)
            pl.BlockSpec((1, HW, Cin), lambda b: (b, 0, 0)),          # res (skip)
            pl.BlockSpec((HW, Hs * Ws), lambda b: (0, 0)),            # upsample matrix
            pl.BlockSpec((Cin, Cd), lambda b: (0, 0)),                # 1x1 conv weight
            pl.BlockSpec((9 * Cd, Cd), lambda b: (0, 0)),             # 3x3 conv weight, flat
            pl.BlockSpec((1, Cd), lambda b: (0, 0)),                  # folded BN scale
            pl.BlockSpec((1, Cd), lambda b: (0, 0)),                  # folded BN shift
        ],
        out_specs=pl.BlockSpec((1, HW, Cd), lambda b: (b, 0, 0)),
        scratch_shapes=[
            pltpu.VMEM((HW + 4 * W, Cd), jnp.float32),    # zero-padded fuse buffer
            pltpu.VMEM((HW, 9 * Cd), jnp.float32),        # im2col columns
        ],
        compiler_params=pltpu.CompilerParams(dimension_semantics=("parallel",)),
    )(params['fuse_w'], x2, res2, u, wpre, wpost, bn_scale, bn_shift)

    # flattened NHWC -> NCHW (glue)
    return jnp.transpose(out.reshape(N, H, W, Cd), (0, 3, 1, 2))


# ------------------------- pure-JAX reference ---------------------------------
def _ref_bilinear_up2(x_nhwc):
    def coeffs(m):
        i = np.arange(2 * m)
        src = (i + 0.5) / 2.0 - 0.5
        i0 = np.floor(src).astype(np.int64)
        f = (src - i0).astype(np.float32)
        return np.clip(i0, 0, m - 1), np.clip(i0 + 1, 0, m - 1), jnp.asarray(f)
    Hs, Ws = x_nhwc.shape[1], x_nhwc.shape[2]
    r0, r1, rf = coeffs(Hs)
    c0, c1, cf = coeffs(Ws)
    xr = (x_nhwc[:, r0] * (1.0 - rf)[None, :, None, None]
          + x_nhwc[:, r1] * rf[None, :, None, None])
    return (xr[:, :, c0] * (1.0 - cf)[None, None, :, None]
            + xr[:, :, c1] * cf[None, None, :, None])


def wf_reference(x_nchw, res_nchw, params):
    hi = jax.lax.Precision.HIGHEST
    x = jnp.transpose(x_nchw, (0, 2, 3, 1))
    res = jnp.transpose(res_nchw, (0, 2, 3, 1))
    up = _ref_bilinear_up2(x)
    w = jnp.maximum(params['fuse_w'], 0.0)
    fw = w / (jnp.sum(w) + EPS)
    pre = lax.conv_general_dilated(res, params['w_pre'], (1, 1), 'VALID',
                                   dimension_numbers=('NHWC', 'HWIO', 'NHWC'),
                                   precision=hi)
    fuse = fw[0] * pre + fw[1] * up
    y = lax.conv_general_dilated(fuse, params['w_post'], (1, 1), [(1, 1), (1, 1)],
                                 dimension_numbers=('NHWC', 'HWIO', 'NHWC'),
                                 precision=hi)
    scale = params['bn_gamma'] / jnp.sqrt(params['bn_var'] + BN_EPS)
    shift = params['bn_beta'] - params['bn_mean'] * scale
    y = jnp.clip(y * scale + shift, 0.0, 6.0)
    return jnp.transpose(y, (0, 3, 1, 2))


if __name__ == "__main__":
    # small shapes: WF(in_channels=8, decode_channels=32); res is the
    # high-res skip (N, Cin, H, W), x is the low-res decoder feature
    # (N, Cd, H/2, W/2) which gets upsampled x2.
    N, Cin, Cd = 2, 8, 32
    H = W = 16
    Hs, Ws = H // 2, W // 2

    key = jax.random.PRNGKey(0)
    ks = jax.random.split(key, 8)
    x = jax.random.normal(ks[0], (N, Cd, Hs, Ws), jnp.float32)
    res = jax.random.normal(ks[1], (N, Cin, H, W), jnp.float32)

    params = {
        'fuse_w':  jax.random.uniform(ks[2], (2,), jnp.float32, 0.2, 1.8),
        'w_pre':   jax.random.normal(ks[3], (1, 1, Cin, Cd), jnp.float32) * 0.2,
        'w_post':  jax.random.normal(ks[4], (3, 3, Cd, Cd), jnp.float32) * 0.1,
        'bn_gamma': jax.random.uniform(ks[5], (Cd,), jnp.float32, 0.5, 1.5),
        'bn_beta':  jax.random.normal(ks[6], (Cd,), jnp.float32) * 0.1,
        'bn_mean':  jax.random.normal(ks[7], (Cd,), jnp.float32) * 0.1,
        'bn_var':   jnp.linspace(0.5, 1.5, Cd, dtype=jnp.float32),
    }

    out = jax.block_until_ready(wf_forward(x, res, params))
    ref = jax.block_until_ready(wf_reference(x, res, params))
    assert out.shape == (N, Cd, H, W)
    # atol reflects default (bf16-pass) MXU precision in the kernel vs the
    # HIGHEST-precision reference convolutions.
    np.testing.assert_allclose(np.asarray(out), np.asarray(ref), rtol=1e-2, atol=2e-2)
    print("KERNEL_OK")
</pallas_src>

<mosaic_0001>
module attributes {stable_mosaic.version = 11 : i64} {
  func.func @wf_kernel(%arg0: i32, %arg1: memref<2xf32, #tpu.memory_space<smem>>, %arg2: memref<1x64x32xf32, #tpu.memory_space<vmem>>, %arg3: memref<1x256x8xf32, #tpu.memory_space<vmem>>, %arg4: memref<256x64xf32, #tpu.memory_space<vmem>>, %arg5: memref<8x32xf32, #tpu.memory_space<vmem>>, %arg6: memref<288x32xf32, #tpu.memory_space<vmem>>, %arg7: memref<1x32xf32, #tpu.memory_space<vmem>>, %arg8: memref<1x32xf32, #tpu.memory_space<vmem>>, %arg9: memref<1x256x32xf32, #tpu.memory_space<vmem>>, %arg10: memref<320x32xf32, #tpu.memory_space<vmem>>, %arg11: memref<256x288xf32, #tpu.memory_space<vmem>>) attributes {dimension_semantics = [#tpu.dimension_semantics<parallel>], iteration_bounds = array<i64: 2>, scalar_prefetch = 0 : i64, scratch_operands = 2 : i64, tpu.core_type = #tpu.core_type<tc>, window_params = [{transform_indices = @transform_0, window_bounds = array<i64: 2>}, {transform_indices = @transform_1, window_bounds = array<i64: 1, 64, 32>}, {transform_indices = @transform_2, window_bounds = array<i64: 1, 256, 8>}, {pipeline_mode = #tpu.pipeline_mode<synchronous>, transform_indices = @transform_3, window_bounds = array<i64: 256, 64>}, {pipeline_mode = #tpu.pipeline_mode<synchronous>, transform_indices = @transform_4, window_bounds = array<i64: 8, 32>}, {pipeline_mode = #tpu.pipeline_mode<synchronous>, transform_indices = @transform_5, window_bounds = array<i64: 288, 32>}, {pipeline_mode = #tpu.pipeline_mode<synchronous>, transform_indices = @transform_6, window_bounds = array<i64: 1, 32>}, {pipeline_mode = #tpu.pipeline_mode<synchronous>, transform_indices = @transform_7, window_bounds = array<i64: 1, 32>}, {transform_indices = @transform_8, window_bounds = array<i64: 1, 256, 32>}]} {
    %c0 = arith.constant 0 : index
    %0 = memref.load %arg1[%c0] : memref<2xf32, #tpu.memory_space<smem>>
    %cst = arith.constant 0.000000e+00 : f32
    %1 = arith.maximumf %0, %cst : f32
    %c1 = arith.constant 1 : index
    %2 = memref.load %arg1[%c1] : memref<2xf32, #tpu.memory_space<smem>>
    %cst_0 = arith.constant 0.000000e+00 : f32
    %3 = arith.maximumf %2, %cst_0 : f32
    %4 = arith.addf %1, %3 : f32
    %cst_1 = arith.constant 9.99999993E-9 : f32
    %5 = arith.addf %4, %cst_1 : f32
    %cst_2 = arith.constant 1.000000e+00 : f32
    %6 = arith.divf %cst_2, %5 : f32
    %7 = arith.mulf %1, %6 : f32
    %8 = arith.mulf %3, %6 : f32
    %c0_3 = arith.constant 0 : index
    %c0_4 = arith.constant 0 : index
    %9 = vector.load %arg4[%c0_3, %c0_4] : memref<256x64xf32, #tpu.memory_space<vmem>>, vector<256x64xf32>
    %c0_5 = arith.constant 0 : index
    %c0_6 = arith.constant 0 : index
    %c0_7 = arith.constant 0 : index
    %10 = vector.load %arg2[%c0_5, %c0_6, %c0_7] : memref<1x64x32xf32, #tpu.memory_space<vmem>>, vector<1x64x32xf32>
    %11 = vector.shape_cast %10 : vector<1x64x32xf32> to vector<64x32xf32>
    %12 = vector.broadcast %8 : f32 to vector<64x32xf32>
    %13 = arith.mulf %11, %12 : vector<64x32xf32>
    %cst_8 = arith.constant dense<0.000000e+00> : vector<256x32xf32>
    %14 = tpu.matmul %9, %13, %cst_8 {dimension_numbers = #tpu.dot_dimension_numbers<[1], [0], [0], [1], [0, 0, 1, 1], [], []>} : vector<256x64xf32>, vector<64x32xf32>, vector<256x32xf32> -> vector<256x32xf32>
    %c0_9 = arith.constant 0 : index
    %c0_10 = arith.constant 0 : index
    %c0_11 = arith.constant 0 : index
    %15 = vector.load %arg3[%c0_9, %c0_10, %c0_11] : memref<1x256x8xf32, #tpu.memory_space<vmem>>, vector<1x256x8xf32>
    %16 = vector.shape_cast %15 : vector<1x256x8xf32> to vector<256x8xf32>
    %c0_12 = arith.constant 0 : index
    %c0_13 = arith.constant 0 : index
    %17 = vector.load %arg5[%c0_12, %c0_13] : memref<8x32xf32, #tpu.memory_space<vmem>>, vector<8x32xf32>
    %18 = vector.broadcast %7 : f32 to vector<8x32xf32>
    %19 = arith.mulf %17, %18 : vector<8x32xf32>
    %cst_14 = arith.constant dense<0.000000e+00> : vector<256x32xf32>
    %20 = tpu.matmul %16, %19, %cst_14 {dimension_numbers = #tpu.dot_dimension_numbers<[1], [0], [0], [1], [0, 0, 1, 1], [], []>} : vector<256x8xf32>, vector<8x32xf32>, vector<256x32xf32> -> vector<256x32xf32>
    %21 = arith.addf %20, %14 : vector<256x32xf32>
    %cst_15 = arith.constant 0.000000e+00 : f32
    %22 = vector.broadcast %cst_15 : f32 to vector<32x32xf32>
    %c0_16 = arith.constant 0 : index
    %c0_17 = arith.constant 0 : index
    %23 = vector.load %arg10[%c0_16, %c0_17] : memref<320x32xf32, #tpu.memory_space<vmem>>, vector<32x32xf32>
    tpu.vector_store %arg10[%c0_16, %c0_17], %22 {strides = array<i32>} : memref<320x32xf32, #tpu.memory_space<vmem>>, vector<32x32xf32>,
    %c288 = arith.constant 288 : index
    %c0_18 = arith.constant 0 : index
    %24 = vector.load %arg10[%c288, %c0_18] : memref<320x32xf32, #tpu.memory_space<vmem>>, vector<32x32xf32>
    tpu.vector_store %arg10[%c288, %c0_18], %22 {strides = array<i32>} : memref<320x32xf32, #tpu.memory_space<vmem>>, vector<32x32xf32>,
    %c32 = arith.constant 32 : index
    %c0_19 = arith.constant 0 : index
    %25 = vector.load %arg10[%c32, %c0_19] : memref<320x32xf32, #tpu.memory_space<vmem>>, vector<256x32xf32>
    tpu.vector_store %arg10[%c32, %c0_19], %21 {strides = array<i32>} : memref<320x32xf32, #tpu.memory_space<vmem>>, vector<256x32xf32>,
    %26 = tpu.iota {dimensions = array<i32: 0>} : vector<256x1xi32>
    %c16_i32 = arith.constant 16 : i32
    %c0_i32 = arith.constant 0 : i32
    %27 = arith.cmpi eq, %c16_i32, %c0_i32 : i32
    %c1_i32 = arith.constant 1 : i32
    %28 = arith.select %27, %c1_i32, %c16_i32 : i32
    %29 = vector.broadcast %28 : i32 to vector<256x1xi32>
    %30 = arith.remsi %26, %29 : vector<256x1xi32>
    %c0_i32_20 = arith.constant 0 : i32
    %31 = vector.broadcast %c0_i32_20 : i32 to vector<256x1xi32>
    %32 = arith.cmpi ne, %30, %31 : vector<256x1xi32>
    %c0_i32_21 = arith.constant 0 : i32
    %33 = vector.broadcast %c0_i32_21 : i32 to vector<256x1xi32>
    %34 = arith.cmpi slt, %30, %33 : vector<256x1xi32>
    %c0_i32_22 = arith.constant 0 : i32
    %35 = arith.cmpi slt, %28, %c0_i32_22 : i32
    %36 = vector.broadcast %35 : i1 to vector<256x1xi1>
    %37 = vector.broadcast %36 : vector<256x1xi1> to vector<256x1xi1>
    %38 = arith.xori %34, %37 : vector<256x1xi1>
    %39 = arith.andi %38, %32 : vector<256x1xi1>
    %40 = vector.broadcast %28 : i32 to vector<256x1xi32>
    %41 = arith.addi %30, %40 : vector<256x1xi32>
    %42 = arith.select %39, %41, %30 : vector<256x1xi1>, vector<256x1xi32>
    %c0_i32_23 = arith.constant 0 : i32
    %43 = vector.broadcast %c0_i32_23 : i32 to vector<256x1xi32>
    %44 = arith.cmpi sgt, %42, %43 : vector<256x1xi32>
    %45 = arith.extui %44 : vector<256x1xi1> to vector<256x1xi32>
    %46 = arith.sitofp %45 : vector<256x1xi32> to vector<256x1xf32>
    %c15_i32 = arith.constant 15 : i32
    %47 = vector.broadcast %c15_i32 : i32 to vector<256x1xi32>
    %48 = arith.cmpi slt, %42, %47 : vector<256x1xi32>
    %49 = arith.extui %48 : vector<256x1xi1> to vector<256x1xi32>
    %50 = arith.sitofp %49 : vector<256x1xi32> to vector<256x1xf32>
    %c15 = arith.constant 15 : index
    %c0_24 = arith.constant 0 : index
    %51 = vector.load %arg10[%c15, %c0_24] : memref<320x32xf32, #tpu.memory_space<vmem>>, vector<256x32xf32>
    %52 = vector.broadcast %46 : vector<256x1xf32> to vector<256x32xf32>
    %53 = arith.mulf %51, %52 : vector<256x32xf32>
    %c0_25 = arith.constant 0 : index
    %c0_26 = arith.constant 0 : index
    %54 = vector.load %arg11[%c0_25, %c0_26] : memref<256x288xf32, #tpu.memory_space<vmem>>, vector<256x32xf32>
    tpu.vector_store %arg11[%c0_25, %c0_26], %53 {strides = array<i32>} : memref<256x288xf32, #tpu.memory_space<vmem>>, vector<256x32xf32>,
    %c16 = arith.constant 16 : index
    %c0_27 = arith.constant 0 : index
    %55 = vector.load %arg10[%c16, %c0_27] : memref<320x32xf32, #tpu.memory_space<vmem>>, vector<256x32xf32>
    %c0_28 = arith.constant 0 : index
    %c32_29 = arith.constant 32 : index
    %56 = vector.load %arg11[%c0_28, %c32_29] : memref<256x288xf32, #tpu.memory_space<vmem>>, vector<256x32xf32>
    tpu.vector_store %arg11[%c0_28, %c32_29], %55 {strides = array<i32>} : memref<256x288xf32, #tpu.memory_space<vmem>>, vector<256x32xf32>,
    %c17 = arith.constant 17 : index
    %c0_30 = arith.constant 0 : index
    %57 = vector.load %arg10[%c17, %c0_30] : memref<320x32xf32, #tpu.memory_space<vmem>>, vector<256x32xf32>
    %58 = vector.broadcast %50 : vector<256x1xf32> to vector<256x32xf32>
    %59 = arith.mulf %57, %58 : vector<256x32xf32>
    %c0_31 = arith.constant 0 : index
    %c64 = arith.constant 64 : index
    %60 = vector.load %arg11[%c0_31, %c64] : memref<256x288xf32, #tpu.memory_space<vmem>>, vector<256x32xf32>
    tpu.vector_store %arg11[%c0_31, %c64], %59 {strides = array<i32>} : memref<256x288xf32, #tpu.memory_space<vmem>>, vector<256x32xf32>,
    %c31 = arith.constant 31 : index
    %c0_32 = arith.constant 0 : index
    %61 = vector.load %arg10[%c31, %c0_32] : memref<320x32xf32, #tpu.memory_space<vmem>>, vector<256x32xf32>
    %62 = vector.broadcast %46 : vector<256x1xf32> to vector<256x32xf32>
    %63 = arith.mulf %61, %62 : vector<256x32xf32>
    %c0_33 = arith.constant 0 : index
    %c96 = arith.constant 96 : index
    %64 = vector.load %arg11[%c0_33, %c96] : memref<256x288xf32, #tpu.memory_space<vmem>>, vector<256x32xf32>
    tpu.vector_store %arg11[%c0_33, %c96], %63 {strides = array<i32>} : memref<256x288xf32, #tpu.memory_space<vmem>>, vector<256x32xf32>,
    %c32_34 = arith.constant 32 : index
    %c0_35 = arith.constant 0 : index
    %65 = vector.load %arg10[%c32_34, %c0_35] : memref<320x32xf32, #tpu.memory_space<vmem>>, vector<256x32xf32>
    %c0_36 = arith.constant 0 : index
    %c128 = arith.constant 128 : index
    %66 = vector.load %arg11[%c0_36, %c128] : memref<256x288xf32, #tpu.memory_space<vmem>>, vector<256x32xf32>
    tpu.vector_store %arg11[%c0_36, %c128], %65 {strides = array<i32>} : memref<256x288xf32, #tpu.memory_space<vmem>>, vector<256x32xf32>,
    %c33 = arith.constant 33 : index
    %c0_37 = arith.constant 0 : index
    %67 = vector.load %arg10[%c33, %c0_37] : memref<320x32xf32, #tpu.memory_space<vmem>>, vector<256x32xf32>
    %68 = vector.broadcast %50 : vector<256x1xf32> to vector<256x32xf32>
    %69 = arith.mulf %67, %68 : vector<256x32xf32>
    %c0_38 = arith.constant 0 : index
    %c160 = arith.constant 160 : index
    %70 = vector.load %arg11[%c0_38, %c160] : memref<256x288xf32, #tpu.memory_space<vmem>>, vector<256x32xf32>
    tpu.vector_store %arg11[%c0_38, %c160], %69 {strides = array<i32>} : memref<256x288xf32, #tpu.memory_space<vmem>>, vector<256x32xf32>,
    %c47 = arith.constant 47 : index
    %c0_39 = arith.constant 0 : index
    %71 = vector.load %arg10[%c47, %c0_39] : memref<320x32xf32, #tpu.memory_space<vmem>>, vector<256x32xf32>
    %72 = vector.broadcast %46 : vector<256x1xf32> to vector<256x32xf32>
    %73 = arith.mulf %71, %72 : vector<256x32xf32>
    %c0_40 = arith.constant 0 : index
    %c192 = arith.constant 192 : index
    %74 = vector.load %arg11[%c0_40, %c192] : memref<256x288xf32, #tpu.memory_space<vmem>>, vector<256x32xf32>
    tpu.vector_store %arg11[%c0_40, %c192], %73 {strides = array<i32>} : memref<256x288xf32, #tpu.memory_space<vmem>>, vector<256x32xf32>,
    %c48 = arith.constant 48 : index
    %c0_41 = arith.constant 0 : index
    %75 = vector.load %arg10[%c48, %c0_41] : memref<320x32xf32, #tpu.memory_space<vmem>>, vector<256x32xf32>
    %c0_42 = arith.constant 0 : index
    %c224 = arith.constant 224 : index
    %76 = vector.load %arg11[%c0_42, %c224] : memref<256x288xf32, #tpu.memory_space<vmem>>, vector<256x32xf32>
    tpu.vector_store %arg11[%c0_42, %c224], %75 {strides = array<i32>} : memref<256x288xf32, #tpu.memory_space<vmem>>, vector<256x32xf32>,
    %c49 = arith.constant 49 : index
    %c0_43 = arith.constant 0 : index
    %77 = vector.load %arg10[%c49, %c0_43] : memref<320x32xf32, #tpu.memory_space<vmem>>, vector<256x32xf32>
    %78 = vector.broadcast %50 : vector<256x1xf32> to vector<256x32xf32>
    %79 = arith.mulf %77, %78 : vector<256x32xf32>
    %c0_44 = arith.constant 0 : index
    %c256 = arith.constant 256 : index
    %80 = vector.load %arg11[%c0_44, %c256] : memref<256x288xf32, #tpu.memory_space<vmem>>, vector<256x32xf32>
    tpu.vector_store %arg11[%c0_44, %c256], %79 {strides = array<i32>} : memref<256x288xf32, #tpu.memory_space<vmem>>, vector<256x32xf32>,
    %c0_45 = arith.constant 0 : index
    %c0_46 = arith.constant 0 : index
    %81 = vector.load %arg11[%c0_45, %c0_46] : memref<256x288xf32, #tpu.memory_space<vmem>>, vector<256x288xf32>
    %c0_47 = arith.constant 0 : index
    %c0_48 = arith.constant 0 : index
    %82 = vector.load %arg6[%c0_47, %c0_48] : memref<288x32xf32, #tpu.memory_space<vmem>>, vector<288x32xf32>
    %cst_49 = arith.constant dense<0.000000e+00> : vector<256x32xf32>
    %83 = tpu.matmul %81, %82, %cst_49 {dimension_numbers = #tpu.dot_dimension_numbers<[1], [0], [0], [1], [0, 0, 1, 1], [], []>} : vector<256x288xf32>, vector<288x32xf32>, vector<256x32xf32> -> vector<256x32xf32>
    %c0_50 = arith.constant 0 : index
    %c0_51 = arith.constant 0 : index
    %84 = vector.load %arg7[%c0_50, %c0_51] : memref<1x32xf32, #tpu.memory_space<vmem>>, vector<1x32xf32>
    %85 = vector.broadcast %84 : vector<1x32xf32> to vector<256x32xf32>
    %86 = arith.mulf %83, %85 : vector<256x32xf32>
    %c0_52 = arith.constant 0 : index
    %c0_53 = arith.constant 0 : index
    %87 = vector.load %arg8[%c0_52, %c0_53] : memref<1x32xf32, #tpu.memory_space<vmem>>, vector<1x32xf32>
    %88 = vector.broadcast %87 : vector<1x32xf32> to vector<256x32xf32>
    %89 = arith.addf %86, %88 : vector<256x32xf32>
    %cst_54 = arith.constant 0.000000e+00 : f32
    %cst_55 = arith.constant 6.000000e+00 : f32
    %90 = vector.broadcast %cst_54 : f32 to vector<256x32xf32>
    %91 = arith.maximumf %90, %89 : vector<256x32xf32>
    %92 = vector.broadcast %cst_55 : f32 to vector<256x32xf32>
    %93 = arith.minimumf %92, %91 : vector<256x32xf32>
    %c0_56 = arith.constant 0 : index
    %c0_57 = arith.constant 0 : index
    %c0_58 = arith.constant 0 : index
    %94 = vector.load %arg9[%c0_56, %c0_57, %c0_58] : memref<1x256x32xf32, #tpu.memory_space<vmem>>, vector<1x256x32xf32>
    %95 = vector.shape_cast %94 : vector<1x256x32xf32> to vector<256x32xf32>
    %96 = vector.shape_cast %93 : vector<256x32xf32> to vector<1x256x32xf32>
    tpu.vector_store %arg9[%c0_56, %c0_57, %c0_58], %96 {strides = array<i32>} : memref<1x256x32xf32, #tpu.memory_space<vmem>>, vector<1x256x32xf32>,
    return
  }
  func.func @transform_0(%arg0: i32) -> i32 {
    %c0_i32 = arith.constant 0 : i32
    %c0_i32_0 = arith.constant 0 : i32
    return %c0_i32 : i32
  }
  func.func @transform_1(%arg0: i32) -> (i32, i32, i32) {
    %c0_i32 = arith.constant 0 : i32
    %c0_i32_0 = arith.constant 0 : i32
    %c0_i32_1 = arith.constant 0 : i32
    return %arg0, %c0_i32, %c0_i32_0 : i32, i32, i32
  }
  func.func @transform_2(%arg0: i32) -> (i32, i32, i32) {
    %c0_i32 = arith.constant 0 : i32
    %c0_i32_0 = arith.constant 0 : i32
    %c0_i32_1 = arith.constant 0 : i32
    return %arg0, %c0_i32, %c0_i32_0 : i32, i32, i32
  }
  func.func @transform_3(%arg0: i32) -> (i32, i32) {
    %c0_i32 = arith.constant 0 : i32
    %c0_i32_0 = arith.constant 0 : i32
    %c0_i32_1 = arith.constant 0 : i32
    return %c0_i32, %c0_i32_0 : i32, i32
  }
  func.func @transform_4(%arg0: i32) -> (i32, i32) {
    %c0_i32 = arith.constant 0 : i32
    %c0_i32_0 = arith.constant 0 : i32
    %c0_i32_1 = arith.constant 0 : i32
    return %c0_i32, %c0_i32_0 : i32, i32
  }
  func.func @transform_5(%arg0: i32) -> (i32, i32) {
    %c0_i32 = arith.constant 0 : i32
    %c0_i32_0 = arith.constant 0 : i32
    %c0_i32_1 = arith.constant 0 : i32
    return %c0_i32, %c0_i32_0 : i32, i32
  }
  func.func @transform_6(%arg0: i32) -> (i32, i32) {
    %c0_i32 = arith.constant 0 : i32
    %c0_i32_0 = arith.constant 0 : i32
    %c0_i32_1 = arith.constant 0 : i32
    return %c0_i32, %c0_i32_0 : i32, i32
  }
  func.func @transform_7(%arg0: i32) -> (i32, i32) {
    %c0_i32 = arith.constant 0 : i32
    %c0_i32_0 = arith.constant 0 : i32
    %c0_i32_1 = arith.constant 0 : i32
    return %c0_i32, %c0_i32_0 : i32, i32
  }
  func.func @transform_8(%arg0: i32) -> (i32, i32, i32) {
    %c0_i32 = arith.constant 0 : i32
    %c0_i32_0 = arith.constant 0 : i32
    %c0_i32_1 = arith.constant 0 : i32
    return %arg0, %c0_i32, %c0_i32_0 : i32, i32, i32
  }
}

</mosaic_0001>

<bundles_post_ra>
// kernel: tpu_custom_call.1
= control target key start
LH: loop header
LB: loop body
LE: loop exit
PB: predicated region body
PF: predicated region fallthrough
CT: control target
= control target key end

     0   :  { %13 = vsyncpa [#allocation5], 0  ;;  %s4871_s27 = smov 0   ;;  %s6849_s0 = inlined_call_operand.vmem [shape: f32[2], index: 0, kind: input, shape index: {}]   ;;  %s6850_s1 = inlined_call_operand.vmem [shape: f32[2,64,32], index: 1, kind: input, shape index: {}]   ;;  %s6851_s2 = inlined_call_operand.vmem [shape: f32[2,256,8], index: 2, kind: input, shape index: {}]   ;;  %s6852_s3 = inlined_call_operand.vmem [shape: f32[256,64], index: 3, kind: input, shape index: {}]   ;;  %s6853_s4 = inlined_call_operand.vmem [shape: f32[8,32], index: 4, kind: input, shape index: {}]   ;;  %s6854_s5 = inlined_call_operand.vmem [shape: f32[288,32], index: 5, kind: input, shape index: {}]   ;;  %s6855_s6 = inlined_call_operand.vmem [shape: f32[1,32], index: 6, kind: input, shape index: {}]   ;;  %s6856_s7 = inlined_call_operand.vmem [shape: f32[1,32], index: 7, kind: input, shape index: {}]   ;;  %s6857_s8 = inlined_call_operand.vmem [shape: f32[2,256,32], index: 8, kind: output, shape index: {}]  }
   0x1 LB: > { %s4877_s28 = sadd.s32 4294967295, %s4817_s27   ;;  %p4201_p0 = scmp.ge.s32.totalorder %s4817_s27, 1  ;;  %s4817_s27 = sphi %s4871_s27, %s19_s27  }
   0x2   : > { %p228_p1 = scmp.lt.s32.totalorder %s4817_s27, 3  ;;  %s241_s9 = sshll.u32 %s6849_s0, 4  ;;  %s242_s9 = int_to_ptr.vmem [resolvable:$true] %s241_s9 }
   0x3   : > { %p4773_p3 = scmp.eq.s32.totalorder %s4877_s28, 0  ;;  %s4792_s11 = scalar_lea.vmem %s242_s9, 16 }
   0x4   : > { %p4884_p2 = pnand %p4201_p0, %p228_p1  ;;  %p4793_p6 = scmp.ne.s32.totalorder %s242_s9, %s4792_s11 }
   0x5   : > { %p4800_p10 = scmp.lt.s32.totalorder %s242_s9, %s242_s9  ;;  %p4801_p11 = scmp.lt.s32.totalorder %s4792_s11, %s4792_s11 }
   0x6   : > { %p4769_p4 = pneg %p4884_p2 }
   0x7   : > { %p4802_p12 = por %p4801_p11, %p4800_p10 }
   0x8   : > { %p4770_p5 = pnand %p4773_p3, %p4769_p4 }
   0xa   : > { %p4794_p7 = pneg %p4770_p5 }
   0xc   : > { %p4795_p8 = pnand %p4794_p7, %p4793_p6 }
   0xe   : > { %p4796_p9 = pneg %p4795_p8 }
  0x10   : > { %p4803_p13 = pnand %p4802_p12, %p4796_p9 }
  0x12   : > { %4806 = shalt.err (!%p4803_p13)
}
  0x13   : > { %s4819_s12 = smov [#allocation4]   ;;  %285 = sbr.rel (%p4884_p2) target bundleno = 1076 (0x434), region = 52 }
  0x14   : > { %4772 = dma.vmem_to_smem (!%p4770_p5), %s242_s9, 16, %s4819_s12, [#allocation5]  }
  0x1a   : > { %4812 = dma.done.wait (%p4773_p3), [#allocation5], 16  }
  0x1b   : > { %4814 = vsyncadd (%p4773_p3), [#allocation5], 4294967280 }
  0x1c   : > { %291 = sfence }
  0x1d   : > { %s340_s13 = sld [smem:[#allocation4]]  ;;  %v351_v0 = vld [vmem:[%s6852_s3] sm:$0xff]  ;;  %s4212_s16 = sld [smem:[#allocation4 + $0x1]]  ;;  %vm400_vm0 = vcmask 523264   ;;  %vm757_vm1 = vcmask 64512   ;;  %vm1079_vm2 = vcmask 261120  }
  0x1e   : > { %p325_p0 = scmp.lt.s32.totalorder %s4877_s28, 1  ;;  %4473 = vmatprep.mubr.msk.f32.mxu0 %vm400_vm0, %v351_v0  ;;  %s4820_s18 = smov 0.0   ;;  %v6860_v3 = vmov 0.0   ;;  %v754_v6 = vld [vmem:[%s6853_s4] sm:$0xff]  ;;  %v352_v39 = vld [vmem:[%s6852_s3 + $0x8] sm:$0xff]  ;;  %v353_v41 = vld [vmem:[%s6852_s3 + $0x10] sm:$0xff] }
  0x1f   : > { %1082 = vst.msk [vmem:[#allocation2 + $0x10] sm:$0xff] %vm1079_vm2, %v6860_v3  ;;  %1081 = vst.msk [vmem:[#allocation2 + $0x8] sm:$0xff] %vm1079_vm2, %v6860_v3  ;;  %s4822_s26 = smov 32   ;;  %v354_v43 = vld [vmem:[%s6852_s3 + $0x18] sm:$0xff]  ;;  %v355_v45 = vld [vmem:[%s6852_s3 + $0x20] sm:$0xff]  ;;  %vm1985_vm4 = vcmask 523520  }
  0x20   : > { %s6926_s28 = smov (!%p325_p0, %s4877_s28), 1  ;;  %1083 = vst.msk [vmem:[#allocation2 + $0x18] sm:$0xff] %vm1079_vm2, %v6860_v3  ;;  %1084 = vst.msk [vmem:[#allocation2 + $0x120] sm:$0xff] %vm1079_vm2, %v6860_v3  ;;  %v356_v47 = vld [vmem:[%s6852_s3 + $0x28] sm:$0xff]  ;;  %v357_v49 = vld [vmem:[%s6852_s3 + $0x30] sm:$0xff]  ;;  %vm2210_vm5 = vcmask 785920  }
  0x21   : > { %s4346_s17 = sshll.u32 %s6926_s28, 8  ;;  %1085 = vst.msk [vmem:[#allocation2 + $0x128] sm:$0xff] %vm1079_vm2, %v6860_v3  ;;  %1086 = vst.msk [vmem:[#allocation2 + $0x130] sm:$0xff] %vm1079_vm2, %v6860_v3  ;;  %s4345_s29 = sshll.u32 %s6926_s28, 6  ;;  %v358_v51 = vld [vmem:[%s6852_s3 + $0x38] sm:$0xff]  ;;  %v359_v53 = vld [vmem:[%s6852_s3 + $0x40] sm:$0xff] }
  0x22   : > { %s4917_s23 = scalar_lea.vmem %s6851_s2, %s4346_s17  ;;  %s4940_s10 = scalar_lea.vmem %s6850_s1, %s4345_s29  ;;  %v360_v55 = vld [vmem:[%s6852_s3 + $0x48] sm:$0xff]  ;;  %v361_v57 = vld [vmem:[%s6852_s3 + $0x50] sm:$0xff]  ;;  %v362_v59 = vld [vmem:[%s6852_s3 + $0x58] sm:$0xff] }
  0x23   : > { %s4908_s19 = smax.f32 %s4820_s18, %s340_s13  ;;  %s4910_s20 = smax.f32 %s4820_s18, %s4212_s16  ;;  %v722_v1 = vld [vmem:[%s4917_s23] sm:$0xff]  ;;  %v384_v8 = vld [vmem:[%s4940_s10 + $0x8] sm:$0xff]  ;;  %v385_v9 = vld [vmem:[%s4940_s10 + $0x10] sm:$0xff] }
  0x24   : > { %s344_s24 = sadd.f32 %s4910_s20, %s4908_s19  ;;  %4523 = vmatprep.mubr.msk.f32.mxu1 %vm757_vm1, %v722_v1  ;;  %v383_v7 = vld [vmem:[%s4940_s10] sm:$0xff]  ;;  %v386_v10 = vld [vmem:[%s4940_s10 + $0x18] sm:$0xff]  ;;  %v723_v18 = vld [vmem:[%s4917_s23 + $0x8] sm:$0xff]  ;;  %s4823_s29 = smov 64  }
  0x25   : > { %v387_v19 = vld [vmem:[%s4940_s10 + $0x20] sm:$0xff]  ;;  %v388_v20 = vld [vmem:[%s4940_s10 + $0x28] sm:$0xff]  ;;  %v724_v21 = vld [vmem:[%s4917_s23 + $0x10] sm:$0xff]  ;;  %s6685_s30 = scalar_lea.vmem %s6857_s8, %s4346_s17 }
  0x26   : > { %s345_s25 = sadd.f32 1e-08, %s344_s24  ;;  %v1825_v4 = vld [vmem:[#allocation2 + $0x10] sm:$0xff]  ;;  %v725_v26 = vld [vmem:[%s4917_s23 + $0x18] sm:$0xff]  ;;  %v726_v29 = vld [vmem:[%s4917_s23 + $0x20] sm:$0xff] }
  0x27   : > { %1889 = vrot.lane.b32.xlu1 %v1825_v4, %s4822_s26  ;;  %v389_v27 = vld [vmem:[%s4940_s10 + $0x30] sm:$0xff]  ;;  %v390_v28 = vld [vmem:[%s4940_s10 + $0x38] sm:$0xff]  ;;  %v727_v33 = vld [vmem:[%s4917_s23 + $0x28] sm:$0xff]  ;;  %s4824_s10 = smov 96  }
  0x28   : > { %v346_v2 = vstv %s345_s25  ;;  %v728_v34 = vld [vmem:[%s4917_s23 + $0x30] sm:$0xff]  ;;  %v729_v36 = vld [vmem:[%s4917_s23 + $0x38] sm:$0xff]  ;;  %v730_v37 = vld [vmem:[%s4917_s23 + $0x40] sm:$0xff] }
  0x29   : > { %4790 = vrcp.f32 %v346_v2  ;;  %v731_v38 = vld [vmem:[%s4917_s23 + $0x48] sm:$0xff]  ;;  %v732_v40 = vld [vmem:[%s4917_s23 + $0x50] sm:$0xff]  ;;  %v733_v42 = vld [vmem:[%s4917_s23 + $0x58] sm:$0xff] }
  0x2a   : > { %v734_v44 = vld [vmem:[%s4917_s23 + $0x60] sm:$0xff]  ;;  %v735_v46 = vld [vmem:[%s4917_s23 + $0x68] sm:$0xff]  ;;  %v736_v48 = vld [vmem:[%s4917_s23 + $0x70] sm:$0xff] }
  0x2b   : > { %v737_v50 = vld [vmem:[%s4917_s23 + $0x78] sm:$0xff]  ;;  %v738_v52 = vld [vmem:[%s4917_s23 + $0x80] sm:$0xff]  ;;  %v739_v54 = vld [vmem:[%s4917_s23 + $0x88] sm:$0xff] }
  0x2c   : > { %v740_v56 = vld [vmem:[%s4917_s23 + $0x90] sm:$0xff]  ;;  %v741_v58 = vld [vmem:[%s4917_s23 + $0x98] sm:$0xff]  ;;  %v742_v60 = vld [vmem:[%s4917_s23 + $0xa0] sm:$0xff] }
  0x2d   : > { %v363_v61 = vld [vmem:[%s6852_s3 + $0x60] sm:$0xff]  ;;  %v743_v62 = vld [vmem:[%s4917_s23 + $0xa8] sm:$0xff]  ;;  %v365_v0 = vld [vmem:[%s6852_s3 + $0x70] sm:$0xff] }
  0x2e   : > { %v364_v63 = vld [vmem:[%s6852_s3 + $0x68] sm:$0xff]  ;;  %v366_v1 = vld [vmem:[%s6852_s3 + $0x78] sm:$0xff]  ;;  %v367_v2 = vld [vmem:[%s6852_s3 + $0x80] sm:$0xff] }
  0x2f   : > { %v368_v4 = vld [vmem:[%s6852_s3 + $0x88] sm:$0xff] }
  0x33   : > { %v4791_v5 = vpop.eup %4790 }
  0x34   : > { %4763 = vpush %v4791_v5  ;;  %v369_v5 = vld [vmem:[%s6852_s3 + $0x90] sm:$0xff] }
  0x65   : > { %s4764_s11 = spop %4763 }
  0x66   : > { %s349_s12 = smul.f32 %s4764_s11, %s4908_s19 }
  0x67   : > { %s350_s15 = smul.f32 %s4764_s11, %s4910_s20 }
  0x68   : > { %v755_v11 = vstv %s349_s12 }
  0x69   : > { %v391_v12 = vstv %s350_s15  ;;  %v756_v13 = vmul.f32 %v755_v11, %v754_v6  ;;  %v370_v6 = vld [vmem:[%s6852_s3 + $0x98] sm:$0xff]  ;;  %v3010_v11 = vld [vmem:[#allocation2 + $0x120] sm:$0xff] }
  0x6a   : > { %v392_v14 = vmul.f32 %v391_v12, %v383_v7  ;;  %v393_v15 = vmul.f32 %v391_v12, %v384_v8  ;;  %v394_v16 = vmul.f32 %v391_v12, %v385_v9  ;;  %v395_v17 = vmul.f32 %v391_v12, %v386_v10  ;;  %v371_v7 = vld [vmem:[%s6852_s3 + $0xa0] sm:$0xff]  ;;  %v372_v8 = vld [vmem:[%s6852_s3 + $0xa8] sm:$0xff]  ;;  %v2018_v9 = vld [vmem:[#allocation2 + $0x11] sm:$0xff]  ;;  %3104 = vrot.lane.b32.xlu0 %v3010_v11, %s4824_s10 }
  0x6b   : > { %4521 = vmatprep.subr.mxu1 %v756_v13  ;;  %v396_v24 = vmul.f32 %v391_v12, %v387_v19  ;;  %v397_v25 = vmul.f32 %v391_v12, %v388_v20  ;;  %v398_v31 = vmul.f32 %v391_v12, %v389_v27  ;;  %v399_v32 = vmul.f32 %v391_v12, %v390_v28  ;;  %v1826_v10 = vld [vmem:[#allocation2 + $0x18] sm:$0xff]  ;;  %v373_v12 = vld [vmem:[%s6852_s3 + $0xb0] sm:$0xff]  ;;  %v747_v19 = vld [vmem:[%s4917_s23 + $0xc8] sm:$0xff] }
  0x6c   : > { %4522 = vmatpush3.msra.mxu1 %v756_v13  ;;  %v4627_v22 = vpack.c.bf16 %v393_v15, %v392_v14  ;;  %v4631_v23 = vpack.c.bf16 %v395_v17, %v394_v16  ;;  %2114 = vrot.lane.b32.xlu1 %v2018_v9, %s4823_s29  ;;  %v744_v13 = vld [vmem:[%s4917_s23 + $0xb0] sm:$0xff]  ;;  %v374_v14 = vld [vmem:[%s6852_s3 + $0xb8] sm:$0xff]  ;;  %v375_v16 = vld [vmem:[%s6852_s3 + $0xc0] sm:$0xff]  ;;  %v1120_v28 = vlaneseq }
  0x6d   : > { %4524 = vmatmul.mubr.msk.f32.vlgmr.msra.gmra.mrb[0].mxu1 %vm757_vm1, %v723_v18  ;;  %v4635_v30 = vpack.c.bf16 %v397_v25, %v396_v24  ;;  %v4639_v35 = vpack.c.bf16 %v399_v32, %v398_v31  ;;  %v745_v15 = vld [vmem:[%s4917_s23 + $0xb8] sm:$0xff]  ;;  %v746_v17 = vld [vmem:[%s4917_s23 + $0xc0] sm:$0xff]  ;;  %v376_v18 = vld [vmem:[%s6852_s3 + $0xc8] sm:$0xff] }
  0x6e   : > { %4628 = vmatprep.subr.bf16.mxu0 %v4627_v22  ;;  %4526 = vmatprep.mubr.msk.f32.mxu1 %vm757_vm1, %v724_v21  ;;  %v377_v20 = vld [vmem:[%s6852_s3 + $0xd0] sm:$0xff]  ;;  %v379_v24 = vld [vmem:[%s6852_s3 + $0xe0] sm:$0xff]  ;;  %v751_v27 = vld [vmem:[%s4917_s23 + $0xe8] sm:$0xff]  ;;  %v5138_v31 = vshrl.u32 %v1120_v28, 7 }
  0x6f   : > { %4630 = vmatpush3.bf16.msra.mxu0 %v4627_v22  ;;  %v748_v21 = vld [vmem:[%s4917_s23 + $0xd0] sm:$0xff]  ;;  %v378_v22 = vld [vmem:[%s6852_s3 + $0xd8] sm:$0xff]  ;;  %v750_v25 = vld [vmem:[%s4917_s23 + $0xe0] sm:$0xff] }
  0x70   : > { %4632 = vmatprep.subr.bf16.mxu0 %v4631_v23  ;;  %1891 = vrot.lane.b32.xlu1 %v1826_v10, %s4822_s26  ;;  %v382_v32 = vld [vmem:[%s6852_s3 + $0xf8] sm:$0xff]  ;;  %v3368_v10 = vld [vmem:[%s6854_s5 + $0x20] sm:$0xff]  ;;  %v3369_v11 = vld [vmem:[%s6854_s5 + $0x28] sm:$0xff] }
  0x71   : > { %4527 = vmatmul.mubr.msk.f32.gmra.mrb[2].mxu1 %vm757_vm1, %v725_v26  ;;  %v380_v26 = vld [vmem:[%s6852_s3 + $0xe8] sm:$0xff]  ;;  %v3371_v28 = vld [vmem:[%s6854_s5 + $0x38] sm:$0xff] }
  0x72   : > { %4529 = vmatprep.mubr.msk.f32.mxu1 %vm757_vm1, %v726_v29  ;;  %v381_v29 = vld [vmem:[%s6852_s3 + $0xf0] sm:$0xff] }
  0x73   : > { %4634 = vmatpush3.bf16.msra.mxu0 %v4631_v23  ;;  %v749_v23 = vld [vmem:[%s4917_s23 + $0xd8] sm:$0xff] }
  0x74   : > { %4636 = vmatprep.subr.bf16.mxu0 %v4635_v30 }
  0x75   : > { %4530 = vmatmul.mubr.msk.f32.gmra.mrb[4].mxu1 %vm757_vm1, %v727_v33  ;;  %v753_v33 = vld [vmem:[%s4917_s23 + $0xf8] sm:$0xff] }
  0x76   : > { %4532 = vmatprep.mubr.msk.f32.mxu1 %vm757_vm1, %v728_v34  ;;  %v1157_v34 = vand.u32 15, %v5138_v31 }
  0x77   : > { %4638 = vmatpush3.bf16.msra.mxu0 %v4635_v30  ;;  %v752_v30 = vld [vmem:[%s4917_s23 + $0xf0] sm:$0xff] }
  0x78   : > { %4640 = vmatprep.subr.bf16.mxu0 %v4639_v35  ;;  %vm1537_vm3 = vcmp.gt.s32.totalorder %v1157_v34, 0 }
  0x79   : > { %4533 = vmatmul.mubr.msk.f32.gmra.mrb[6].mxu1 %vm757_vm1, %v729_v36 }
  0x7a   : > { %4535 = vmatprep.mubr.msk.f32.mxu1 %vm757_vm1, %v730_v37  ;;  %v5148_v37 = vsel %vm1537_vm3, 1.0, %v6860_v3 }
  0x7b   : > { %4642 = vmatpush3.bf16.msra.mxu0 %v4639_v35 }
  0x7d   : > { %4536 = vmatmul.mubr.msk.f32.gmra.mrb[8].mxu1 %vm757_vm1, %v731_v38 }
  0x7e   : > { %4474 = vmatmul.mubr.msk.f32.vlgmr.msra.gmra.mrb[0].mxu0 %vm400_vm0, %v352_v39  ;;  %4538 = vmatprep.mubr.msk.f32.mxu1 %vm757_vm1, %v732_v40  ;;  %v1729_v39 = vld [vmem:[#allocation2 + $0xf] sm:$0xff] }
  0x7f   : > { %4476 = vmatprep.mubr.msk.f32.mxu0 %vm400_vm0, %v353_v41  ;;  %v1761_v40 = vmul.f32 %v5148_v37, %v1729_v39 }
  0x81   : > { %4539 = vmatmul.mubr.msk.f32.gmra.mrb[10].mxu1 %vm757_vm1, %v733_v42  ;;  %1793 = vst.msk [vmem:[#allocation3] sm:$0xff] %vm1079_vm2, %v1761_v40 }
  0x82   : > { %4477 = vmatmul.mubr.msk.f32.gmra.mrb[2].mxu0 %vm400_vm0, %v354_v43  ;;  %4541 = vmatprep.mubr.msk.f32.mxu1 %vm757_vm1, %v734_v44 }
  0x83   : > { %4479 = vmatprep.mubr.msk.f32.mxu0 %vm400_vm0, %v355_v45 }
  0x85   : > { %4542 = vmatmul.mubr.msk.f32.gmra.mrb[12].mxu1 %vm757_vm1, %v735_v46  ;;  %v1730_v46 = vld [vmem:[#allocation2 + $0x17] sm:$0xff] }
  0x86   : > { %4480 = vmatmul.mubr.msk.f32.gmra.mrb[4].mxu0 %vm400_vm0, %v356_v47  ;;  %4544 = vmatprep.mubr.msk.f32.mxu1 %vm757_vm1, %v736_v48  ;;  %1794 = vst.msk [vmem:[#allocation3 + $0x18] sm:$0xff] %vm1079_vm2, %v1730_v46 }
  0x87   : > { %4482 = vmatprep.mubr.msk.f32.mxu0 %vm400_vm0, %v357_v49  ;;  %v3364_v49 = vld [vmem:[%s6854_s5] sm:$0xff] }
  0x89   : > { %4545 = vmatmul.mubr.msk.f32.gmra.mrb[14].mxu1 %vm757_vm1, %v737_v50  ;;  %v3365_v50 = vld [vmem:[%s6854_s5 + $0x8] sm:$0xff] }
  0x8a   : > { %4483 = vmatmul.mubr.msk.f32.gmra.mrb[6].mxu0 %vm400_vm0, %v358_v51  ;;  %4547 = vmatprep.mubr.msk.f32.mxu1 %vm757_vm1, %v738_v52  ;;  %v6858_v52 = vmov 0.0|0.0  }
  0x8b   : > { %4485 = vmatprep.mubr.msk.f32.mxu0 %vm400_vm0, %v359_v53  ;;  %4643 = vmatprep.subr.bf16.mxu0 %v6858_v52  ;;  %v4644_v53 = vpack.c.bf16 %v3365_v50, %v3364_v49 }
  0x8c   : > { %4699 = vmatprep.subr.bf16.mxu1 %v6858_v52 }
  0x8d   : > { %4548 = vmatmul.mubr.msk.f32.gmra.mrb[16].mxu1 %vm757_vm1, %v739_v54  ;;  %v1122_v54 = vadd.s32 8, %v5138_v31  ;;  %4645 = vmatpush1.bf16.msra.mxu0 %v4644_v53 }
  0x8e   : > { %4486 = vmatmul.mubr.msk.f32.gmra.mrb[8].mxu0 %vm400_vm0, %v360_v55  ;;  %4550 = vmatprep.mubr.msk.f32.mxu1 %vm757_vm1, %v740_v56  ;;  %v1123_v55 = vadd.s32 16, %v5138_v31  ;;  %v1124_v56 = vadd.s32 24, %v5138_v31 }
  0x8f   : > { %4488 = vmatprep.mubr.msk.f32.mxu0 %vm400_vm0, %v361_v57  ;;  %4715 = vmatpush1.bf16.msra.mxu1 %v4644_v53 }
  0x90   : > { %4646 = vmatprep.subr.bf16.mxu0 %v6858_v52  ;;  %4700 = vmatprep.subr.bf16.mxu1 %v6858_v52 }
  0x91   : > { %4551 = vmatmul.mubr.msk.f32.gmra.mrb[18].mxu1 %vm757_vm1, %v741_v58  ;;  %v3366_v58 = vld [vmem:[%s6854_s5 + $0x10] sm:$0xff] }
  0x92   : > { %4489 = vmatmul.mubr.msk.f32.gmra.mrb[10].mxu0 %vm400_vm0, %v362_v59  ;;  %4553 = vmatprep.mubr.msk.f32.mxu1 %vm757_vm1, %v742_v60  ;;  %v3367_v59 = vld [vmem:[%s6854_s5 + $0x18] sm:$0xff] }
  0x93   : > { %4491 = vmatprep.mubr.msk.f32.mxu0 %vm400_vm0, %v363_v61 }
  0x95   : > { %4554 = vmatmul.mubr.msk.f32.gmra.mrb[20].mxu1 %vm757_vm1, %v743_v62  ;;  %v1125_v62 = vadd.s32 32, %v5138_v31 }
  0x96   : > { %4492 = vmatmul.mubr.msk.f32.gmra.mrb[12].mxu0 %vm400_vm0, %v364_v63  ;;  %4556 = vmatprep.mubr.msk.f32.mxu1 %vm757_vm1, %v744_v13  ;;  %v4647_v63 = vpack.c.bf16 %v3367_v59, %v3366_v58 }
  0x97   : > { %4494 = vmatprep.mubr.msk.f32.mxu0 %vm400_vm0, %v365_v0 }
  0x98   : > { %4648 = vmatpush1.bf16.msra.mxu0 %v4647_v63  ;;  %4716 = vmatpush1.bf16.msra.mxu1 %v4647_v63  ;;  %v3372_v63 = vld [vmem:[%s6854_s5 + $0x40] sm:$0xff] }
  0x99   : > { %4557 = vmatmul.mubr.msk.f32.gmra.mrb[22].mxu1 %vm757_vm1, %v745_v15  ;;  %v1890_v38 = vpop.permute.xlu1 %1889  ;;  %4649 = vmatprep.subr.bf16.mxu0 %v6858_v52  ;;  %v4650_v15 = vpack.c.bf16 %v3369_v11, %v3368_v10 }
  0x9a   : > { %4495 = vmatmul.mubr.msk.f32.gmra.mrb[14].mxu0 %vm400_vm0, %v366_v1  ;;  %4559 = vmatprep.mubr.msk.f32.mxu1 %vm757_vm1, %v746_v17  ;;  %1986 = vst.msk [vmem:[#allocation3] sm:$0xff] %vm1985_vm4, %v1890_v38 }
  0x9b   : > { %4497 = vmatprep.mubr.msk.f32.mxu0 %vm400_vm0, %v367_v2  ;;  %v1164_v2 = vand.u32 15, %v1122_v54  ;;  %4701 = vmatprep.subr.bf16.mxu1 %v6858_v52 }
  0x9c   : > { %4651 = vmatpush1.bf16.msra.mxu0 %v4650_v15  ;;  %4717 = vmatpush1.bf16.msra.mxu1 %v4650_v15 }
  0x9d   : > { %4560 = vmatmul.mubr.msk.f32.gmra.mrb[24].mxu1 %vm757_vm1, %v747_v19  ;;  %vm5204_vm6 = vcmp.lt.s32.totalorder %v1164_v2, 15  ;;  %4652 = vmatprep.subr.bf16.mxu0 %v6858_v52 }
  0x9e   : > { %4498 = vmatmul.mubr.msk.f32.gmra.mrb[16].mxu0 %vm400_vm0, %v368_v4  ;;  %4562 = vmatprep.mubr.msk.f32.mxu1 %vm757_vm1, %v748_v21  ;;  %v1126_v4 = vadd.s32 40, %v5138_v31 }
  0x9f   : > { %4500 = vmatprep.mubr.msk.f32.mxu0 %vm400_vm0, %v369_v5  ;;  %v1171_v5 = vand.u32 15, %v1123_v55  ;;  %4702 = vmatprep.subr.bf16.mxu1 %v6858_v52 }
  0xa0   : > { %v1192_v19 = vand.u32 15, %v1126_v4 }
  0xa1   : > { %4563 = vmatmul.mubr.msk.f32.gmra.mrb[26].mxu1 %vm757_vm1, %v749_v23  ;;  %vm5208_vm7 = vcmp.gt.s32.totalorder %v1171_v5, 0  ;;  %v1128_v23 = vadd.s32 56, %v5138_v31 }
  0xa2   : > { %4501 = vmatmul.mubr.msk.f32.gmra.mrb[18].mxu0 %vm400_vm0, %v370_v6  ;;  %4565 = vmatprep.mubr.msk.f32.mxu1 %vm757_vm1, %v750_v25  ;;  %vm5252_vm10 = vcmp.lt.s32.totalorder %v1192_v19, 15 }
  0xa3   : > { %4503 = vmatprep.mubr.msk.f32.mxu0 %vm400_vm0, %v371_v7  ;;  %v1178_v7 = vand.u32 15, %v1124_v56  ;;  %v1206_v46 = vand.u32 15, %v1128_v23  ;;  %v5290_v59 = vsel %vm5252_vm10, 1.0, %v6860_v3  ;;  %v3374_v23 = vld [vmem:[%s6854_s5 + $0x50] sm:$0xff] }
  0xa5   : > { %4566 = vmatmul.mubr.msk.f32.gmra.mrb[28].mxu1 %vm757_vm1, %v751_v27  ;;  %vm5212_vm8 = vcmp.lt.s32.totalorder %v1178_v7, 15  ;;  %v3370_v27 = vld [vmem:[%s6854_s5 + $0x30] sm:$0xff]  ;;  %vm5319_vm12 = vcmp.lt.s32.totalorder %v1206_v46, 15 }
  0xa6   : > { %4504 = vmatmul.mubr.msk.f32.gmra.mrb[20].mxu0 %vm400_vm0, %v372_v8  ;;  %4568 = vmatprep.mubr.msk.f32.mxu1 %vm757_vm1, %v752_v30  ;;  %v1127_v8 = vadd.s32 48, %v5138_v31  ;;  %v5233_v30 = vsel %vm5204_vm6, 1.0, %v6860_v3  ;;  %v5250_v39 = vsel %vm5212_vm8, 1.0, %v6860_v3 }
  0xa7   : > { %4506 = vmatprep.mubr.msk.f32.mxu0 %vm400_vm0, %v373_v12 }
  0xa9   : > { %4569 = vmatmul.mubr.msk.f32.gmra.mrb[30].mxu1 %vm757_vm1, %v753_v33  ;;  %v5240_v33 = vsel %vm5208_vm7, 1.0, %v6860_v3 }
  0xaa   : > { %4507 = vmatmul.mubr.msk.f32.gmra.mrb[22].mxu0 %vm400_vm0, %v374_v14  ;;  %v1185_v14 = vand.u32 15, %v1125_v62  ;;  %v5295_v62 = vadd.s32 88, %v5138_v31 }
  0xab   : > { %4509 = vmatprep.mubr.msk.f32.mxu0 %vm400_vm0, %v375_v16 }
  0xac   : > { %vm5242_vm9 = vcmp.gt.s32.totalorder %v1185_v14, 0 }
  0xae   : > { %4510 = vmatmul.mubr.msk.f32.gmra.mrb[24].mxu0 %vm400_vm0, %v376_v18 }
  0xaf   : > { %4512 = vmatprep.mubr.msk.f32.mxu0 %vm400_vm0, %v377_v20 }
  0xb2   : > { %4513 = vmatmul.mubr.msk.f32.gmra.mrb[26].mxu0 %vm400_vm0, %v378_v22 }
  0xb3   : > { %4515 = vmatprep.mubr.msk.f32.mxu0 %vm400_vm0, %v379_v24  ;;  %v1199_v24 = vand.u32 15, %v1127_v8 }
  0xb5   : > { %vm5260_vm11 = vcmp.gt.s32.totalorder %v1199_v24, 0 }
  0xb6   : > { %4516 = vmatmul.mubr.msk.f32.gmra.mrb[28].mxu0 %vm400_vm0, %v380_v26  ;;  %v1129_v26 = vadd.s32 64, %v5138_v31  ;;  %v5311_v5 = vsel %vm5260_vm11, 1.0, %v6860_v3 }
  0xb7   : > { %4518 = vmatprep.mubr.msk.f32.mxu0 %vm400_vm0, %v381_v29 }
  0xb8   : > { %v1213_v55 = vand.u32 15, %v1129_v26 }
  0xba   : > { %4519 = vmatmul.mubr.msk.f32.gmra.mrb[30].mxu0 %vm400_vm0, %v382_v32  ;;  %vm5332_vm13 = vcmp.gt.s32.totalorder %v1213_v55, 0 }
  0xde   : > { %v2115_v43 = vpop.permute.xlu1 %2114 }
  0xdf   : > { %2211 = vst.msk [vmem:[#allocation3] sm:$0xff] %vm2210_vm5, %v2115_v43 }
  0xe2   : > { %v1892_v47 = vpop.permute.xlu1 %1891 }
  0xe3   : > { %1987 = vst.msk [vmem:[#allocation3 + $0x18] sm:$0xff] %vm1985_vm4, %v1892_v47  ;;  %v5265_v47 = vadd.s32 80, %v5138_v31 }
  0xe5   : > { %v1227_v11 = vand.u32 15, %v5265_v47 }
  0xe7   : > { %vm5384_vm15 = vcmp.gt.s32.totalorder %v1227_v11, 0 }
 0x140   : > { %v4525_v35 = vpop.f32.mrb[0].mxu1 }
 0x141   : > { %v920_v36 = vpop.f32.mrb[1].mxu1 }
 0x144   : > { %v4528_v41 = vpop.f32.mrb[2].mxu1 }
 0x145   : > { %v930_v42 = vpop.f32.mrb[3].mxu1 }
 0x148   : > { %v5153_v44 = vpop.f32.mrb[4].mxu1 }
 0x149   : > { %v5156_v45 = vpop.f32.mrb[5].mxu1 }
 0x14c   : > { %v5159_v48 = vpop.f32.mrb[6].mxu1 }
 0x14d   : > { %v5168_v51 = vpop.f32.mrb[7].mxu1 }
 0x150   : > { %v5175_v57 = vpop.f32.mrb[8].mxu1 }
 0x151   : > { %v4475_v60 = vpop.f32.mrb[0].mxu0  ;;  %v5185_v61 = vpop.f32.mrb[9].mxu1 }
 0x152   : > { %v926_v0 = vadd.f32 %v4525_v35, %v4475_v60  ;;  %v563_v1 = vpop.f32.mrb[1].mxu0  ;;  %v4653_v35 = vpack.c.bf16 %v3371_v28, %v3370_v27  ;;  %v5365_v27 = vsel %vm5319_vm12, 1.0, %v6860_v3 }
 0x153   : > { %v921_v6 = vadd.f32 %v920_v36, %v563_v1 }
 0x154   : > { %1089 = vst.msk [vmem:[#allocation2 + $0x28] sm:$0xff] %vm1079_vm2, %v926_v0  ;;  %v5191_v9 = vpop.f32.mrb[10].mxu1  ;;  %4654 = vmatpush1.bf16.msra.mxu0 %v4653_v35  ;;  %4718 = vmatpush1.bf16.msra.mxu1 %v4653_v35 }
 0x155   : > { %1088 = vst.msk [vmem:[#allocation2 + $0x20] sm:$0xff] %vm1079_vm2, %v921_v6  ;;  %v4478_v12 = vpop.f32.mrb[2].mxu0  ;;  %v5202_v13 = vpop.f32.mrb[11].mxu1  ;;  %4655 = vmatprep.subr.bf16.mxu0 %v6858_v52  ;;  %4703 = vmatprep.subr.bf16.mxu1 %v6858_v52  ;;  %v3373_v6 = vld [vmem:[%s6854_s5 + $0x48] sm:$0xff] }
 0x156   : > { %v936_v16 = vadd.f32 %v4528_v41, %v4478_v12  ;;  %v573_v17 = vpop.f32.mrb[3].mxu0  ;;  %v5257_v41 = vadd.s32 72, %v5138_v31  ;;  %v4656_v10 = vpack.c.bf16 %v3373_v6, %v3372_v63  ;;  %v3379_v63 = vld [vmem:[%s6854_s5 + $0x78] sm:$0xff] }
 0x157   : > { %v931_v21 = vadd.f32 %v930_v42, %v573_v17  ;;  %v5342_v17 = vadd.s32 96, %v5138_v31 }
 0x158   : > { %1091 = vst.msk [vmem:[#allocation2 + $0x38] sm:$0xff] %vm1079_vm2, %v936_v16  ;;  %v5218_v25 = vpop.f32.mrb[12].mxu1  ;;  %v1220_v2 = vand.u32 15, %v5257_v41  ;;  %4657 = vmatpush1.bf16.msra.mxu0 %v4656_v10  ;;  %4719 = vmatpush1.bf16.msra.mxu1 %v4656_v10 }
 0x159   : > { %1090 = vst.msk [vmem:[#allocation2 + $0x30] sm:$0xff] %vm1079_vm2, %v931_v21  ;;  %v4481_v29 = vpop.f32.mrb[4].mxu0  ;;  %v5235_v32 = vpop.f32.mrb[13].mxu1  ;;  %v1234_v21 = vand.u32 15, %v5295_v62  ;;  %4658 = vmatprep.subr.bf16.mxu0 %v6858_v52  ;;  %v1241_v46 = vand.u32 15, %v5342_v17  ;;  %4704 = vmatprep.subr.bf16.mxu1 %v6858_v52 }
 0x15a   : > { %v946_v36 = vadd.f32 %v5153_v44, %v4481_v29  ;;  %v583_v38 = vpop.f32.mrb[5].mxu0  ;;  %vm5367_vm14 = vcmp.lt.s32.totalorder %v1220_v2, 15  ;;  %v3375_v29 = vld [vmem:[%s6854_s5 + $0x58] sm:$0xff]  ;;  %v5405_v44 = vadd.s32 112, %v5138_v31 }
 0x15b   : > { %v941_v42 = vadd.f32 %v5156_v45, %v583_v38  ;;  %v1828_v43 = vld [vmem:[#allocation2 + $0x28] sm:$0xff]  ;;  %v5276_v45 = vsel %vm5242_vm9, 1.0, %v6860_v3  ;;  %v4659_v40 = vpack.c.bf16 %v3375_v29, %v3374_v23  ;;  %vm5425_vm0 = vcmp.lt.s32.totalorder %v1234_v21, 15  ;;  %v3378_v38 = vld [vmem:[%s6854_s5 + $0x70] sm:$0xff] }
 0x15c   : > { %1093 = vst.msk [vmem:[#allocation2 + $0x48] sm:$0xff] %vm1079_vm2, %v946_v36  ;;  %1895 = vrot.lane.b32.xlu1 %v1828_v43, %s4822_s26  ;;  %v5269_v49 = vld [vmem:[#allocation2 + $0x21] sm:$0xff]  ;;  %v5278_v54 = vpop.f32.mrb[14].mxu1  ;;  %2501 = vst.msk [vmem:[#allocation3 + $0x20] sm:$0xff] %vm1079_vm2, %v1828_v43  ;;  %v5453_v10 = vsel %vm5367_vm14, 1.0, %v6860_v3  ;;  %vm5473_vm1 = vcmp.gt.s32.totalorder %v1241_v46, 0 }
 0x15d   : > { %v2244_v50 = vld [vmem:[#allocation2 + $0x27] sm:$0xff]  ;;  %1092 = vst.msk [vmem:[#allocation2 + $0x40] sm:$0xff] %vm1079_vm2, %v941_v42  ;;  %2628 = vrot.lane.b32.xlu0 %v5269_v49, %s4822_s26  ;;  %v4484_v56 = vpop.f32.mrb[6].mxu0  ;;  %v5285_v58 = vld [vmem:[#allocation2 + $0x1f] sm:$0xff]  ;;  %v5292_v60 = vpop.f32.mrb[15].mxu1  ;;  %4660 = vmatpush1.bf16.msra.mxu0 %v4659_v40  ;;  %v5491_v29 = vsel %vm5425_vm0, 1.0, %v6860_v3 }
 0x15e   : > { %v5271_v53 = vld [vmem:[#allocation2 + $0x20] sm:$0xff]  ;;  %1796 = vst.msk [vmem:[#allocation3 + $0x48] sm:$0xff] %vm1079_vm2, %v2244_v50  ;;  %v956_v0 = vadd.f32 %v5159_v48, %v4484_v56  ;;  %v593_v1 = vpop.f32.mrb[7].mxu0  ;;  %v1763_v4 = vmul.f32 %v5240_v33, %v5285_v58  ;;  %v5419_v56 = vsel %vm5332_vm13, 1.0, %v6860_v3  ;;  %4661 = vmatprep.subr.bf16.mxu0 %v6858_v52  ;;  %v3377_v48 = vld [vmem:[%s6854_s5 + $0x68] sm:$0xff]  ;;  %4720 = vmatpush1.bf16.msra.mxu1 %v4659_v40  ;;  %v5503_v40 = vadd.s32 120, %v5138_v31 }
 0x15f   : > { %2500 = vst.msk [vmem:[#allocation3 + $0x8] sm:$0xff] %vm1079_vm2, %v5271_v53  ;;  %v951_v7 = vadd.f32 %v5168_v51, %v593_v1  ;;  %v5317_v8 = vld [vmem:[#allocation2 + $0x38] sm:$0xff]  ;;  %v5460_v51 = vsel %vm5384_vm15, 1.0, %v6860_v3  ;;  %4705 = vmatprep.subr.bf16.mxu1 %v6858_v52 }
 0x160   : > { %v5324_v12 = vld [vmem:[#allocation2 + $0x31] sm:$0xff]  ;;  %1095 = vst.msk [vmem:[#allocation2 + $0x58] sm:$0xff] %vm1079_vm2, %v956_v0  ;;  %2341 = vrot.lane.b32.xlu1 %v2244_v50, %s4824_s10  ;;  %v5328_v14 = vld [vmem:[#allocation2 + $0x29] sm:$0xff]  ;;  %1795 = vst.msk [vmem:[#allocation3 + $0x30] sm:$0xff] %vm1079_vm2, %v1763_v4  ;;  %v5337_v16 = vpop.f32.mrb[16].mxu1 }
 0x161   : > { %v5330_v15 = vld [vmem:[#allocation2 + $0x30] sm:$0xff]  ;;  %2503 = vst.msk [vmem:[#allocation3 + $0x50] sm:$0xff] %vm1079_vm2, %v5317_v8  ;;  %3236 = vst.msk [vmem:[#allocation3 + $0x10] sm:$0xff] %vm1079_vm2, %v5324_v12  ;;  %2632 = vrot.lane.b32.xlu0 %v5324_v12, %s4822_s26  ;;  %v4487_v18 = vpop.f32.mrb[8].mxu0  ;;  %v5356_v22 = vpop.f32.mrb[17].mxu1  ;;  %v2565_v34 = vmul.f32 %v5233_v30, %v5328_v14  ;;  %v3376_v0 = vld [vmem:[%s6854_s5 + $0x60] sm:$0xff] }
 0x162   : > { %1094 = vst.msk [vmem:[#allocation2 + $0x50] sm:$0xff] %vm1079_vm2, %v951_v7  ;;  %v5349_v19 = vld [vmem:[#allocation2 + $0x37] sm:$0xff]  ;;  %v5351_v20 = vld [vmem:[#allocation2 + $0x2f] sm:$0xff]  ;;  %2502 = vst.msk [vmem:[#allocation3 + $0x38] sm:$0xff] %vm1079_vm2, %v5330_v15  ;;  %v966_v24 = vadd.f32 %v5175_v57, %v4487_v18  ;;  %v603_v26 = vpop.f32.mrb[9].mxu0  ;;  %v4662_v17 = vpack.c.bf16 %v3377_v48, %v3376_v0  ;;  %v5527_v0 = vsel %vm5473_vm1, 1.0, %v6860_v3 }
 0x163   : > { %1798 = vst.msk [vmem:[#allocation3 + $0x78] sm:$0xff] %vm1079_vm2, %v5349_v19  ;;  %v1765_v57 = vmul.f32 %v5276_v45, %v5351_v20  ;;  %v961_v35 = vadd.f32 %v5185_v61, %v603_v26  ;;  %v5382_v36 = vld [vmem:[#allocation2 + $0x48] sm:$0xff]  ;;  %v5398_v61 = vadd.s32 104, %v5138_v31  ;;  %v1255_v26 = vand.u32 15, %v5405_v44  ;;  %v2019_v46 = vld [vmem:[#allocation2 + $0x19] sm:$0xff] }
 0x164   : > { %v5388_v41 = vld [vmem:[#allocation2 + $0x41] sm:$0xff]  ;;  %1893 = vrot.lane.b32.xlu1 %v5271_v53, %s4822_s26  ;;  %v5392_v42 = vld [vmem:[#allocation2 + $0x39] sm:$0xff]  ;;  %1097 = vst.msk [vmem:[#allocation2 + $0x68] sm:$0xff] %vm1079_vm2, %v966_v24  ;;  %2505 = vst.msk [vmem:[#allocation3 + $0x80] sm:$0xff] %vm1079_vm2, %v5382_v36  ;;  %4663 = vmatpush1.bf16.msra.mxu0 %v4662_v17 }
 0x165   : > { %v5395_v43 = vld [vmem:[#allocation2 + $0x40] sm:$0xff]  ;;  %1797 = vst.msk [vmem:[#allocation3 + $0x60] sm:$0xff] %vm1079_vm2, %v1765_v57  ;;  %3238 = vst.msk [vmem:[#allocation3 + $0x40] sm:$0xff] %vm1079_vm2, %v5388_v41  ;;  %2630 = vrot.lane.b32.xlu0 %v2565_v34, %s4822_s26  ;;  %v3205_v47 = vmul.f32 %v5233_v30, %v5392_v42  ;;  %v4490_v50 = vpop.f32.mrb[10].mxu0  ;;  %v5423_v62 = vmul.f32 %v5290_v59, %v5392_v42  ;;  %v1248_v23 = vand.u32 15, %v5398_v61  ;;  %4664 = vmatprep.subr.bf16.mxu0 %v6858_v52 }
 0x166   : > { %1096 = vst.msk [vmem:[#allocation2 + $0x60] sm:$0xff] %vm1079_vm2, %v961_v35  ;;  %v5414_v53 = vld [vmem:[#allocation2 + $0x47] sm:$0xff]  ;;  %v2758_v55 = vld [vmem:[#allocation2 + $0x3f] sm:$0xff]  ;;  %2504 = vst.msk [vmem:[#allocation3 + $0x68] sm:$0xff] %vm1079_vm2, %v5395_v43  ;;  %v976_v1 = vadd.f32 %v5191_v9, %v4490_v50  ;;  %v613_v2 = vpop.f32.mrb[11].mxu0  ;;  %v2275_v61 = vmul.f32 %v5148_v37, %v5285_v58  ;;  %v4665_v58 = vpack.c.bf16 %v3379_v63, %v3378_v38  ;;  %4721 = vmatpush1.bf16.msra.mxu1 %v4662_v17 }
 0x167   : > { %v5436_v4 = vmul.f32 %v5240_v33, %v2758_v55  ;;  %v5439_v6 = vmul.f32 %v5276_v45, %v2758_v55  ;;  %v1767_v7 = vmul.f32 %v5311_v5, %v2758_v55  ;;  %1800 = vst.msk [vmem:[#allocation3 + $0xa8] sm:$0xff] %vm1079_vm2, %v5414_v53  ;;  %3237 = vst.msk [vmem:[#allocation3 + $0x28] sm:$0xff] %vm1079_vm2, %v3205_v47  ;;  %v5455_v11 = vld [vmem:[#allocation2 + $0x58] sm:$0xff]  ;;  %vm5538_vm3 = vcmp.lt.s32.totalorder %v1248_v23, 15 }
 0x168   : > { %v971_v9 = vadd.f32 %v5202_v13, %v613_v2  ;;  %2118 = vrot.lane.b32.xlu1 %v5269_v49, %s4823_s29  ;;  %1099 = vst.msk [vmem:[#allocation2 + $0x78] sm:$0xff] %vm1079_vm2, %v976_v1  ;;  %2507 = vst.msk [vmem:[#allocation3 + $0xb0] sm:$0xff] %vm1079_vm2, %v5455_v11  ;;  %vm5542_vm6 = vcmp.gt.s32.totalorder %v1255_v26, 0  ;;  %v5547_v17 = vadd.s32 128, %v5138_v31  ;;  %4706 = vmatprep.subr.bf16.mxu1 %v6858_v52 }
 0x169   : > { %v5462_v18 = vld [vmem:[#allocation2 + $0x51] sm:$0xff]  ;;  %v5466_v13 = vld [vmem:[#allocation2 + $0x49] sm:$0xff]  ;;  %1799 = vst.msk [vmem:[#allocation3 + $0x90] sm:$0xff] %vm1079_vm2, %v1767_v7  ;;  %1901 = vrot.lane.b32.xlu0 %v5395_v43, %s4822_s26  ;;  %v4493_v28 = vpop.f32.mrb[12].mxu0  ;;  %v2051_v23 = vmul.f32 %v5233_v30, %v2019_v46  ;;  %4666 = vmatpush1.bf16.msra.mxu0 %v4665_v58  ;;  %v1262_v30 = vand.u32 15, %v5503_v40 }
 0x16a   : > { %v5469_v21 = vld [vmem:[#allocation2 + $0x57] sm:$0xff]  ;;  %3240 = vst.msk [vmem:[#allocation3 + $0x70] sm:$0xff] %vm1079_vm2, %v5462_v18  ;;  %v3207_v49 = vmul.f32 %v5250_v39, %v5466_v13  ;;  %1098 = vst.msk [vmem:[#allocation2 + $0x70] sm:$0xff] %vm1079_vm2, %v971_v9  ;;  %v2249_v34 = vld [vmem:[#allocation2 + $0x4f] sm:$0xff]  ;;  %v5497_v35 = vmul.f32 %v5365_v27, %v5466_v13  ;;  %v986_v44 = vadd.f32 %v5218_v25, %v4493_v28  ;;  %v623_v47 = vpop.f32.mrb[13].mxu0  ;;  %4667 = vmatprep.subr.bf16.mxu0 %v6858_v52 }
 0x16b   : > { %v5493_v57 = vld [vmem:[#allocation2 + $0x50] sm:$0xff]  ;;  %1802 = vst.msk [vmem:[#allocation3 + $0xd8] sm:$0xff] %vm1079_vm2, %v5469_v21  ;;  %v5511_v50 = vmul.f32 %v5311_v5, %v2249_v34  ;;  %v5514_v55 = vmul.f32 %v5276_v45, %v2249_v34  ;;  %v981_v25 = vadd.f32 %v5235_v32, %v623_v47  ;;  %v2477_v45 = vld [vmem:[#allocation2 + $0x68] sm:$0xff]  ;;  %v1769_v1 = vmul.f32 %v5419_v56, %v2249_v34  ;;  %v3380_v34 = vld [vmem:[%s6854_s5 + $0x80] sm:$0xff] }
 0x16c   : > { %2506 = vst.msk [vmem:[#allocation3 + $0x98] sm:$0xff] %vm1079_vm2, %v5493_v57  ;;  %3239 = vst.msk [vmem:[#allocation3 + $0x58] sm:$0xff] %vm1079_vm2, %v3207_v49  ;;  %2339 = vrot.lane.b32.xlu1 %v2275_v61, %s4824_s10  ;;  %v3381_v47 = vld [vmem:[%s6854_s5 + $0x88] sm:$0xff]  ;;  %4722 = vmatpush1.bf16.msra.mxu1 %v4665_v58  ;;  %v1269_v58 = vand.u32 15, %v5547_v17  ;;  %vm5650_vm7 = vcmp.lt.s32.totalorder %v1262_v30, 15 }
 0x16d   : > { %6893 = vst [vmem:[#allocation7_spill] sm:$0xff] %v5514_v55  ;;  %v5530_v2 = vld [vmem:[#allocation2 + $0x61] sm:$0xff]  ;;  %v5533_v7 = vld [vmem:[#allocation2 + $0x59] sm:$0xff]  ;;  %1101 = vst.msk [vmem:[#allocation2 + $0x88] sm:$0xff] %vm1079_vm2, %v986_v44  ;;  %2636 = vrot.lane.b32.xlu0 %v5388_v41, %s4822_s26  ;;  %v4496_v49 = vpop.f32.mrb[14].mxu0 }
 0x16e   : > { %v5535_v48 = vld [vmem:[#allocation2 + $0x60] sm:$0xff]  ;;  %2509 = vst.msk [vmem:[#allocation3 + $0xe0] sm:$0xff] %vm1079_vm2, %v2477_v45  ;;  %3242 = vst.msk [vmem:[#allocation3 + $0xa0] sm:$0xff] %vm1079_vm2, %v5530_v2  ;;  %v3209_v24 = vmul.f32 %v5290_v59, %v5533_v7  ;;  %v5566_v38 = vmul.f32 %v5453_v10, %v5533_v7  ;;  %v996_v61 = vadd.f32 %v5278_v54, %v4496_v49  ;;  %v633_v46 = vpop.f32.mrb[15].mxu0  ;;  %v5591_v45 = vadd.s32 136, %v5138_v31 }
 0x16f   : > { %v5558_v26 = vld [vmem:[#allocation2 + $0x67] sm:$0xff]  ;;  %1100 = vst.msk [vmem:[#allocation2 + $0x80] sm:$0xff] %vm1079_vm2, %v981_v25  ;;  %v2762_v28 = vld [vmem:[#allocation2 + $0x5f] sm:$0xff]  ;;  %2508 = vst.msk [vmem:[#allocation3 + $0xc8] sm:$0xff] %vm1079_vm2, %v5535_v48  ;;  %v2567_v54 = vmul.f32 %v5250_v39, %v5392_v42  ;;  %v4668_v25 = vpack.c.bf16 %v3381_v47, %v3380_v34  ;;  %v6901_v42 = vmov 0.0   ;;  %v5632_v47 = vadd.s32 144, %v5138_v31 }
 0x170   : > { %6898 = vst [vmem:[#allocation8_spill] sm:$0xff] %v5566_v38  ;;  %1801 = vst.msk [vmem:[#allocation3 + $0xc0] sm:$0xff] %vm1079_vm2, %v1769_v1  ;;  %v5574_v44 = vmul.f32 %v5311_v5, %v2762_v28  ;;  %v5581_v63 = vmul.f32 %v5419_v56, %v2762_v28  ;;  %v1771_v40 = vmul.f32 %v5460_v51, %v2762_v28  ;;  %v2479_v1 = vld [vmem:[#allocation2 + $0x78] sm:$0xff]  ;;  %2116 = vrot.lane.b32.xlu1 %v2051_v23, %s4823_s29  ;;  %v6903_v23 = vmov 0.0|0.0  }
 0x171   : > { %1804 = vst.msk [vmem:[#allocation3 + $0x108] sm:$0xff] %vm1079_vm2, %v5558_v26  ;;  %3241 = vst.msk [vmem:[#allocation3 + $0x88] sm:$0xff] %vm1079_vm2, %v3209_v24  ;;  %v991_v5 = vadd.f32 %v5292_v60, %v633_v46  ;;  %v5594_v49 = vld [vmem:[#allocation2 + $0x71] sm:$0xff]  ;;  %v3179_v52 = vld [vmem:[#allocation2 + $0x69] sm:$0xff]  ;;  %v5602_v24 = vsel %vm5538_vm3, 1.0, %v6901_v42  ;;  %v5608_v60 = vsel %vm5542_vm6, 1.0, %v6901_v42  ;;  %4707 = vmatprep.subr.bf16.mxu1 %v6903_v23  ;;  %2634 = vrot.lane.b32.xlu0 %v2567_v54, %s4822_s26 }
 0x172   : > { %6899 = vst [vmem:[#allocation9_spill] sm:$0xff] %v5574_v44  ;;  %6900 = vst [vmem:[#allocation10_spill] sm:$0xff] %v5581_v63  ;;  %v5596_v3 = vld [vmem:[#allocation2 + $0x70] sm:$0xff]  ;;  %v3211_v32 = vmul.f32 %v5365_v27, %v3179_v52  ;;  %v5621_v9 = vmul.f32 %v5453_v10, %v3179_v52  ;;  %v5624_v17 = vmul.f32 %v5491_v29, %v3179_v52  ;;  %4669 = vmatpush1.bf16.msra.mxu0 %v4668_v25  ;;  %v3383_v52 = vld [vmem:[%s6854_s5 + $0x98] sm:$0xff]  ;;  %vm2435_vm6 = vcmask 1048320  }
 0x173   : > { %1103 = vst.msk [vmem:[#allocation2 + $0x98] sm:$0xff] %vm1079_vm2, %v996_v61  ;;  %1803 = vst.msk [vmem:[#allocation3 + $0xf0] sm:$0xff] %vm1079_vm2, %v1771_v40  ;;  %v5617_v28 = vld [vmem:[#allocation2 + $0x77] sm:$0xff]  ;;  %v2764_v34 = vld [vmem:[#allocation2 + $0x6f] sm:$0xff]  ;;  %v4499_v61 = vpop.f32.mrb[16].mxu0  ;;  %4670 = vmatprep.subr.bf16.mxu0 %v6903_v23  ;;  %v1276_v63 = vand.u32 15, %v5591_v45  ;;  %4723 = vmatpush1.bf16.msra.mxu1 %v4668_v25 }
 0x174   : > { %6902 = vst [vmem:[#allocation11_spill] sm:$0xff] %v5608_v60  ;;  %2511 = vst.msk [vmem:[#allocation3 + $0x110] sm:$0xff] %vm1079_vm2, %v2479_v1  ;;  %v3382_v46 = vld [vmem:[%s6854_s5 + $0x90] sm:$0xff]  ;;  %v5635_v40 = vmul.f32 %v5419_v56, %v2764_v34  ;;  %v1006_v54 = vadd.f32 %v5337_v16, %v4499_v61  ;;  %v5643_v1 = vmul.f32 %v5460_v51, %v2764_v34  ;;  %v2481_v44 = vld [vmem:[#allocation2 + $0x88] sm:$0xff]  ;;  %3046 = vrot.lane.b32.xlu1 %v5317_v8, %s4824_s10 }
 0x175   : > { %3244 = vst.msk [vmem:[#allocation3 + $0xd0] sm:$0xff] %vm1079_vm2, %v5594_v49  ;;  %1102 = vst.msk [vmem:[#allocation2 + $0x90] sm:$0xff] %vm1079_vm2, %v991_v5  ;;  %v643_v5 = vpop.f32.mrb[17].mxu0  ;;  %v1773_v38 = vmul.f32 %v5527_v0, %v2764_v34  ;;  %v4671_v16 = vpack.c.bf16 %v3383_v52, %v3382_v46  ;;  %vm5661_vm8 = vcmp.gt.s32.totalorder %v1269_v58, 0  ;;  %4708 = vmatprep.subr.bf16.mxu1 %v6903_v23  ;;  %2640 = vrot.lane.b32.xlu0 %v5462_v18, %s4822_s26  ;;  %v3385_v34 = vld [vmem:[%s6854_s5 + $0xa8] sm:$0xff]  ;;  %v3388_v52 = vld [vmem:[%s6854_s5 + $0xc0] sm:$0xff] }
 0x176   : > { %2510 = vst.msk [vmem:[#allocation3 + $0xf8] sm:$0xff] %vm1079_vm2, %v5596_v3  ;;  %6904 = vst [vmem:[#allocation12_spill] sm:$0xff] %v5643_v1  ;;  %v1001_v56 = vadd.f32 %v5356_v22, %v643_v5  ;;  %v5657_v1 = vld [vmem:[#allocation2 + $0x81] sm:$0xff]  ;;  %v3181_v55 = vld [vmem:[#allocation2 + $0x79] sm:$0xff]  ;;  %vm5706_vm9 = vcmp.lt.s32.totalorder %v1276_v63, 15 }
 0x177   : > { %1806 = vst.msk [vmem:[#allocation3 + $0x138] sm:$0xff] %vm1079_vm2, %v5617_v28  ;;  %3243 = vst.msk [vmem:[#allocation3 + $0xb8] sm:$0xff] %vm1079_vm2, %v3211_v32  ;;  %v3213_v30 = vmul.f32 %v5453_v10, %v3181_v55  ;;  %v5672_v25 = vld [vmem:[#allocation2 + $0x87] sm:$0xff]  ;;  %v2766_v45 = vld [vmem:[#allocation2 + $0x7f] sm:$0xff]  ;;  %v5679_v58 = vmul.f32 %v5602_v24, %v3181_v55  ;;  %4672 = vmatpush1.bf16.msra.mxu0 %v4671_v16  ;;  %v1283_v32 = vand.u32 15, %v5632_v47  ;;  %4724 = vmatpush1.bf16.msra.mxu1 %v4671_v16 }
 0x178   : > { %1105 = vst.msk [vmem:[#allocation2 + $0xa8] sm:$0xff] %vm1079_vm2, %v1006_v54  ;;  %1805 = vst.msk [vmem:[#allocation3 + $0x120] sm:$0xff] %vm1079_vm2, %v1773_v38  ;;  %v5676_v38 = vmul.f32 %v5491_v29, %v3181_v55  ;;  %v5686_v10 = vmul.f32 %v5460_v51, %v2766_v45  ;;  %4673 = vmatprep.subr.bf16.mxu0 %v6903_v23  ;;  %v5693_v46 = vmul.f32 %v5527_v0, %v2766_v45  ;;  %v2480_v47 = vld [vmem:[#allocation2 + $0x80] sm:$0xff]  ;;  %v3387_v63 = vld [vmem:[%s6854_s5 + $0xb8] sm:$0xff] }
 0x179   : > { %2513 = vst.msk [vmem:[#allocation3 + $0x140] sm:$0xff] %vm1079_vm2, %v2481_v44  ;;  %3246 = vst.msk [vmem:[#allocation3 + $0x100] sm:$0xff] %vm1079_vm2, %v5657_v1  ;;  %v3384_v44 = vld [vmem:[%s6854_s5 + $0xa0] sm:$0xff]  ;;  %v5698_v55 = vsel %vm5650_vm7, 1.0, %v6901_v42  ;;  %v1775_v51 = vmul.f32 %v5608_v60, %v2766_v45  ;;  %v2569_v54 = vmul.f32 %v5290_v59, %v5466_v13  ;;  %1899 = vrot.lane.b32.xlu1 %v5317_v8, %s4822_s26  ;;  %v5718_v59 = vsel %vm5661_vm8, 1.0, %v6901_v42  ;;  %v3386_v13 = vld [vmem:[%s6854_s5 + $0xb0] sm:$0xff] }
 0x17a   : > { %1104 = vst.msk [vmem:[#allocation2 + $0xa0] sm:$0xff] %vm1079_vm2, %v1001_v56  ;;  %1808 = vst.msk [vmem:[#allocation3 + $0x168] sm:$0xff] %vm1079_vm2, %v5672_v25  ;;  %v4674_v5 = vpack.c.bf16 %v3385_v34, %v3384_v44  ;;  %v2483_v56 = vld [vmem:[#allocation2 + $0x98] sm:$0xff]  ;;  %4709 = vmatprep.subr.bf16.mxu1 %v6903_v23  ;;  %vm5739_vm10 = vcmp.gt.s32.totalorder %v1283_v32, 0  ;;  %v4677_v44 = vpack.c.bf16 %v3387_v63, %v3386_v13  ;;  %v5747_v34 = vsel %vm5706_vm9, 1.0, %v6901_v42  ;;  %v4502_v63 = vpop.f32.mrb[18].mxu0 }
 0x17b   : > { %3245 = vst.msk [vmem:[#allocation3 + $0xe8] sm:$0xff] %vm1079_vm2, %v3213_v30  ;;  %2512 = vst.msk [vmem:[#allocation3 + $0x128] sm:$0xff] %vm1079_vm2, %v2480_v47  ;;  %2638 = vrot.lane.b32.xlu0 %v2569_v54, %s4822_s26  ;;  %v3389_v30 = vld [vmem:[%s6854_s5 + $0xc8] sm:$0xff] }
 0x17c   : > { %v5713_v61 = vld [vmem:[#allocation2 + $0x91] sm:$0xff]  ;;  %v3183_v45 = vld [vmem:[#allocation2 + $0x89] sm:$0xff]  ;;  %6911 = vst [vmem:[#allocation13_spill] sm:$0xff] %v5718_v59  ;;  %1807 = vst.msk [vmem:[#allocation3 + $0x150] sm:$0xff] %vm1079_vm2, %v1775_v51  ;;  %4675 = vmatpush1.bf16.msra.mxu0 %v4674_v5  ;;  %4725 = vmatpush1.bf16.msra.mxu1 %v4674_v5 }
 0x17d   : > { %2515 = vst.msk [vmem:[#allocation3 + $0x170] sm:$0xff] %vm1079_vm2, %v2483_v56  ;;  %3248 = vst.msk [vmem:[#allocation3 + $0x130] sm:$0xff] %vm1079_vm2, %v5713_v61  ;;  %v3215_v8 = vmul.f32 %v5491_v29, %v3183_v45  ;;  %v5734_v16 = vmul.f32 %v5602_v24, %v3183_v45  ;;  %v5737_v22 = vmul.f32 %v5698_v55, %v3183_v45  ;;  %v2987_v29 = vld [vmem:[#allocation2 + $0x68] sm:$0xff]  ;;  %4676 = vmatprep.subr.bf16.mxu0 %v6903_v23  ;;  %v2482_v47 = vld [vmem:[#allocation2 + $0x90] sm:$0xff]  ;;  %v4552_v45 = vpop.f32.mrb[18].mxu1 }
 0x17e   : > { %2514 = vst.msk [vmem:[#allocation3 + $0x158] sm:$0xff] %vm1079_vm2, %v2482_v47  ;;  %v1746_v51 = vld [vmem:[#allocation2 + $0x97] sm:$0xff]  ;;  %v1745_v32 = vld [vmem:[#allocation2 + $0x8f] sm:$0xff]  ;;  %3044 = vrot.lane.b32.xlu1 %v5330_v15, %s4824_s10  ;;  %4710 = vmatprep.subr.bf16.mxu1 %v6903_v23  ;;  %v1010_v47 = vpop.f32.mrb[19].mxu1 }
 0x17f   : > { %6912 = vst [vmem:[#allocation14_spill] sm:$0xff] %v5737_v22  ;;  %3247 = vst.msk [vmem:[#allocation3 + $0x118] sm:$0xff] %vm1079_vm2, %v3215_v8  ;;  %v5761_v8 = vsel %vm5739_vm10, 1.0, %v6901_v42  ;;  %v1777_v5 = vmul.f32 %v5718_v59, %v1745_v32  ;;  %3058 = vrot.lane.b32.xlu0 %v2987_v29, %s4824_s10  ;;  %v1016_v32 = vadd.f32 %v4552_v45, %v4502_v63  ;;  %v3390_v45 = vld [vmem:[%s6854_s5 + $0xd0] sm:$0xff] }
 0x180   : > { %1810 = vst.msk [vmem:[#allocation3 + $0x198] sm:$0xff] %vm1079_vm2, %v1746_v51  ;;  %4678 = vmatpush1.bf16.msra.mxu0 %v4677_v44  ;;  %v4680_v59 = vpack.c.bf16 %v3389_v30, %v3388_v52  ;;  %4726 = vmatpush1.bf16.msra.mxu1 %v4677_v44  ;;  %v3391_v52 = vld [vmem:[%s6854_s5 + $0xd8] sm:$0xff]  ;;  %v3394_v63 = vld [vmem:[%s6854_s5 + $0xf0] sm:$0xff] }
 0x181   : > { %v5753_v54 = vld [vmem:[#allocation2 + $0xa1] sm:$0xff]  ;;  %v3185_v56 = vld [vmem:[#allocation2 + $0x99] sm:$0xff]  ;;  %4679 = vmatprep.subr.bf16.mxu0 %v6903_v23  ;;  %1809 = vst.msk [vmem:[#allocation3 + $0x180] sm:$0xff] %vm1079_vm2, %v1777_v5  ;;  %1107 = vst.msk [vmem:[#allocation2 + $0xb8] sm:$0xff] %vm1079_vm2, %v1016_v32  ;;  %4711 = vmatprep.subr.bf16.mxu1 %v6903_v23  ;;  %v4683_v44 = vpack.c.bf16 %v3391_v52, %v3390_v45  ;;  %v1141_v5 = vadd.s32 160, %v5138_v31 }
 0x182   : > { %6915 = vst [vmem:[#allocation15_spill] sm:$0xff] %v5753_v54  ;;  %3250 = vst.msk [vmem:[#allocation3 + $0x160] sm:$0xff] %vm1079_vm2, %v5753_v54  ;;  %v3217_v13 = vmul.f32 %v5602_v24, %v3185_v56  ;;  %v5774_v60 = vmul.f32 %v5698_v55, %v3185_v56  ;;  %v5777_v51 = vmul.f32 %v5747_v34, %v3185_v56  ;;  %v1747_v24 = vld [vmem:[#allocation2 + $0x9f] sm:$0xff]  ;;  %v653_v54 = vpop.f32.mrb[19].mxu0  ;;  %2854 = vrot.lane.b32.xlu1 %v5349_v19, %s4823_s29 }
 0x183   : > { %v1779_v22 = vmul.f32 %v5761_v8, %v1747_v24  ;;  %v1011_v56 = vadd.f32 %v1010_v47, %v653_v54  ;;  %1911 = vrot.lane.b32.xlu0 %v2987_v29, %s4822_s26  ;;  %v3392_v54 = vld [vmem:[%s6854_s5 + $0xe0] sm:$0xff]  ;;  %v3393_v29 = vld [vmem:[%s6854_s5 + $0xe8] sm:$0xff]  ;;  %v3395_v47 = vld [vmem:[%s6854_s5 + $0xf8] sm:$0xff] }
 0x184   : > { %3249 = vst.msk [vmem:[#allocation3 + $0x148] sm:$0xff] %vm1079_vm2, %v3217_v13  ;;  %4681 = vmatpush1.bf16.msra.mxu0 %v4680_v59  ;;  %4727 = vmatpush1.bf16.msra.mxu1 %v4680_v59  ;;  %v1140_v59 = vadd.s32 152, %v5138_v31  ;;  %v1297_v13 = vand.u32 15, %v1141_v5  ;;  %v4689_v24 = vpack.c.bf16 %v3395_v47, %v3394_v63  ;;  %v2571_v47 = vmul.f32 %v5365_v27, %v5533_v7 }
 0x185   : > { %1811 = vst.msk [vmem:[#allocation3 + $0x1b0] sm:$0xff] %vm1079_vm2, %v1779_v22  ;;  %1106 = vst.msk [vmem:[#allocation2 + $0xb0] sm:$0xff] %vm1079_vm2, %v1011_v56  ;;  %4682 = vmatprep.subr.bf16.mxu0 %v6903_v23  ;;  %4712 = vmatprep.subr.bf16.mxu1 %v6903_v23  ;;  %v4686_v22 = vpack.c.bf16 %v3393_v29, %v3392_v54  ;;  %v1748_v29 = vld [vmem:[#allocation2 + $0xa7] sm:$0xff] }
 0x186   : > { %2345 = vrot.lane.b32.xlu1 %v5349_v19, %s4824_s10  ;;  %v1290_v19 = vand.u32 15, %v1140_v59  ;;  %vm1557_vm12 = vcmp.gt.s32.totalorder %v1297_v13, 0  ;;  %1812 = vst.msk [vmem:[#allocation3 + $0x1c8] sm:$0xff] %vm1079_vm2, %v1748_v29 }
 0x187   : > { %3056 = vrot.lane.b32.xlu0 %v5535_v48, %s4824_s10  ;;  %v5835_v52 = vsel %vm1557_vm12, 1.0, %v6901_v42 }
 0x188   : > { %4684 = vmatpush1.bf16.msra.mxu0 %v4683_v44  ;;  %4728 = vmatpush1.bf16.msra.mxu1 %v4683_v44  ;;  %vm1652_vm11 = vcmp.lt.s32.totalorder %v1290_v19, 15  ;;  %v2484_v44 = vld [vmem:[#allocation2 + $0xa0] sm:$0xff]  ;;  %v4505_v19 = vpop.f32.mrb[20].mxu0 }
 0x189   : > { %4685 = vmatprep.subr.bf16.mxu0 %v6903_v23  ;;  %4713 = vmatprep.subr.bf16.mxu1 %v6903_v23  ;;  %v5832_v45 = vsel %vm1652_vm11, 1.0, %v6901_v42  ;;  %2516 = vst.msk [vmem:[#allocation3 + $0x188] sm:$0xff] %vm1079_vm2, %v2484_v44 }
 0x18a   : > { %1897 = vrot.lane.b32.xlu1 %v5330_v15, %s4822_s26 }
 0x18b   : > { %2866 = vrot.lane.b32.xlu0 %v5558_v26, %s4823_s29 }
 0x18c   : > { %v5822_v30 = vld [vmem:[#allocation2 + $0xb1] sm:$0xff]  ;;  %v3187_v32 = vld [vmem:[#allocation2 + $0xa9] sm:$0xff]  ;;  %4687 = vmatpush1.bf16.msra.mxu0 %v4686_v22  ;;  %4729 = vmatpush1.bf16.msra.mxu1 %v4686_v22  ;;  %v2788_v22 = vmul.f32 %v5148_v37, %v5351_v20  ;;  %v2053_v37 = vmul.f32 %v5250_v39, %v5328_v14  ;;  %v1142_v39 = vadd.s32 168, %v5138_v31  ;;  %v1143_v14 = vadd.s32 176, %v5138_v31 }
 0x18d   : > { %3252 = vst.msk [vmem:[#allocation3 + $0x190] sm:$0xff] %vm1079_vm2, %v5822_v30  ;;  %v3219_v15 = vmul.f32 %v5698_v55, %v3187_v32  ;;  %4688 = vmatprep.subr.bf16.mxu0 %v6903_v23  ;;  %v5829_v56 = vmul.f32 %v5747_v34, %v3187_v32  ;;  %v5838_v54 = vmul.f32 %v5832_v45, %v3187_v32  ;;  %v2485_v55 = vld [vmem:[#allocation2 + $0xa8] sm:$0xff]  ;;  %v663_v32 = vpop.f32.mrb[21].mxu0  ;;  %v2486_v44 = vld [vmem:[#allocation2 + $0xb0] sm:$0xff] }
 0x18e   : > { %v1749_v59 = vld [vmem:[#allocation2 + $0xaf] sm:$0xff]  ;;  %2122 = vrot.lane.b32.xlu1 %v5324_v12, %s4823_s29  ;;  %4714 = vmatprep.subr.bf16.mxu1 %v6903_v23  ;;  %2517 = vst.msk [vmem:[#allocation3 + $0x1a0] sm:$0xff] %vm1079_vm2, %v2485_v55  ;;  %v2277_v12 = vmul.f32 %v5240_v33, %v5351_v20  ;;  %v4555_v23 = vpop.f32.mrb[20].mxu1  ;;  %v2989_v20 = vld [vmem:[#allocation2 + $0x78] sm:$0xff]  ;;  %v1304_v27 = vand.u32 15, %v1142_v39  ;;  %2518 = vst.msk [vmem:[#allocation3 + $0x1b8] sm:$0xff] %vm1079_vm2, %v2486_v44 }
 0x18f   : > { %3251 = vst.msk [vmem:[#allocation3 + $0x178] sm:$0xff] %vm1079_vm2, %v3219_v15  ;;  %v1781_v5 = vmul.f32 %v5835_v52, %v1749_v59  ;;  %2644 = vrot.lane.b32.xlu0 %v5530_v2, %s4822_s26  ;;  %v1020_v13 = vpop.f32.mrb[21].mxu1  ;;  %v1026_v63 = vadd.f32 %v4555_v23, %v4505_v19  ;;  %v1750_v55 = vld [vmem:[#allocation2 + $0xb7] sm:$0xff] }
 0x190   : > { %4690 = vmatpush1.bf16.msra.mxu0 %v4689_v24  ;;  %4730 = vmatpush1.bf16.msra.mxu1 %v4689_v24  ;;  %v1021_v33 = vadd.f32 %v1020_v13, %v663_v32  ;;  %vm1654_vm13 = vcmp.lt.s32.totalorder %v1304_v27, 15  ;;  %v2487_v59 = vld [vmem:[#allocation2 + $0xb8] sm:$0xff]  ;;  %1814 = vst.msk [vmem:[#allocation3 + $0x1f8] sm:$0xff] %vm1079_vm2, %v1750_v55 }
 0x191   : > { %1813 = vst.msk [vmem:[#allocation3 + $0x1e0] sm:$0xff] %vm1079_vm2, %v1781_v5  ;;  %1109 = vst.msk [vmem:[#allocation2 + $0xc8] sm:$0xff] %vm1079_vm2, %v1026_v63  ;;  %v5882_v24 = vsel %vm1654_vm13, 1.0, %v6901_v42 }
 0x192   : > { %2852 = vrot.lane.b32.xlu1 %v2788_v22, %s4823_s29  ;;  %1108 = vst.msk [vmem:[#allocation2 + $0xc0] sm:$0xff] %vm1079_vm2, %v1021_v33  ;;  %2519 = vst.msk [vmem:[#allocation3 + $0x1d0] sm:$0xff] %vm1079_vm2, %v2487_v59 }
 0x193   : > { %1909 = vrot.lane.b32.xlu0 %v5535_v48, %s4822_s26 }
 0x196   : > { %2343 = vrot.lane.b32.xlu1 %v2277_v12, %s4824_s10  ;;  %v4558_v12 = vpop.f32.mrb[22].mxu1 }
 0x197   : > { %2134 = vrot.lane.b32.xlu0 %v5530_v2, %s4823_s29  ;;  %v1311_v2 = vand.u32 15, %v1143_v14  ;;  %v1030_v13 = vpop.f32.mrb[23].mxu1 }
 0x198   : > { %v4561_v44 = vpop.f32.mrb[24].mxu1 }
 0x199   : > { %v5877_v7 = vld [vmem:[#allocation2 + $0xc1] sm:$0xff]  ;;  %vm1559_vm14 = vcmp.gt.s32.totalorder %v1311_v2, 0  ;;  %v3189_v48 = vld [vmem:[#allocation2 + $0xb9] sm:$0xff]  ;;  %v1040_v55 = vpop.f32.mrb[25].mxu1 }
 0x19a   : > { %2120 = vrot.lane.b32.xlu1 %v2053_v37, %s4823_s29  ;;  %3254 = vst.msk [vmem:[#allocation3 + $0x1c0] sm:$0xff] %vm1079_vm2, %v5877_v7  ;;  %v5885_v15 = vsel %vm1559_vm14, 1.0, %v6901_v42  ;;  %v3221_v29 = vmul.f32 %v5747_v34, %v3189_v48  ;;  %v1751_v5 = vld [vmem:[#allocation2 + $0xbf] sm:$0xff]  ;;  %v5895_v22 = vmul.f32 %v5882_v24, %v3189_v48  ;;  %v1144_v37 = vadd.s32 184, %v5138_v31  ;;  %v1752_v14 = vld [vmem:[#allocation2 + $0xc7] sm:$0xff] }
 0x19b   : > { %2642 = vrot.lane.b32.xlu0 %v2571_v47, %s4822_s26  ;;  %v1783_v34 = vmul.f32 %v5885_v15, %v1751_v5  ;;  %v2488_v39 = vld [vmem:[#allocation2 + $0xc0] sm:$0xff]  ;;  %1816 = vst.msk [vmem:[#allocation3 + $0x228] sm:$0xff] %vm1079_vm2, %v1752_v14 }
 0x19c   : > { %3253 = vst.msk [vmem:[#allocation3 + $0x1a8] sm:$0xff] %vm1079_vm2, %v3221_v29  ;;  %v1318_v63 = vand.u32 15, %v1144_v37  ;;  %2520 = vst.msk [vmem:[#allocation3 + $0x1e8] sm:$0xff] %vm1079_vm2, %v2488_v39 }
 0x19d   : > { %1815 = vst.msk [vmem:[#allocation3 + $0x210] sm:$0xff] %vm1079_vm2, %v1783_v34  ;;  %v1146_v34 = vadd.s32 200, %v5138_v31 }
 0x19e   : > { %1903 = vrot.lane.b32.xlu1 %v5382_v36, %s4822_s26  ;;  %vm1656_vm15 = vcmp.lt.s32.totalorder %v1318_v63, 15 }
 0x19f   : > { %3062 = vrot.lane.b32.xlu0 %v2989_v20, %s4824_s10  ;;  %v5931_v32 = vsel %vm1656_vm15, 1.0, %v6901_v42 }
 0x1a2   : > { %3050 = vrot.lane.b32.xlu1 %v5382_v36, %s4824_s10  ;;  %v5889_v36 = vmul.f32 %v5832_v45, %v3189_v48 }
 0x1a3   : > { %1915 = vrot.lane.b32.xlu0 %v2989_v20, %s4822_s26 }
 0x1a6   : > { %2126 = vrot.lane.b32.xlu1 %v5388_v41, %s4823_s29  ;;  %v4508_v41 = vpop.f32.mrb[22].mxu0 }
 0x1a7   : > { %3060 = vrot.lane.b32.xlu0 %v5596_v3, %s4824_s10  ;;  %v673_v23 = vpop.f32.mrb[23].mxu0  ;;  %v1036_v19 = vadd.f32 %v4558_v12, %v4508_v41  ;;  %v1147_v41 = vadd.s32 208, %v5138_v31 }
 0x1a9   : > { %1111 = vst.msk [vmem:[#allocation2 + $0xd8] sm:$0xff] %vm1079_vm2, %v1036_v19  ;;  %v1332_v19 = vand.u32 15, %v1146_v34 }
 0x1aa   : > { %3048 = vrot.lane.b32.xlu1 %v5395_v43, %s4824_s10  ;;  %v1031_v43 = vadd.f32 %v1030_v13, %v673_v23  ;;  %v1339_v13 = vand.u32 15, %v1147_v41  ;;  %v3397_v41 = vld [vmem:[%s6854_s5 + $0x108] sm:$0xff] }
 0x1ab   : > { %2870 = vrot.lane.b32.xlu0 %v5617_v28, %s4823_s29  ;;  %vm1658_vm1 = vcmp.lt.s32.totalorder %v1332_v19, 15 }
 0x1ac   : > { %1110 = vst.msk [vmem:[#allocation2 + $0xd0] sm:$0xff] %vm1079_vm2, %v1031_v43  ;;  %vm1563_vm3 = vcmp.gt.s32.totalorder %v1339_v13, 0  ;;  %v5991_v63 = vsel %vm1658_vm1, 1.0, %v6901_v42  ;;  %v6916_v13 = vld [vmem:[#allocation7_spill] sm:$0xff] }
 0x1ae   : > { %2858 = vrot.lane.b32.xlu1 %v5414_v53, %s4823_s29 }
 0x1af   : > { %2648 = vrot.lane.b32.xlu0 %v5594_v49, %s4822_s26 }
 0x1b2   : > { %2349 = vrot.lane.b32.xlu1 %v5414_v53, %s4824_s10  ;;  %v1145_v53 = vadd.s32 192, %v5138_v31 }
 0x1b3   : > { %1913 = vrot.lane.b32.xlu0 %v5596_v3, %s4822_s26  ;;  %v5928_v3 = vld [vmem:[#allocation2 + $0xd1] sm:$0xff] }
 0x1b4   : > { %v1325_v47 = vand.u32 15, %v1145_v53  ;;  %3256 = vst.msk [vmem:[#allocation3 + $0x1f0] sm:$0xff] %vm1079_vm2, %v5928_v3  ;;  %v2490_v14 = vld [vmem:[#allocation2 + $0xd0] sm:$0xff] }
 0x1b5   : > { %2522 = vst.msk [vmem:[#allocation3 + $0x218] sm:$0xff] %vm1079_vm2, %v2490_v14 }
 0x1b6   : > { %2856 = vrot.lane.b32.xlu1 %v5436_v4, %s4823_s29  ;;  %vm1561_vm0 = vcmp.gt.s32.totalorder %v1325_v47, 0  ;;  %v3191_v4 = vld [vmem:[#allocation2 + $0xc9] sm:$0xff]  ;;  %v5994_v47 = vsel %vm1563_vm3, 1.0, %v6901_v42 }
 0x1b7   : > { %2138 = vrot.lane.b32.xlu0 %v5594_v49, %s4823_s29  ;;  %v5934_v49 = vsel %vm1561_vm0, 1.0, %v6901_v42  ;;  %v3223_v33 = vmul.f32 %v5832_v45, %v3191_v4  ;;  %v5940_v20 = vmul.f32 %v5882_v24, %v3191_v4  ;;  %v2489_v45 = vld [vmem:[#allocation2 + $0xc8] sm:$0xff] }
 0x1b8   : > { %2521 = vst.msk [vmem:[#allocation3 + $0x200] sm:$0xff] %vm1079_vm2, %v2489_v45  ;;  %v1754_v45 = vld [vmem:[#allocation2 + $0xd7] sm:$0xff] }
 0x1b9   : > { %3255 = vst.msk [vmem:[#allocation3 + $0x1d8] sm:$0xff] %vm1079_vm2, %v3223_v33  ;;  %1818 = vst.msk [vmem:[#allocation3 + $0x258] sm:$0xff] %vm1079_vm2, %v1754_v45 }
 0x1ba   : > { %2347 = vrot.lane.b32.xlu1 %v5439_v6, %s4824_s10  ;;  %v2776_v6 = vld [vmem:[#allocation2 + $0xcf] sm:$0xff] }
 0x1bb   : > { %2868 = vrot.lane.b32.xlu0 %v5635_v40, %s4823_s29  ;;  %v5943_v40 = vmul.f32 %v5931_v32, %v3191_v4  ;;  %v5948_v27 = vmul.f32 %v5835_v52, %v2776_v6  ;;  %v5951_v2 = vmul.f32 %v5885_v15, %v2776_v6  ;;  %v1785_v48 = vmul.f32 %v5934_v49, %v2776_v6 }
 0x1bd   : > { %1817 = vst.msk [vmem:[#allocation3 + $0x240] sm:$0xff] %vm1079_vm2, %v1785_v48 }
 0x1be   : > { %2124 = vrot.lane.b32.xlu1 %v5423_v62, %s4823_s29  ;;  %v2991_v62 = vld [vmem:[#allocation2 + $0x88] sm:$0xff] }
 0x1bf   : > { %2646 = vrot.lane.b32.xlu0 %v5621_v9, %s4822_s26  ;;  %v4511_v9 = vpop.f32.mrb[24].mxu0 }
 0x1c0   : > { %v1046_v29 = vadd.f32 %v4561_v44, %v4511_v9  ;;  %v683_v59 = vpop.f32.mrb[25].mxu0 }
 0x1c1   : > { %v1041_v5 = vadd.f32 %v1040_v55, %v683_v59  ;;  %v4564_v55 = vpop.f32.mrb[26].mxu1  ;;  %v4514_v59 = vpop.f32.mrb[26].mxu0 }
 0x1c2   : > { %1907 = vrot.lane.b32.xlu1 %v5455_v11, %s4822_s26  ;;  %1113 = vst.msk [vmem:[#allocation2 + $0xe8] sm:$0xff] %vm1079_vm2, %v1046_v29  ;;  %v1056_v34 = vadd.f32 %v4564_v55, %v4514_v59 }
 0x1c3   : > { %2136 = vrot.lane.b32.xlu0 %v5624_v17, %s4823_s29  ;;  %v5972_v17 = vpop.permute.xlu0 %3104  ;;  %1112 = vst.msk [vmem:[#allocation2 + $0xe0] sm:$0xff] %vm1079_vm2, %v1041_v5 }
 0x1c4   : > { %1115 = vst.msk [vmem:[#allocation2 + $0xf8] sm:$0xff] %vm1079_vm2, %v1056_v34 }
 0x1c6   : > { %3054 = vrot.lane.b32.xlu1 %v5455_v11, %s4824_s10  ;;  %v2990_v11 = vld [vmem:[#allocation2 + $0x80] sm:$0xff] }
 0x1c7   : > { %3066 = vrot.lane.b32.xlu0 %v2991_v62, %s4824_s10 }
 0x1ca   : > { %2353 = vrot.lane.b32.xlu1 %v5469_v21, %s4824_s10  ;;  %v5984_v43 = vld [vmem:[#allocation2 + $0xe1] sm:$0xff]  ;;  %v3193_v53 = vld [vmem:[#allocation2 + $0xd9] sm:$0xff] }
 0x1cb   : > { %1919 = vrot.lane.b32.xlu0 %v2991_v62, %s4822_s26  ;;  %3258 = vst.msk [vmem:[#allocation3 + $0x220] sm:$0xff] %vm1079_vm2, %v5984_v43  ;;  %v2778_v33 = vld [vmem:[#allocation2 + $0xdf] sm:$0xff]  ;;  %v5998_v6 = vmul.f32 %v5931_v32, %v3193_v53  ;;  %v6001_v39 = vmul.f32 %v5991_v63, %v3193_v53 }
 0x1cc   : > { %v6007_v48 = vmul.f32 %v5885_v15, %v2778_v33  ;;  %v6010_v62 = vmul.f32 %v5934_v49, %v2778_v33  ;;  %v1787_v44 = vmul.f32 %v5994_v47, %v2778_v33 }
 0x1ce   : > { %1905 = vrot.lane.b32.xlu1 %v5493_v57, %s4822_s26  ;;  %v1896_v12 = vpop.permute.xlu1 %1895  ;;  %1819 = vst.msk [vmem:[#allocation3 + $0x270] sm:$0xff] %vm1079_vm2, %v1787_v44  ;;  %v6068_v44 = vld [vmem:[#allocation2 + $0xe7] sm:$0xff] }
 0x1cf   : > { %3064 = vrot.lane.b32.xlu0 %v2990_v11, %s4824_s10  ;;  %1989 = vst.msk [vmem:[#allocation3 + $0x48] sm:$0xff] %vm1985_vm4, %v1896_v12  ;;  %v2629_v23 = vpop.permute.xlu0 %2628 }
 0x1d0   : > { %2724 = vst.msk [vmem:[#allocation3 + $0x8] sm:$0xff] %vm1985_vm4, %v2629_v23 }
 0x1d1   : > { %1820 = vst.msk [vmem:[#allocation3 + $0x288] sm:$0xff] %vm1079_vm2, %v6068_v44 }
 0x1d2   : > { %2130 = vrot.lane.b32.xlu1 %v5462_v18, %s4823_s29  ;;  %v2342_v37 = vpop.permute.xlu1 %2341  ;;  %v3225_v18 = vmul.f32 %v5882_v24, %v3193_v53  ;;  %v2491_v24 = vld [vmem:[#allocation2 + $0xd8] sm:$0xff]  ;;  %v1149_v53 = vadd.s32 224, %v5138_v31 }
 0x1d3   : > { %2874 = vrot.lane.b32.xlu0 %v5672_v25, %s4823_s29  ;;  %v2633_v4 = vpop.permute.xlu0 %2632  ;;  %2523 = vst.msk [vmem:[#allocation3 + $0x230] sm:$0xff] %vm1079_vm2, %v2491_v24  ;;  %v6066_v24 = vld [vmem:[#allocation2 + $0xe0] sm:$0xff] }
 0x1d4   : > { %2726 = vst.msk [vmem:[#allocation3 + $0x38] sm:$0xff] %vm1985_vm4, %v2633_v4  ;;  %v1353_v14 = vand.u32 15, %v1149_v53 }
 0x1d5   : > { %3257 = vst.msk [vmem:[#allocation3 + $0x208] sm:$0xff] %vm1079_vm2, %v3225_v18  ;;  %2524 = vst.msk [vmem:[#allocation3 + $0x248] sm:$0xff] %vm1079_vm2, %v6066_v24 }
 0x1d6   : > { %3052 = vrot.lane.b32.xlu1 %v5493_v57, %s4824_s10  ;;  %v1894_v57 = vpop.permute.xlu1 %1893  ;;  %vm1565_vm8 = vcmp.gt.s32.totalorder %v1353_v14, 0 }
 0x1d7   : > { %2652 = vrot.lane.b32.xlu0 %v5657_v1, %s4822_s26  ;;  %1988 = vst.msk [vmem:[#allocation3 + $0x30] sm:$0xff] %vm1985_vm4, %v1894_v57  ;;  %v2631_v15 = vpop.permute.xlu0 %2630 }
 0x1d8   : > { %2725 = vst.msk [vmem:[#allocation3 + $0x20] sm:$0xff] %vm1985_vm4, %v2631_v15  ;;  %v6074_v15 = vsel %vm1565_vm8, 1.0, %v6901_v42 }
 0x1da   : > { %2862 = vrot.lane.b32.xlu1 %v5469_v21, %s4823_s29  ;;  %v2119_v9 = vpop.permute.xlu1 %2118  ;;  %v1050_v21 = vpop.f32.mrb[27].mxu1 }
 0x1db   : > { %1917 = vrot.lane.b32.xlu0 %v2990_v11, %s4822_s26  ;;  %2213 = vst.msk [vmem:[#allocation3 + $0x30] sm:$0xff] %vm2210_vm5, %v2119_v9  ;;  %v1902_v29 = vpop.permute.xlu0 %1901  ;;  %v4567_v53 = vpop.f32.mrb[28].mxu1 }
 0x1dc   : > { %1992 = vst.msk [vmem:[#allocation3 + $0x90] sm:$0xff] %vm1985_vm4, %v1902_v29  ;;  %v6917_v29 = vld [vmem:[#allocation9_spill] sm:$0xff] }
 0x1de   : > { %2351 = vrot.lane.b32.xlu1 %v5511_v50, %s4824_s10  ;;  %v2340_v5 = vpop.permute.xlu1 %2339  ;;  %v693_v50 = vpop.f32.mrb[27].mxu0 }
 0x1df   : > { %2142 = vrot.lane.b32.xlu0 %v5657_v1, %s4823_s29  ;;  %2436 = vst.msk [vmem:[#allocation3] sm:$0xff] %vm2435_vm6, %v2340_v5  ;;  %v2637_v11 = vpop.permute.xlu0 %2636  ;;  %v3396_v1 = vld [vmem:[%s6854_s5 + $0x100] sm:$0xff]  ;;  %v1051_v12 = vadd.f32 %v1050_v21, %v693_v50  ;;  %v2493_v21 = vld [vmem:[#allocation2 + $0xe8] sm:$0xff] }
 0x1e0   : > { %2728 = vst.msk [vmem:[#allocation3 + $0x68] sm:$0xff] %vm1985_vm4, %v2637_v11  ;;  %v6044_v23 = vpack.c.bf16 %v3397_v41, %v3396_v1  ;;  %v6918_v1 = vld [vmem:[#allocation10_spill] sm:$0xff]  ;;  %v6109_v41 = vld [vmem:[#allocation2 + $0x90] sm:$0xff] }
 0x1e1   : > { %1114 = vst.msk [vmem:[#allocation2 + $0xf0] sm:$0xff] %vm1079_vm2, %v1051_v12  ;;  %2525 = vst.msk [vmem:[#allocation3 + $0x260] sm:$0xff] %vm1079_vm2, %v2493_v21  ;;  %v1150_v21 = vadd.s32 232, %v5138_v31 }
 0x1e2   : > { %2128 = vrot.lane.b32.xlu1 %v5497_v35, %s4823_s29  ;;  %v2117_v19 = vpop.permute.xlu1 %2116  ;;  %4692 = vmatprep.subr.bf16.mxu0 %v6044_v23 }
 0x1e3   : > { %2872 = vrot.lane.b32.xlu0 %v5686_v10, %s4823_s29  ;;  %2212 = vst.msk [vmem:[#allocation3 + $0x18] sm:$0xff] %vm2210_vm5, %v2117_v19  ;;  %v2635_v35 = vpop.permute.xlu0 %2634  ;;  %v1148_v10 = vadd.s32 216, %v5138_v31 }
 0x1e4   : > { %2437 = vst.msk [vmem:[#allocation3 + $0x18] sm:$0xff] %vm2435_vm6, %v2342_v37  ;;  %v6062_v37 = vld [vmem:[#allocation2 + $0x98] sm:$0xff] }
 0x1e5   : > { %2727 = vst.msk [vmem:[#allocation3 + $0x50] sm:$0xff] %vm1985_vm4, %v2635_v35  ;;  %v1346_v33 = vand.u32 15, %v1148_v10  ;;  %v6919_v35 = vld [vmem:[#allocation8_spill] sm:$0xff] }
 0x1e6   : > { %2860 = vrot.lane.b32.xlu1 %v6916_v13, %s4823_s29  ;;  %v3047_v4 = vpop.permute.xlu1 %3046  ;;  %v6118_v13 = vld [vmem:[#allocation2 + $0x97] sm:$0xff] }
 0x1e7   : > { %2650 = vrot.lane.b32.xlu0 %v5676_v38, %s4822_s26  ;;  %v2641_v18 = vpop.permute.xlu0 %2640  ;;  %vm1660_vm7 = vcmp.lt.s32.totalorder %v1346_v33, 15  ;;  %v4517_v33 = vpop.f32.mrb[28].mxu0 }
 0x1e8   : > { %2730 = vst.msk [vmem:[#allocation3 + $0x98] sm:$0xff] %vm1985_vm4, %v2641_v18  ;;  %v6064_v45 = vld [vmem:[#allocation2 + $0xf1] sm:$0xff]  ;;  %v6071_v57 = vsel %vm1660_vm7, 1.0, %v6901_v42  ;;  %v1066_v14 = vadd.f32 %v4567_v53, %v4517_v33 }
 0x1e9   : > { %3260 = vst.msk [vmem:[#allocation3 + $0x250] sm:$0xff] %vm1079_vm2, %v6064_v45  ;;  %v2780_v9 = vld [vmem:[#allocation2 + $0xef] sm:$0xff] }
 0x1ea   : > { %2357 = vrot.lane.b32.xlu1 %v5558_v26, %s4824_s10  ;;  %v6088_v59 = vmul.f32 %v5934_v49, %v2780_v9  ;;  %v6094_v34 = vmul.f32 %v5994_v47, %v2780_v9  ;;  %1117 = vst.msk [vmem:[#allocation2 + $0x108] sm:$0xff] %vm1079_vm2, %v1066_v14  ;;  %v6154_v14 = vld [vmem:[#allocation2 + $0xf0] sm:$0xff] }
 0x1eb   : > { %2140 = vrot.lane.b32.xlu0 %v5679_v58, %s4823_s29  ;;  %v1900_v38 = vpop.permute.xlu1 %1899  ;;  %v3195_v58 = vld [vmem:[#allocation2 + $0xe9] sm:$0xff]  ;;  %2526 = vst.msk [vmem:[#allocation3 + $0x278] sm:$0xff] %vm1079_vm2, %v6154_v14 }
 0x1ec   : > { %1991 = vst.msk [vmem:[#allocation3 + $0x78] sm:$0xff] %vm1985_vm4, %v1900_v38  ;;  %v3227_v55 = vmul.f32 %v5931_v32, %v3195_v58  ;;  %v6091_v5 = vmul.f32 %v5991_v63, %v3195_v58  ;;  %v6099_v11 = vmul.f32 %v6071_v57, %v3195_v58  ;;  %v1789_v32 = vmul.f32 %v6074_v15, %v2780_v9  ;;  %v1060_v38 = vpop.f32.mrb[29].mxu1 }
 0x1ed   : > { %v2639_v26 = vpop.permute.xlu0 %2638 }
 0x1ee   : > { %2729 = vst.msk [vmem:[#allocation3 + $0x80] sm:$0xff] %vm1985_vm4, %v2639_v26  ;;  %2864 = vrot.lane.b32.xlu1 %v6917_v29, %s4823_s29  ;;  %v703_v26 = vpop.f32.mrb[29].mxu0 }
 0x1ef   : > { %3070 = vrot.lane.b32.xlu0 %v6062_v37, %s4824_s10  ;;  %3259 = vst.msk [vmem:[#allocation3 + $0x238] sm:$0xff] %vm1079_vm2, %v3227_v55  ;;  %1821 = vst.msk [vmem:[#allocation3 + $0x2a0] sm:$0xff] %vm1079_vm2, %v1789_v32  ;;  %v1061_v58 = vadd.f32 %v1060_v38, %v703_v26  ;;  %v1151_v32 = vadd.s32 240, %v5138_v31  ;;  %v6156_v38 = vld [vmem:[#allocation2 + $0xf7] sm:$0xff] }
 0x1f0   : > { %v3045_v50 = vpop.permute.xlu1 %3044  ;;  %1822 = vst.msk [vmem:[#allocation3 + $0x2b8] sm:$0xff] %vm1079_vm2, %v6156_v38 }
 0x1f1   : > { %v6104_v49 = vpop.permute.xlu0 %3058  ;;  %1116 = vst.msk [vmem:[#allocation2 + $0x100] sm:$0xff] %vm1079_vm2, %v1061_v58 }
 0x1f2   : > { %2355 = vrot.lane.b32.xlu1 %v6918_v1, %s4824_s10 }
 0x1f3   : > { %3068 = vrot.lane.b32.xlu0 %v6109_v41, %s4824_s10 }
 0x1f4   : > { %v2855_v12 = vpop.permute.xlu1 %2854 }
 0x1f5   : > { %2949 = vst.msk [vmem:[#allocation3 + $0x20] sm:$0xff] %vm2210_vm5, %v2855_v12  ;;  %v1912_v19 = vpop.permute.xlu0 %1911 }
 0x1f6   : > { %3141 = vst.msk [vmem:[#allocation3 + $0x20] sm:$0xff] %vm2435_vm6, %v3047_v4  ;;  %2132 = vrot.lane.b32.xlu1 %v6919_v35, %s4823_s29  ;;  %v6128_v4 = vld [vmem:[#allocation2 + $0x8f] sm:$0xff]  ;;  %v1367_v35 = vand.u32 15, %v1151_v32 }
 0x1f7   : > { %1997 = vst.msk [vmem:[#allocation3 + $0x108] sm:$0xff] %vm1985_vm4, %v1912_v19  ;;  %2878 = vrot.lane.b32.xlu0 %v6118_v13, %s4823_s29  ;;  %v2800_v55 = vmul.f32 %v5527_v0, %v6128_v4  ;;  %v1360_v19 = vand.u32 15, %v1150_v21  ;;  %v6150_v0 = vld [vmem:[#allocation2 + $0xf8] sm:$0xff] }
 0x1f8   : > { %v6122_v10 = vpop.permute.xlu1 %2345  ;;  %vm1567_vm10 = vcmp.gt.s32.totalorder %v1367_v35, 0  ;;  %v6152_v33 = vld [vmem:[#allocation2 + $0x101] sm:$0xff]  ;;  %2527 = vst.msk [vmem:[#allocation3 + $0x290] sm:$0xff] %vm1079_vm2, %v6150_v0  ;;  %v3399_v35 = vld [vmem:[%s6854_s5 + $0x118] sm:$0xff] }
 0x1f9   : > { %v6124_v18 = vpop.permute.xlu0 %3056  ;;  %vm1662_vm9 = vcmp.lt.s32.totalorder %v1360_v19, 15  ;;  %v6162_v58 = vsel %vm1567_vm10, 1.0, %v6901_v42  ;;  %3262 = vst.msk [vmem:[#allocation3 + $0x280] sm:$0xff] %vm1079_vm2, %v6152_v33  ;;  %v6193_v19 = vld [vmem:[#allocation2 + $0xa8] sm:$0xff] }
 0x1fa   : > { %2361 = vrot.lane.b32.xlu1 %v5617_v28, %s4824_s10  ;;  %v6920_v28 = vld [vmem:[#allocation12_spill] sm:$0xff]  ;;  %v6159_v26 = vsel %vm1662_vm9, 1.0, %v6901_v42 }
 0x1fb   : > { %2656 = vrot.lane.b32.xlu0 %v5713_v61, %s4822_s26 }
 0x1fc   : > { %v1898_v9 = vpop.permute.xlu1 %1897 }
 0x1fd   : > { %1990 = vst.msk [vmem:[#allocation3 + $0x60] sm:$0xff] %vm1985_vm4, %v1898_v9  ;;  %v6134_v29 = vpop.permute.xlu0 %2866  ;;  %v2782_v9 = vld [vmem:[#allocation2 + $0xff] sm:$0xff] }
 0x1fe   : > { %2359 = vrot.lane.b32.xlu1 %v6920_v28, %s4824_s10  ;;  %v6179_v28 = vmul.f32 %v5994_v47, %v2782_v9  ;;  %v6185_v32 = vmul.f32 %v6074_v15, %v2782_v9  ;;  %v3398_v47 = vld [vmem:[%s6854_s5 + $0x110] sm:$0xff] }
 0x1ff   : > { %2876 = vrot.lane.b32.xlu0 %v2800_v55, %s4823_s29 }
 0x200   : > { %v2123_v1 = vpop.permute.xlu1 %2122 }
 0x201   : > { %2215 = vst.msk [vmem:[#allocation3 + $0x60] sm:$0xff] %vm2210_vm5, %v2123_v1  ;;  %v2645_v12 = vpop.permute.xlu0 %2644  ;;  %v6921_v1 = vld [vmem:[#allocation14_spill] sm:$0xff] }
 0x202   : > { %2732 = vst.msk [vmem:[#allocation3 + $0xc8] sm:$0xff] %vm1985_vm4, %v2645_v12  ;;  %2365 = vrot.lane.b32.xlu1 %v5672_v25, %s4824_s10  ;;  %v1791_v12 = vmul.f32 %v6162_v58, %v2782_v9  ;;  %v4695_v9 = vpack.c.bf16 %v3399_v35, %v3398_v47  ;;  %v3271_v35 = vld [vmem:[#allocation3 + $0x18] sm:$0xff] }
 0x203   : > { %2654 = vrot.lane.b32.xlu0 %v5734_v16, %s4822_s26  ;;  %v3197_v16 = vld [vmem:[#allocation2 + $0xf9] sm:$0xff] }
 0x204   : > { %v2853_v53 = vpop.permute.xlu1 %2852  ;;  %v3229_v55 = vmul.f32 %v5991_v63, %v3197_v16  ;;  %v6182_v21 = vmul.f32 %v6071_v57, %v3197_v16  ;;  %1823 = vst.msk [vmem:[#allocation3 + $0x2d0] sm:$0xff] %vm1079_vm2, %v1791_v12  ;;  %v4570_v12 = vpop.f32.mrb[30].mxu1 }
 0x205   : > { %2948 = vst.msk [vmem:[#allocation3 + $0x8] sm:$0xff] %vm2210_vm5, %v2853_v53  ;;  %v1910_v25 = vpop.permute.xlu0 %1909 }
 0x206   : > { %3140 = vst.msk [vmem:[#allocation3 + $0x8] sm:$0xff] %vm2435_vm6, %v3045_v50  ;;  %2363 = vrot.lane.b32.xlu1 %v5693_v46, %s4824_s10  ;;  %v6190_v50 = vmul.f32 %v6159_v26, %v3197_v16 }
 0x207   : > { %1996 = vst.msk [vmem:[#allocation3 + $0xf0] sm:$0xff] %vm1985_vm4, %v1910_v25  ;;  %2144 = vrot.lane.b32.xlu0 %v6921_v1, %s4823_s29  ;;  %v3272_v1 = vld [vmem:[#allocation3 + $0x20] sm:$0xff] }
 0x208   : > { %v2344_v46 = vpop.permute.xlu1 %2343  ;;  %3261 = vst.msk [vmem:[#allocation3 + $0x268] sm:$0xff] %vm1079_vm2, %v3229_v55  ;;  %v6215_v55 = vld [vmem:[#allocation2 + $0xa0] sm:$0xff] }
 0x209   : > { %2438 = vst.msk [vmem:[#allocation3 + $0x30] sm:$0xff] %vm2435_vm6, %v2344_v46  ;;  %v2135_v63 = vpop.permute.xlu0 %2134  ;;  %v4520_v46 = vpop.f32.mrb[30].mxu0 }
 0x20a   : > { %2221 = vst.msk [vmem:[#allocation3 + $0xf0] sm:$0xff] %vm2210_vm5, %v2135_v63  ;;  %1923 = vrot.lane.b32.xlu1 %v6062_v37, %s4822_s26  ;;  %v3268_v37 = vld [vmem:[#allocation3] sm:$0xff]  ;;  %v1070_v63 = vpop.f32.mrb[31].mxu1 }
 0x20b   : > { %3074 = vrot.lane.b32.xlu0 %v6193_v19, %s4824_s10 }
 0x20c   : > { %v2121_v53 = vpop.permute.xlu1 %2120 }
 0x20d   : > { %2214 = vst.msk [vmem:[#allocation3 + $0x48] sm:$0xff] %vm2210_vm5, %v2121_v53  ;;  %v2643_v25 = vpop.permute.xlu0 %2642  ;;  %v3269_v16 = vld [vmem:[#allocation3 + $0x8] sm:$0xff] }
 0x20e   : > { %2439 = vst.msk [vmem:[#allocation3 + $0x48] sm:$0xff] %vm2435_vm6, %v6122_v10  ;;  %3560 = vmatprep.mubr.f32.mxu0 %v3269_v16  ;;  %2369 = vrot.lane.b32.xlu1 %v6118_v13, %s4824_s10  ;;  %v1076_v13 = vadd.f32 %v4570_v12, %v4520_v46  ;;  %v2771_v53 = vld [vmem:[#allocation2 + $0xa7] sm:$0xff]  ;;  %v2770_v16 = vld [vmem:[#allocation2 + $0x9f] sm:$0xff] }
 0x20f   : > { %2731 = vst.msk [vmem:[#allocation3 + $0xb0] sm:$0xff] %vm1985_vm4, %v2643_v25  ;;  %3561 = vmatmul.mubr.f32.vlgmr.msra.gmra.mrb[32].mxu0 %v3268_v37  ;;  %3072 = vrot.lane.b32.xlu0 %v6215_v55, %s4824_s10  ;;  %v1152_v37 = vadd.s32 248, %v5138_v31  ;;  %v6923_v12 = vld [vmem:[#allocation11_spill] sm:$0xff] }
 0x210   : > { %2955 = vst.msk [vmem:[#allocation3 + $0xb0] sm:$0xff] %vm2210_vm5, %v6134_v29  ;;  %3565 = vmatprep.mubr.f32.mxu0 %v3272_v1  ;;  %v1904_v10 = vpop.permute.xlu1 %1903  ;;  %4694 = vmatpush3.bf16.msra.mxu0 %v6044_v23  ;;  %v713_v29 = vpop.f32.mrb[31].mxu0  ;;  %v2289_v46 = vmul.f32 %v6923_v12, %v6128_v4 }
 0x211   : > { %3147 = vst.msk [vmem:[#allocation3 + $0xb0] sm:$0xff] %vm2435_vm6, %v6104_v49  ;;  %v6225_v47 = vpop.permute.xlu0 %3062  ;;  %4696 = vmatprep.subr.bf16.mxu0 %v4695_v9  ;;  %v1071_v49 = vadd.f32 %v1070_v63, %v713_v29  ;;  %v1374_v63 = vand.u32 15, %v1152_v37  ;;  %v6247_v29 = vld [vmem:[#allocation2 + $0x108] sm:$0xff] }
 0x212   : > { %1993 = vst.msk [vmem:[#allocation3 + $0xa8] sm:$0xff] %vm1985_vm4, %v1904_v10  ;;  %1921 = vrot.lane.b32.xlu1 %v6109_v41, %s4822_s26  ;;  %v6922_v41 = vld [vmem:[#allocation15_spill] sm:$0xff]  ;;  %v2802_v10 = vmul.f32 %v6923_v12, %v2770_v16 }
 0x213   : > { %1119 = vst.msk [vmem:[#allocation2 + $0x118] sm:$0xff] %vm1079_vm2, %v1076_v13  ;;  %3566 = vmatmul.mubr.f32.gmra.mrb[34].mxu0 %v3271_v35  ;;  %2882 = vrot.lane.b32.xlu0 %v2771_v53, %s4823_s29  ;;  %1118 = vst.msk [vmem:[#allocation2 + $0x110] sm:$0xff] %vm1079_vm2, %v1071_v49  ;;  %vm1664_vm11 = vcmp.lt.s32.totalorder %v1374_v63, 15  ;;  %v6260_v37 = vld [vmem:[#allocation2 + $0x107] sm:$0xff] }
 0x214   : > { %v3051_v23 = vpop.permute.xlu1 %3050  ;;  %4698 = vmatpush3.bf16.msra.mxu0 %v4695_v9  ;;  %2529 = vst.msk [vmem:[#allocation3 + $0x2c0] sm:$0xff] %vm1079_vm2, %v6247_v29  ;;  %1824 = vst.msk [vmem:[#allocation3 + $0x2e8] sm:$0xff] %vm1079_vm2, %v6260_v37 }
 0x215   : > { %v1916_v25 = vpop.permute.xlu0 %1915 }
 0x216   : > { %1999 = vst.msk [vmem:[#allocation3 + $0x138] sm:$0xff] %vm1985_vm4, %v1916_v25  ;;  %2146 = vrot.lane.b32.xlu1 %v5713_v61, %s4823_s29  ;;  %v6258_v25 = vld [vmem:[#allocation2 + $0x100] sm:$0xff] }
 0x217   : > { %2660 = vrot.lane.b32.xlu0 %v6922_v41, %s4822_s26  ;;  %2528 = vst.msk [vmem:[#allocation3 + $0x2a8] sm:$0xff] %vm1079_vm2, %v6258_v25 }
 0x218   : > { %v2127_v1 = vpop.permute.xlu1 %2126 }
 0x219   : > { %2217 = vst.msk [vmem:[#allocation3 + $0x90] sm:$0xff] %vm2210_vm5, %v2127_v1  ;;  %v3061_v9 = vpop.permute.xlu0 %3060  ;;  %v6263_v1 = vsel %vm1664_vm11, 1.0, %v6901_v42 }
 0x21a   : > { %v6242_v13 = vld [vmem:[#allocation2 + $0x119] sm:$0xff]  ;;  %2367 = vrot.lane.b32.xlu1 %v2289_v46, %s4824_s10  ;;  %v3199_v31 = vld [vmem:[#allocation2 + $0x109] sm:$0xff]  ;;  %v6250_v35 = vld [vmem:[#allocation2 + $0x111] sm:$0xff] }
 0x21b   : > { %v3233_v61 = vmul.f32 %v6159_v26, %v6242_v13  ;;  %2880 = vrot.lane.b32.xlu0 %v2802_v10, %s4823_s29  ;;  %v3231_v49 = vmul.f32 %v6071_v57, %v3199_v31  ;;  %3264 = vst.msk [vmem:[#allocation3 + $0x2b0] sm:$0xff] %vm1079_vm2, %v6250_v35  ;;  %v6266_v46 = vmul.f32 %v6263_v1, %v3199_v31  ;;  %v2997_v57 = vld [vmem:[#allocation2 + $0xb8] sm:$0xff] }
 0x21c   : > { %v3049_v4 = vpop.permute.xlu1 %3048  ;;  %v6269_v10 = vmul.f32 %v6159_v26, %v3199_v31 }
 0x21d   : > { %3265 = vst.msk [vmem:[#allocation3 + $0x2c8] sm:$0xff] %vm1079_vm2, %v3233_v61  ;;  %v2871_v12 = vpop.permute.xlu0 %2870  ;;  %3263 = vst.msk [vmem:[#allocation3 + $0x298] sm:$0xff] %vm1079_vm2, %v3231_v49  ;;  %v6924_v49 = vld [vmem:[#allocation13_spill] sm:$0xff] }
 0x21e   : > { %1927 = vrot.lane.b32.xlu1 %v6193_v19, %s4822_s26 }
 0x21f   : > { %2658 = vrot.lane.b32.xlu0 %v5774_v60, %s4822_s26  ;;  %v2996_v60 = vld [vmem:[#allocation2 + $0xb0] sm:$0xff] }
 0x220   : > { %v2859_v42 = vpop.permute.xlu1 %2858 }
 0x221   : > { %2951 = vst.msk [vmem:[#allocation3 + $0x50] sm:$0xff] %vm2210_vm5, %v2859_v42  ;;  %v2649_v26 = vpop.permute.xlu0 %2648 }
 0x222   : > { %3143 = vst.msk [vmem:[#allocation3 + $0x50] sm:$0xff] %vm2435_vm6, %v3051_v23  ;;  %2373 = vrot.lane.b32.xlu1 %v2771_v53, %s4824_s10  ;;  %v2773_v53 = vld [vmem:[#allocation2 + $0xb7] sm:$0xff] }
 0x223   : > { %2734 = vst.msk [vmem:[#allocation3 + $0xf8] sm:$0xff] %vm1985_vm4, %v2649_v26  ;;  %3078 = vrot.lane.b32.xlu0 %v2997_v57, %s4824_s10  ;;  %v2772_v26 = vld [vmem:[#allocation2 + $0xaf] sm:$0xff] }
 0x224   : > { %v2350_v63 = vpop.permute.xlu1 %2349 }
 0x225   : > { %v1914_v19 = vpop.permute.xlu0 %1913 }
 0x226   : > { %1998 = vst.msk [vmem:[#allocation3 + $0x120] sm:$0xff] %vm1985_vm4, %v1914_v19  ;;  %1925 = vrot.lane.b32.xlu1 %v6215_v55, %s4822_s26  ;;  %v2291_v55 = vmul.f32 %v6924_v49, %v2770_v16  ;;  %v2804_v16 = vmul.f32 %v6924_v49, %v2772_v26  ;;  %v3277_v49 = vld [vmem:[#allocation3 + $0x48] sm:$0xff] }
 0x227   : > { %3076 = vrot.lane.b32.xlu0 %v2996_v60, %s4824_s10 }
 0x228   : > { %v2857_v61 = vpop.permute.xlu1 %2856 }
 0x229   : > { %2950 = vst.msk [vmem:[#allocation3 + $0x38] sm:$0xff] %vm2210_vm5, %v2857_v61  ;;  %v2139_v23 = vpop.permute.xlu0 %2138  ;;  %v3274_v61 = vld [vmem:[#allocation3 + $0x30] sm:$0xff] }
 0x22a   : > { %3142 = vst.msk [vmem:[#allocation3 + $0x38] sm:$0xff] %vm2435_vm6, %v3049_v4  ;;  %2150 = vrot.lane.b32.xlu1 %v6922_v41, %s4823_s29 }
 0x22b   : > { %2223 = vst.msk [vmem:[#allocation3 + $0x120] sm:$0xff] %vm2210_vm5, %v2139_v23  ;;  %2886 = vrot.lane.b32.xlu0 %v2773_v53, %s4823_s29  ;;  %v3278_v23 = vld [vmem:[#allocation3 + $0x50] sm:$0xff] }
 0x22c   : > { %v2348_v31 = vpop.permute.xlu1 %2347 }
 0x22d   : > { %2440 = vst.msk [vmem:[#allocation3 + $0x60] sm:$0xff] %vm2435_vm6, %v2348_v31  ;;  %v2869_v42 = vpop.permute.xlu0 %2868  ;;  %v6316_v31 = vld [vmem:[#allocation2 + $0x110] sm:$0xff] }
 0x22e   : > { %2956 = vst.msk [vmem:[#allocation3 + $0xc8] sm:$0xff] %vm2210_vm5, %v2869_v42  ;;  %2371 = vrot.lane.b32.xlu1 %v2291_v55, %s4824_s10  ;;  %v2999_v55 = vld [vmem:[#allocation2 + $0xc8] sm:$0xff] }
 0x22f   : > { %3148 = vst.msk [vmem:[#allocation3 + $0xc8] sm:$0xff] %vm2435_vm6, %v3061_v9  ;;  %2664 = vrot.lane.b32.xlu0 %v5822_v30, %s4822_s26  ;;  %v6308_v9 = vld [vmem:[#allocation2 + $0x118] sm:$0xff] }
 0x230   : > { %v2125_v41 = vpop.permute.xlu1 %2124  ;;  %2531 = vst.msk [vmem:[#allocation3 + $0x2f0] sm:$0xff] %vm1079_vm2, %v6308_v9  ;;  %2530 = vst.msk [vmem:[#allocation3 + $0x2d8] sm:$0xff] %vm1079_vm2, %v6316_v31 }
 0x231   : > { %2216 = vst.msk [vmem:[#allocation3 + $0x78] sm:$0xff] %vm2210_vm5, %v2125_v41  ;;  %v2647_v4 = vpop.permute.xlu0 %2646  ;;  %v3275_v19 = vld [vmem:[#allocation3 + $0x38] sm:$0xff] }
 0x232   : > { %2441 = vst.msk [vmem:[#allocation3 + $0x78] sm:$0xff] %vm2435_vm6, %v2350_v63  ;;  %3570 = vmatprep.mubr.f32.mxu0 %v3275_v19  ;;  %2148 = vrot.lane.b32.xlu1 %v5777_v51, %s4823_s29  ;;  %v2775_v19 = vld [vmem:[#allocation2 + $0xc7] sm:$0xff] }
 0x233   : > { %2733 = vst.msk [vmem:[#allocation3 + $0xe0] sm:$0xff] %vm1985_vm4, %v2647_v4  ;;  %3571 = vmatmul.mubr.f32.gmra.mrb[36].mxu0 %v3274_v61  ;;  %2884 = vrot.lane.b32.xlu0 %v2804_v16, %s4823_s29  ;;  %v2293_v16 = vmul.f32 %v5761_v8, %v2772_v26 }
 0x234   : > { %2957 = vst.msk [vmem:[#allocation3 + $0xe0] sm:$0xff] %vm2210_vm5, %v2871_v12  ;;  %3575 = vmatprep.mubr.f32.mxu0 %v3278_v23  ;;  %v1908_v63 = vpop.permute.xlu1 %1907  ;;  %v6321_v12 = vmul.f32 %v6263_v1, %v6242_v13 }
 0x235   : > { %3149 = vst.msk [vmem:[#allocation3 + $0xe0] sm:$0xff] %vm2435_vm6, %v6225_v47  ;;  %v2137_v51 = vpop.permute.xlu0 %2136 }
 0x236   : > { %1995 = vst.msk [vmem:[#allocation3 + $0xd8] sm:$0xff] %vm1985_vm4, %v1908_v63  ;;  %1931 = vrot.lane.b32.xlu1 %v2997_v57, %s4822_s26  ;;  %v2998_v57 = vld [vmem:[#allocation2 + $0xc0] sm:$0xff] }
 0x237   : > { %2222 = vst.msk [vmem:[#allocation3 + $0x108] sm:$0xff] %vm2210_vm5, %v2137_v51  ;;  %3576 = vmatmul.mubr.f32.gmra.mrb[38].mxu0 %v3277_v49  ;;  %2662 = vrot.lane.b32.xlu0 %v5829_v56, %s4822_s26 }
 0x238   : > { %v3055_v47 = vpop.permute.xlu1 %3054 }
 0x239   : > { %v6329_v42 = vpop.permute.xlu0 %3066 }
 0x23a   : > { %2377 = vrot.lane.b32.xlu1 %v2773_v53, %s4824_s10 }
 0x23b   : > { %3082 = vrot.lane.b32.xlu0 %v2999_v55, %s4824_s10 }
 0x23c   : > { %v2354_v13 = vpop.permute.xlu1 %2353 }
 0x23d   : > { %v1920_v41 = vpop.permute.xlu0 %1919 }
 0x23e   : > { %2001 = vst.msk [vmem:[#allocation3 + $0x168] sm:$0xff] %vm1985_vm4, %v1920_v41  ;;  %1929 = vrot.lane.b32.xlu1 %v2996_v60, %s4822_s26  ;;  %v2774_v60 = vld [vmem:[#allocation2 + $0xbf] sm:$0xff] }
 0x23f   : > { %3080 = vrot.lane.b32.xlu0 %v2998_v57, %s4824_s10  ;;  %v2806_v51 = vmul.f32 %v5761_v8, %v2774_v60 }
 0x240   : > { %v1906_v4 = vpop.permute.xlu1 %1905 }
 0x241   : > { %1994 = vst.msk [vmem:[#allocation3 + $0xc0] sm:$0xff] %vm1985_vm4, %v1906_v4  ;;  %v3065_v56 = vpop.permute.xlu0 %3064 }
 0x242   : > { %2154 = vrot.lane.b32.xlu1 %v5822_v30, %s4823_s29  ;;  %v3203_v30 = vld [vmem:[#allocation2 + $0x129] sm:$0xff] }
 0x243   : > { %2890 = vrot.lane.b32.xlu0 %v2775_v19, %s4823_s29  ;;  %v3235_v26 = vmul.f32 %v6263_v1, %v3203_v30  ;;  %v6397_v30 = vld [vmem:[#allocation2 + $0xe8] sm:$0xff] }
 0x244   : > { %v2131_v53 = vpop.permute.xlu1 %2130 }
 0x245   : > { %2219 = vst.msk [vmem:[#allocation3 + $0xc0] sm:$0xff] %vm2210_vm5, %v2131_v53  ;;  %v2875_v61 = vpop.permute.xlu0 %2874 }
 0x246   : > { %2375 = vrot.lane.b32.xlu1 %v2293_v16, %s4824_s10  ;;  %3267 = vst.msk [vmem:[#allocation3 + $0x2f8] sm:$0xff] %vm1079_vm2, %v3235_v26 }
 0x247   : > { %2668 = vrot.lane.b32.xlu0 %v5877_v7, %s4822_s26 }
 0x248   : > { %v3053_v23 = vpop.permute.xlu1 %3052 }
 0x249   : > { %v2653_v63 = vpop.permute.xlu0 %2652 }
 0x24a   : > { %2736 = vst.msk [vmem:[#allocation3 + $0x128] sm:$0xff] %vm1985_vm4, %v2653_v63  ;;  %2152 = vrot.lane.b32.xlu1 %v5838_v54, %s4823_s29  ;;  %v3001_v54 = vld [vmem:[#allocation2 + $0xd8] sm:$0xff] }
 0x24b   : > { %2888 = vrot.lane.b32.xlu0 %v2806_v51, %s4823_s29  ;;  %v3283_v63 = vld [vmem:[#allocation3 + $0x78] sm:$0xff] }
 0x24c   : > { %v2863_v49 = vpop.permute.xlu1 %2862 }
 0x24d   : > { %2953 = vst.msk [vmem:[#allocation3 + $0x80] sm:$0xff] %vm2210_vm5, %v2863_v49  ;;  %v1918_v41 = vpop.permute.xlu0 %1917  ;;  %v3273_v49 = vld [vmem:[#allocation3 + $0x28] sm:$0xff] }
 0x24e   : > { %3145 = vst.msk [vmem:[#allocation3 + $0x80] sm:$0xff] %vm2435_vm6, %v3055_v47  ;;  %1935 = vrot.lane.b32.xlu1 %v2999_v55, %s4822_s26 }
 0x24f   : > { %2000 = vst.msk [vmem:[#allocation3 + $0x150] sm:$0xff] %vm1985_vm4, %v1918_v41  ;;  %2666 = vrot.lane.b32.xlu0 %v5889_v36, %s4822_s26  ;;  %v3000_v36 = vld [vmem:[#allocation2 + $0xd0] sm:$0xff]  ;;  %v3276_v41 = vld [vmem:[#allocation3 + $0x40] sm:$0xff] }
 0x250   : > { %v2352_v8 = vpop.permute.xlu1 %2351 }
 0x251   : > { %2442 = vst.msk [vmem:[#allocation3 + $0x90] sm:$0xff] %vm2435_vm6, %v2352_v8  ;;  %v2143_v1 = vpop.permute.xlu0 %2142 }
 0x252   : > { %2225 = vst.msk [vmem:[#allocation3 + $0x150] sm:$0xff] %vm2210_vm5, %v2143_v1  ;;  %2381 = vrot.lane.b32.xlu1 %v2775_v19, %s4824_s10 }
 0x253   : > { %3086 = vrot.lane.b32.xlu0 %v3001_v54, %s4824_s10 }
 0x254   : > { %v2129_v4 = vpop.permute.xlu1 %2128 }
 0x255   : > { %2218 = vst.msk [vmem:[#allocation3 + $0xa8] sm:$0xff] %vm2210_vm5, %v2129_v4  ;;  %v2873_v47 = vpop.permute.xlu0 %2872  ;;  %v3279_v4 = vld [vmem:[#allocation3 + $0x58] sm:$0xff] }
 0x256   : > { %2443 = vst.msk [vmem:[#allocation3 + $0xa8] sm:$0xff] %vm2435_vm6, %v2354_v13  ;;  %1933 = vrot.lane.b32.xlu1 %v2998_v57, %s4822_s26  ;;  %v2777_v13 = vld [vmem:[#allocation2 + $0xd7] sm:$0xff] }
 0x257   : > { %2958 = vst.msk [vmem:[#allocation3 + $0xf8] sm:$0xff] %vm2210_vm5, %v2873_v47  ;;  %3084 = vrot.lane.b32.xlu0 %v3000_v36, %s4824_s10  ;;  %v3282_v47 = vld [vmem:[#allocation3 + $0x70] sm:$0xff] }
 0x258   : > { %3150 = vst.msk [vmem:[#allocation3 + $0xf8] sm:$0xff] %vm2435_vm6, %v3065_v56  ;;  %v2861_v55 = vpop.permute.xlu1 %2860  ;;  %v2295_v56 = vmul.f32 %v5835_v52, %v2774_v60  ;;  %v3280_v52 = vld [vmem:[#allocation3 + $0x60] sm:$0xff]  ;;  %v3286_v26 = vld [vmem:[#allocation3 + $0x90] sm:$0xff] }
 0x259   : > { %2952 = vst.msk [vmem:[#allocation3 + $0x68] sm:$0xff] %vm2210_vm5, %v2861_v55  ;;  %v2651_v19 = vpop.permute.xlu0 %2650 }
 0x25a   : > { %3144 = vst.msk [vmem:[#allocation3 + $0x68] sm:$0xff] %vm2435_vm6, %v3053_v23  ;;  %2158 = vrot.lane.b32.xlu1 %v5877_v7, %s4823_s29 }
 0x25b   : > { %2735 = vst.msk [vmem:[#allocation3 + $0x110] sm:$0xff] %vm1985_vm4, %v2651_v19  ;;  %2894 = vrot.lane.b32.xlu0 %v2777_v13, %s4823_s29  ;;  %v3293_v19 = vld [vmem:[#allocation3 + $0xc8] sm:$0xff] }
 0x25c   : > { %2959 = vst.msk [vmem:[#allocation3 + $0x110] sm:$0xff] %vm2210_vm5, %v2875_v61  ;;  %v2358_v57 = vpop.permute.xlu1 %2357 }
 0x25d   : > { %3151 = vst.msk [vmem:[#allocation3 + $0x110] sm:$0xff] %vm2435_vm6, %v6329_v42  ;;  %v2141_v53 = vpop.permute.xlu0 %2140  ;;  %v3284_v42 = vld [vmem:[#allocation3 + $0x80] sm:$0xff]  ;;  %v3289_v1 = vld [vmem:[#allocation3 + $0xa8] sm:$0xff] }
 0x25e   : > { %2224 = vst.msk [vmem:[#allocation3 + $0x138] sm:$0xff] %vm2210_vm5, %v2141_v53  ;;  %2379 = vrot.lane.b32.xlu1 %v2295_v56, %s4824_s10  ;;  %v3296_v56 = vld [vmem:[#allocation3 + $0xe0] sm:$0xff] }
 0x25f   : > { %2672 = vrot.lane.b32.xlu0 %v5928_v3, %s4822_s26  ;;  %v3288_v53 = vld [vmem:[#allocation3 + $0xa0] sm:$0xff] }
 0x260   : > { %v2865_v7 = vpop.permute.xlu1 %2864 }
 0x261   : > { %2954 = vst.msk [vmem:[#allocation3 + $0x98] sm:$0xff] %vm2210_vm5, %v2865_v7  ;;  %v6383_v16 = vpop.permute.xlu0 %3070  ;;  %v3281_v61 = vld [vmem:[#allocation3 + $0x68] sm:$0xff] }
 0x262   : > { %3146 = vst.msk [vmem:[#allocation3 + $0x98] sm:$0xff] %vm2435_vm6, %v6124_v18  ;;  %3580 = vmatprep.mubr.f32.mxu0 %v3281_v61  ;;  %2156 = vrot.lane.b32.xlu1 %v5895_v22, %s4823_s29  ;;  %v3270_v18 = vld [vmem:[#allocation3 + $0x10] sm:$0xff] }
 0x263   : > { %3581 = vmatmul.mubr.f32.gmra.mrb[40].mxu0 %v3280_v52  ;;  %2892 = vrot.lane.b32.xlu0 %v5948_v27, %s4823_s29  ;;  %v3291_v52 = vld [vmem:[#allocation3 + $0xb8] sm:$0xff] }
 0x264   : > { %3585 = vmatprep.mubr.f32.mxu0 %v3284_v42  ;;  %v2356_v60 = vpop.permute.xlu1 %2355  ;;  %v3294_v42 = vld [vmem:[#allocation3 + $0xd0] sm:$0xff] }
 0x265   : > { %2444 = vst.msk [vmem:[#allocation3 + $0xc0] sm:$0xff] %vm2435_vm6, %v2356_v60  ;;  %v3069_v23 = vpop.permute.xlu0 %3068 }
 0x266   : > { %1939 = vrot.lane.b32.xlu1 %v3001_v54, %s4822_s26 }
 0x267   : > { %3586 = vmatmul.mubr.f32.gmra.mrb[42].mxu0 %v3283_v63  ;;  %2670 = vrot.lane.b32.xlu0 %v5940_v20, %s4822_s26  ;;  %v3290_v20 = vld [vmem:[#allocation3 + $0xb0] sm:$0xff] }
 0x268   : > { %4579 = vmatprep.mubr.msk.f32.mxu0 %vm1079_vm2, %v3270_v18  ;;  %v2133_v22 = vpop.permute.xlu1 %2132  ;;  %v3297_v18 = vld [vmem:[#allocation3 + $0xe8] sm:$0xff] }
 0x269   : > { %2220 = vst.msk [vmem:[#allocation3 + $0xd8] sm:$0xff] %vm2210_vm5, %v2133_v22  ;;  %v2879_v27 = vpop.permute.xlu0 %2878  ;;  %v3287_v51 = vld [vmem:[#allocation3 + $0x98] sm:$0xff]  ;;  %v3300_v22 = vld [vmem:[#allocation3 + $0x100] sm:$0xff] }
 0x26a   : > { %2445 = vst.msk [vmem:[#allocation3 + $0xd8] sm:$0xff] %vm2435_vm6, %v2358_v57  ;;  %3590 = vmatprep.mubr.f32.mxu1 %v3287_v51  ;;  %2385 = vrot.lane.b32.xlu1 %v2777_v13, %s4824_s10  ;;  %v3285_v57 = vld [vmem:[#allocation3 + $0x88] sm:$0xff] }
 0x26b   : > { %3591 = vmatmul.mubr.f32.vlgmr.msra.gmra.mrb[32].mxu1 %v3286_v26  ;;  %4580 = vmatmul.mubr.msk.f32.vlgmr.msra.gmra.mrb[44].mxu0 %vm1079_vm2, %v3273_v49  ;;  %v3303_v26 = vld [vmem:[#allocation3 + $0x118] sm:$0xff] }
 0x26c   : > { %3090 = vrot.lane.b32.xlu0 %v6397_v30, %s4824_s10  ;;  %3595 = vmatprep.mubr.f32.mxu1 %v3290_v20  ;;  %v2362_v8 = vpop.permute.xlu1 %2361 }
 0x26d   : > { %4582 = vmatprep.mubr.msk.f32.mxu0 %vm1079_vm2, %v3276_v41  ;;  %2447 = vst.msk [vmem:[#allocation3 + $0x108] sm:$0xff] %vm2435_vm6, %v2362_v8  ;;  %v2657_v54 = vpop.permute.xlu0 %2656  ;;  %v3309_v8 = vld [vmem:[#allocation3 + $0x148] sm:$0xff] }
 0x26e   : > { %2738 = vst.msk [vmem:[#allocation3 + $0x158] sm:$0xff] %vm1985_vm4, %v2657_v54  ;;  %1937 = vrot.lane.b32.xlu1 %v3000_v36, %s4822_s26  ;;  %v3292_v36 = vld [vmem:[#allocation3 + $0xc0] sm:$0xff] }
 0x26f   : > { %3596 = vmatmul.mubr.f32.gmra.mrb[34].mxu1 %v3289_v1  ;;  %4583 = vmatmul.mubr.msk.f32.gmra.mrb[46].mxu0 %vm1079_vm2, %v3279_v4  ;;  %v3312_v1 = vld [vmem:[#allocation3 + $0x160] sm:$0xff] }
 0x270   : > { %3088 = vrot.lane.b32.xlu0 %v6066_v24, %s4824_s10  ;;  %4585 = vmatprep.mubr.msk.f32.mxu0 %vm1079_vm2, %v3282_v47  ;;  %v2360_v55 = vpop.permute.xlu1 %2359  ;;  %v3315_v47 = vld [vmem:[#allocation3 + $0x178] sm:$0xff] }
 0x271   : > { %2446 = vst.msk [vmem:[#allocation3 + $0xf0] sm:$0xff] %vm2435_vm6, %v2360_v55  ;;  %3600 = vmatprep.mubr.f32.mxu1 %v3293_v19  ;;  %v2877_v13 = vpop.permute.xlu0 %2876  ;;  %v3318_v55 = vld [vmem:[#allocation3 + $0x190] sm:$0xff] }
 0x272   : > { %2960 = vst.msk [vmem:[#allocation3 + $0x128] sm:$0xff] %vm2210_vm5, %v2877_v13  ;;  %2162 = vrot.lane.b32.xlu1 %v5928_v3, %s4823_s29  ;;  %v3295_v3 = vld [vmem:[#allocation3 + $0xd8] sm:$0xff] }
 0x273   : > { %3152 = vst.msk [vmem:[#allocation3 + $0x128] sm:$0xff] %vm2435_vm6, %v3069_v23  ;;  %3601 = vmatmul.mubr.f32.gmra.mrb[36].mxu1 %v3292_v36  ;;  %4586 = vmatmul.mubr.msk.f32.gmra.mrb[48].mxu0 %vm1079_vm2, %v3285_v57  ;;  %v3299_v23 = vld [vmem:[#allocation3 + $0xf8] sm:$0xff]  ;;  %v3324_v36 = vld [vmem:[#allocation3 + $0x1c0] sm:$0xff] }
 0x274   : > { %2898 = vrot.lane.b32.xlu0 %v6068_v44, %s4823_s29  ;;  %3605 = vmatprep.mubr.f32.mxu1 %v3296_v56  ;;  %v2366_v7 = vpop.permute.xlu1 %2365 }
 0x275   : > { %4588 = vmatprep.mubr.msk.f32.mxu0 %vm1079_vm2, %v3288_v53  ;;  %2449 = vst.msk [vmem:[#allocation3 + $0x138] sm:$0xff] %vm2435_vm6, %v2366_v7  ;;  %v2655_v61 = vpop.permute.xlu0 %2654  ;;  %v3327_v53 = vld [vmem:[#allocation3 + $0x1d8] sm:$0xff] }
 0x276   : > { %2737 = vst.msk [vmem:[#allocation3 + $0x140] sm:$0xff] %vm1985_vm4, %v2655_v61  ;;  %2383 = vrot.lane.b32.xlu1 %v5951_v2, %s4824_s10 }
 0x277   : > { %2961 = vst.msk [vmem:[#allocation3 + $0x140] sm:$0xff] %vm2210_vm5, %v2879_v27  ;;  %3606 = vmatmul.mubr.f32.gmra.mrb[38].mxu1 %v3295_v3  ;;  %4589 = vmatmul.mubr.msk.f32.gmra.mrb[50].mxu0 %vm1079_vm2, %v3291_v52  ;;  %v3336_v3 = vld [vmem:[#allocation3 + $0x220] sm:$0xff] }
 0x278   : > { %3153 = vst.msk [vmem:[#allocation3 + $0x140] sm:$0xff] %vm2435_vm6, %v6383_v16  ;;  %2676 = vrot.lane.b32.xlu0 %v5984_v43, %s4822_s26  ;;  %4591 = vmatprep.mubr.msk.f32.mxu0 %vm1079_vm2, %v3294_v42  ;;  %v2364_v60 = vpop.permute.xlu1 %2363  ;;  %v3298_v63 = vld [vmem:[#allocation3 + $0xf0] sm:$0xff] }
 0x279   : > { %2448 = vst.msk [vmem:[#allocation3 + $0x120] sm:$0xff] %vm2435_vm6, %v2364_v60  ;;  %3610 = vmatprep.mubr.f32.mxu1 %v3299_v23  ;;  %v2145_v2 = vpop.permute.xlu0 %2144  ;;  %v3302_v16 = vld [vmem:[#allocation3 + $0x110] sm:$0xff]  ;;  %v3339_v60 = vld [vmem:[#allocation3 + $0x238] sm:$0xff] }
 0x27a   : > { %2226 = vst.msk [vmem:[#allocation3 + $0x168] sm:$0xff] %vm2210_vm5, %v2145_v2  ;;  %2160 = vrot.lane.b32.xlu1 %v5943_v40, %s4823_s29  ;;  %v3301_v40 = vld [vmem:[#allocation3 + $0x108] sm:$0xff] }
 0x27b   : > { %3611 = vmatmul.mubr.f32.gmra.mrb[40].mxu1 %v3298_v63  ;;  %4592 = vmatmul.mubr.msk.f32.gmra.mrb[52].mxu0 %vm1079_vm2, %v3297_v18  ;;  %v3305_v49 = vld [vmem:[#allocation3 + $0x128] sm:$0xff]  ;;  %v3342_v63 = vld [vmem:[#allocation3 + $0x250] sm:$0xff]  ;;  %v3348_v18 = vld [vmem:[#allocation3 + $0x280] sm:$0xff] }
 0x27c   : > { %2896 = vrot.lane.b32.xlu0 %v6007_v48, %s4823_s29  ;;  %3615 = vmatprep.mubr.f32.mxu1 %v3302_v16  ;;  %v1924_v27 = vpop.permute.xlu1 %1923  ;;  %v3306_v48 = vld [vmem:[#allocation3 + $0x130] sm:$0xff] }
 0x27d   : > { %4594 = vmatprep.mubr.msk.f32.mxu0 %vm1079_vm2, %v3300_v22  ;;  %2003 = vst.msk [vmem:[#allocation3 + $0x198] sm:$0xff] %vm1985_vm4, %v1924_v27  ;;  %v6441_v51 = vpop.permute.xlu0 %3074  ;;  %v3351_v27 = vld [vmem:[#allocation3 + $0x298] sm:$0xff] }
 0x27e   : > { %1943 = vrot.lane.b32.xlu1 %v6397_v30, %s4822_s26 }
 0x27f   : > { %3616 = vmatmul.mubr.f32.gmra.mrb[42].mxu1 %v3301_v40  ;;  %4595 = vmatmul.mubr.msk.f32.gmra.mrb[54].mxu0 %vm1079_vm2, %v3303_v26  ;;  %v3308_v54 = vld [vmem:[#allocation3 + $0x140] sm:$0xff]  ;;  %v3354_v40 = vld [vmem:[#allocation3 + $0x2b0] sm:$0xff]  ;;  %v3357_v26 = vld [vmem:[#allocation3 + $0x2c8] sm:$0xff] }
 0x280   : > { %2674 = vrot.lane.b32.xlu0 %v5998_v6, %s4822_s26  ;;  %3620 = vmatprep.mubr.f32.mxu1 %v3305_v49  ;;  %v2370_v20 = vpop.permute.xlu1 %2369  ;;  %v3304_v30 = vld [vmem:[#allocation3 + $0x120] sm:$0xff] }
 0x281   : > { %4597 = vmatprep.mubr.msk.f32.mxu0 %vm1079_vm2, %v3306_v48  ;;  %2451 = vst.msk [vmem:[#allocation3 + $0x168] sm:$0xff] %vm2435_vm6, %v2370_v20  ;;  %v3073_v41 = vpop.permute.xlu0 %3072 }
 0x282   : > { %2389 = vrot.lane.b32.xlu1 %v6068_v44, %s4824_s10  ;;  %v3307_v44 = vld [vmem:[#allocation3 + $0x138] sm:$0xff] }
 0x283   : > { %3621 = vmatmul.mubr.f32.gmra.mrb[44].mxu1 %v3304_v30  ;;  %4598 = vmatmul.mubr.msk.f32.gmra.mrb[56].mxu0 %vm1079_vm2, %v3309_v8 }
 0x284   : > { %3094 = vrot.lane.b32.xlu0 %v6150_v0, %s4824_s10  ;;  %3625 = vmatprep.mubr.f32.mxu1 %v3308_v54  ;;  %v1922_v6 = vpop.permute.xlu1 %1921 }
 0x285   : > { %2002 = vst.msk [vmem:[#allocation3 + $0x180] sm:$0xff] %vm1985_vm4, %v1922_v6  ;;  %4600 = vmatprep.mubr.msk.f32.mxu0 %vm1079_vm2, %v3312_v1  ;;  %v2883_v4 = vpop.permute.xlu0 %2882 }
 0x286   : > { %1941 = vrot.lane.b32.xlu1 %v6066_v24, %s4822_s26  ;;  %v3321_v24 = vld [vmem:[#allocation3 + $0x1a8] sm:$0xff] }
 0x287   : > { %3626 = vmatmul.mubr.f32.gmra.mrb[46].mxu1 %v3307_v44  ;;  %4601 = vmatmul.mubr.msk.f32.gmra.mrb[58].mxu0 %vm1079_vm2, %v3315_v47  ;;  %v2273_v47 = vld [vmem:[#allocation2 + $0x10f] sm:$0xff] }
 0x288   : > { %3092 = vrot.lane.b32.xlu0 %v6154_v14, %s4824_s10  ;;  %v2147_v19 = vpop.permute.xlu1 %2146  ;;  %4603 = vmatprep.mubr.msk.f32.mxu0 %vm1079_vm2, %v3318_v55  ;;  %v3313_v22 = vld [vmem:[#allocation3 + $0x168] sm:$0xff] }
 0x289   : > { %2227 = vst.msk [vmem:[#allocation3 + $0x180] sm:$0xff] %vm2210_vm5, %v2147_v19  ;;  %v2661_v13 = vpop.permute.xlu0 %2660  ;;  %v3202_v19 = vld [vmem:[#allocation2 + $0x121] sm:$0xff] }
 0x28a   : > { %2740 = vst.msk [vmem:[#allocation3 + $0x188] sm:$0xff] %vm1985_vm4, %v2661_v13  ;;  %2166 = vrot.lane.b32.xlu1 %v5984_v43, %s4823_s29  ;;  %v3330_v43 = vld [vmem:[#allocation3 + $0x1f0] sm:$0xff] }
 0x28b   : > { %4604 = vmatmul.mubr.msk.f32.gmra.mrb[60].mxu0 %vm1079_vm2, %v3321_v24  ;;  %3266 = vst.msk [vmem:[#allocation3 + $0x2e0] sm:$0xff] %vm1079_vm2, %v3202_v19 }
 0x28c   : > { %2902 = vrot.lane.b32.xlu0 %v6156_v38, %s4823_s29  ;;  %v2368_v57 = vpop.permute.xlu1 %2367  ;;  %4606 = vmatprep.mubr.msk.f32.mxu0 %vm1079_vm2, %v3324_v36 }
 0x28d   : > { %2450 = vst.msk [vmem:[#allocation3 + $0x150] sm:$0xff] %vm2435_vm6, %v2368_v57  ;;  %v2881_v56 = vpop.permute.xlu0 %2880 }
 0x28e   : > { %2962 = vst.msk [vmem:[#allocation3 + $0x158] sm:$0xff] %vm2210_vm5, %v2881_v56  ;;  %2387 = vrot.lane.b32.xlu1 %v6010_v62, %s4824_s10  ;;  %v3333_v62 = vld [vmem:[#allocation3 + $0x208] sm:$0xff] }
 0x28f   : > { %3154 = vst.msk [vmem:[#allocation3 + $0x158] sm:$0xff] %vm2435_vm6, %v3073_v41  ;;  %4607 = vmatmul.mubr.msk.f32.gmra.mrb[62].mxu0 %vm1079_vm2, %v3327_v53 }
 0x290   : > { %2680 = vrot.lane.b32.xlu0 %v6064_v45, %s4822_s26  ;;  %v1928_v7 = vpop.permute.xlu1 %1927  ;;  %4609 = vmatprep.mubr.msk.f32.mxu0 %vm1079_vm2, %v3330_v43 }
 0x291   : > { %2005 = vst.msk [vmem:[#allocation3 + $0x1c8] sm:$0xff] %vm1985_vm4, %v1928_v7  ;;  %v2659_v61 = vpop.permute.xlu0 %2658 }
 0x292   : > { %2739 = vst.msk [vmem:[#allocation3 + $0x170] sm:$0xff] %vm1985_vm4, %v2659_v61  ;;  %2164 = vrot.lane.b32.xlu1 %v6001_v39, %s4823_s29  ;;  %v3363_v61 = vld [vmem:[#allocation3 + $0x2f8] sm:$0xff] }
 0x293   : > { %2963 = vst.msk [vmem:[#allocation3 + $0x170] sm:$0xff] %vm2210_vm5, %v2883_v4  ;;  %4610 = vmatmul.mubr.msk.f32.gmra.mrb[64].mxu0 %vm1079_vm2, %v3333_v62  ;;  %v2787_v62 = vld [vmem:[#allocation2 + $0x127] sm:$0xff] }
 0x294   : > { %3155 = vst.msk [vmem:[#allocation3 + $0x170] sm:$0xff] %vm2435_vm6, %v6441_v51  ;;  %2900 = vrot.lane.b32.xlu0 %v6088_v59, %s4823_s29  ;;  %v2374_v52 = vpop.permute.xlu1 %2373  ;;  %4612 = vmatprep.mubr.msk.f32.mxu0 %vm1079_vm2, %v3336_v3  ;;  %v3310_v23 = vld [vmem:[#allocation3 + $0x150] sm:$0xff] }
 0x295   : > { %v3079_v42 = vpop.permute.xlu0 %3078 }
 0x296   : > { %1947 = vrot.lane.b32.xlu1 %v6150_v0, %s4822_s26  ;;  %v3311_v39 = vld [vmem:[#allocation3 + $0x158] sm:$0xff]  ;;  %v3345_v0 = vld [vmem:[#allocation3 + $0x268] sm:$0xff] }
 0x297   : > { %3630 = vmatprep.mubr.f32.mxu1 %v3311_v39  ;;  %4613 = vmatmul.mubr.msk.f32.gmra.mrb[66].mxu0 %vm1079_vm2, %v3339_v60 }
 0x298   : > { %2678 = vrot.lane.b32.xlu0 %v6091_v5, %s4822_s26  ;;  %3631 = vmatmul.mubr.f32.gmra.mrb[48].mxu1 %v3310_v23  ;;  %v1926_v2 = vpop.permute.xlu1 %1925 }
 0x299   : > { %2004 = vst.msk [vmem:[#allocation3 + $0x1b0] sm:$0xff] %vm1985_vm4, %v1926_v2  ;;  %4615 = vmatprep.mubr.msk.f32.mxu0 %vm1079_vm2, %v3342_v63  ;;  %v3077_v59 = vpop.permute.xlu0 %3076 }
 0x29a   : > { %2393 = vrot.lane.b32.xlu1 %v6156_v38, %s4824_s10 }
 0x29b   : > { %4616 = vmatmul.mubr.msk.f32.gmra.mrb[68].mxu0 %vm1079_vm2, %v3345_v0  ;;  %v3314_v16 = vld [vmem:[#allocation3 + $0x170] sm:$0xff] }
 0x29c   : > { %3098 = vrot.lane.b32.xlu0 %v6247_v29, %s4824_s10  ;;  %3635 = vmatprep.mubr.f32.mxu1 %v3314_v16  ;;  %v2151_v5 = vpop.permute.xlu1 %2150 }
 0x29d   : > { %2229 = vst.msk [vmem:[#allocation3 + $0x1b0] sm:$0xff] %vm2210_vm5, %v2151_v5  ;;  %3636 = vmatmul.mubr.f32.gmra.mrb[50].mxu1 %v3313_v22  ;;  %v2887_v51 = vpop.permute.xlu0 %2886  ;;  %4618 = vmatprep.mubr.msk.f32.mxu0 %vm1079_vm2, %v3348_v18 }
 0x29e   : > { %1945 = vrot.lane.b32.xlu1 %v6154_v14, %s4822_s26 }
 0x29f   : > { %4619 = vmatmul.mubr.msk.f32.gmra.mrb[70].mxu0 %vm1079_vm2, %v3351_v27 }
 0x2a0   : > { %3096 = vrot.lane.b32.xlu0 %v6258_v25, %s4824_s10  ;;  %v2372_v38 = vpop.permute.xlu1 %2371  ;;  %4621 = vmatprep.mubr.msk.f32.mxu0 %vm1079_vm2, %v3354_v40 }
 0x2a1   : > { %2452 = vst.msk [vmem:[#allocation3 + $0x180] sm:$0xff] %vm2435_vm6, %v2372_v38  ;;  %v2665_v49 = vpop.permute.xlu0 %2664 }
 0x2a2   : > { %2742 = vst.msk [vmem:[#allocation3 + $0x1b8] sm:$0xff] %vm1985_vm4, %v2665_v49  ;;  %2170 = vrot.lane.b32.xlu1 %v6064_v45, %s4823_s29 }
 0x2a3   : > { %4622 = vmatmul.mubr.msk.f32.gmra.mrb[72].mxu0 %vm1079_vm2, %v3357_v26 }
 0x2a4   : > { %2906 = vrot.lane.b32.xlu0 %v6260_v37, %s4823_s29  ;;  %v2149_v14 = vpop.permute.xlu1 %2148 }
 0x2a5   : > { %2228 = vst.msk [vmem:[#allocation3 + $0x198] sm:$0xff] %vm2210_vm5, %v2149_v14  ;;  %v2885_v48 = vpop.permute.xlu0 %2884 }
 0x2a6   : > { %2453 = vst.msk [vmem:[#allocation3 + $0x198] sm:$0xff] %vm2435_vm6, %v2374_v52  ;;  %2391 = vrot.lane.b32.xlu1 %v6094_v34, %s4824_s10 }
 0x2a7   : > { %2964 = vst.msk [vmem:[#allocation3 + $0x188] sm:$0xff] %vm2210_vm5, %v2885_v48 }
 0x2a8   : > { %3156 = vst.msk [vmem:[#allocation3 + $0x188] sm:$0xff] %vm2435_vm6, %v3077_v59  ;;  %2684 = vrot.lane.b32.xlu0 %v6152_v33, %s4822_s26  ;;  %v1932_v45 = vpop.permute.xlu1 %1931  ;;  %v3316_v8 = vld [vmem:[#allocation3 + $0x180] sm:$0xff] }
 0x2a9   : > { %2007 = vst.msk [vmem:[#allocation3 + $0x1f8] sm:$0xff] %vm1985_vm4, %v1932_v45  ;;  %v2663_v20 = vpop.permute.xlu0 %2662 }
 0x2aa   : > { %2741 = vst.msk [vmem:[#allocation3 + $0x1a0] sm:$0xff] %vm1985_vm4, %v2663_v20  ;;  %2168 = vrot.lane.b32.xlu1 %v6099_v11, %s4823_s29 }
 0x2ab   : > { %2965 = vst.msk [vmem:[#allocation3 + $0x1a0] sm:$0xff] %vm2210_vm5, %v2887_v51 }
 0x2ac   : > { %3157 = vst.msk [vmem:[#allocation3 + $0x1a0] sm:$0xff] %vm2435_vm6, %v3079_v42  ;;  %2904 = vrot.lane.b32.xlu0 %v6179_v28, %s4823_s29  ;;  %v2378_v34 = vpop.permute.xlu1 %2377  ;;  %v3011_v42 = vld [vmem:[#allocation2 + $0x128] sm:$0xff] }
 0x2ad   : > { %v3083_v41 = vpop.permute.xlu0 %3082  ;;  %v3319_v6 = vld [vmem:[#allocation3 + $0x198] sm:$0xff] }
 0x2ae   : > { %2397 = vrot.lane.b32.xlu1 %v6260_v37, %s4824_s10 }
 0x2af   : > { %v3317_v30 = vld [vmem:[#allocation3 + $0x188] sm:$0xff] }
 0x2b0   : > { %3640 = vmatprep.mubr.f32.mxu1 %v3317_v30  ;;  %2682 = vrot.lane.b32.xlu0 %v6182_v21, %s4822_s26  ;;  %v1930_v11 = vpop.permute.xlu1 %1929 }
 0x2b1   : > { %3641 = vmatmul.mubr.f32.gmra.mrb[52].mxu1 %v3316_v8  ;;  %2006 = vst.msk [vmem:[#allocation3 + $0x1e0] sm:$0xff] %vm1985_vm4, %v1930_v11  ;;  %v3081_v54 = vpop.permute.xlu0 %3080 }
 0x2b2   : > { %1949 = vrot.lane.b32.xlu1 %v6258_v25, %s4822_s26 }
 0x2b3   : > { %v3320_v28 = vld [vmem:[#allocation3 + $0x1a0] sm:$0xff] }
 0x2b4   : > { %3102 = vrot.lane.b32.xlu0 %v6308_v9, %s4824_s10  ;;  %3645 = vmatprep.mubr.f32.mxu1 %v3320_v28  ;;  %v2155_v37 = vpop.permute.xlu1 %2154  ;;  %v2785_v9 = vld [vmem:[#allocation2 + $0x117] sm:$0xff] }
 0x2b5   : > { %2231 = vst.msk [vmem:[#allocation3 + $0x1e0] sm:$0xff] %vm2210_vm5, %v2155_v37  ;;  %3646 = vmatmul.mubr.f32.gmra.mrb[54].mxu1 %v3319_v6  ;;  %v2891_v1 = vpop.permute.xlu0 %2890 }
 0x2b6   : > { %2174 = vrot.lane.b32.xlu1 %v6152_v33, %s4823_s29  ;;  %v2786_v33 = vld [vmem:[#allocation2 + $0x11f] sm:$0xff] }
 0x2b7   : > { %v2818_v55 = vmul.f32 %v6162_v58, %v2786_v33 }
 0x2b8   : > { %3100 = vrot.lane.b32.xlu0 %v6316_v31, %s4824_s10  ;;  %v2376_v21 = vpop.permute.xlu1 %2375 }
 0x2b9   : > { %2454 = vst.msk [vmem:[#allocation3 + $0x1b0] sm:$0xff] %vm2435_vm6, %v2376_v21  ;;  %v2669_v25 = vpop.permute.xlu0 %2668 }
 0x2ba   : > { %2744 = vst.msk [vmem:[#allocation3 + $0x1e8] sm:$0xff] %vm1985_vm4, %v2669_v25  ;;  %2395 = vrot.lane.b32.xlu1 %v6185_v32, %s4824_s10 }
 0x2bc   : > { %2910 = vrot.lane.b32.xlu0 %v2785_v9, %s4823_s29  ;;  %v2153_v4 = vpop.permute.xlu1 %2152 }
 0x2bd   : > { %2230 = vst.msk [vmem:[#allocation3 + $0x1c8] sm:$0xff] %vm2210_vm5, %v2153_v4  ;;  %v2889_v44 = vpop.permute.xlu0 %2888 }
 0x2be   : > { %2455 = vst.msk [vmem:[#allocation3 + $0x1c8] sm:$0xff] %vm2435_vm6, %v2378_v34  ;;  %2172 = vrot.lane.b32.xlu1 %v6190_v50, %s4823_s29 }
 0x2bf   : > { %2966 = vst.msk [vmem:[#allocation3 + $0x1b8] sm:$0xff] %vm2210_vm5, %v2889_v44 }
 0x2c0   : > { %3158 = vst.msk [vmem:[#allocation3 + $0x1b8] sm:$0xff] %vm2435_vm6, %v3081_v54  ;;  %2688 = vrot.lane.b32.xlu0 %v6250_v35, %s4822_s26  ;;  %v1936_v32 = vpop.permute.xlu1 %1935  ;;  %v2305_v35 = vmul.f32 %v6162_v58, %v2273_v47  ;;  %v3322_v36 = vld [vmem:[#allocation3 + $0x1b0] sm:$0xff] }
 0x2c1   : > { %2009 = vst.msk [vmem:[#allocation3 + $0x228] sm:$0xff] %vm1985_vm4, %v1936_v32  ;;  %v2667_v31 = vpop.permute.xlu0 %2666 }
 0x2c2   : > { %2743 = vst.msk [vmem:[#allocation3 + $0x1d0] sm:$0xff] %vm1985_vm4, %v2667_v31  ;;  %1951 = vrot.lane.b32.xlu1 %v6247_v29, %s4822_s26  ;;  %v2816_v29 = vmul.f32 %v6074_v15, %v2273_v47  ;;  %v3360_v15 = vld [vmem:[#allocation3 + $0x2e0] sm:$0xff] }
 0x2c3   : > { %2967 = vst.msk [vmem:[#allocation3 + $0x1d0] sm:$0xff] %vm2210_vm5, %v2891_v1  ;;  %4624 = vmatprep.mubr.msk.f32.mxu0 %vm1079_vm2, %v3360_v15 }
 0x2c4   : > { %3159 = vst.msk [vmem:[#allocation3 + $0x1d0] sm:$0xff] %vm2435_vm6, %v3083_v41  ;;  %2912 = vrot.lane.b32.xlu0 %v2818_v55, %s4823_s29  ;;  %v2382_v50 = vpop.permute.xlu1 %2381  ;;  %4625 = vmatmul.mubr.msk.f32.gmra.mrb[74].mxu0 %vm1079_vm2, %v3363_v61 }
 0x2c5   : > { %v3087_v13 = vpop.permute.xlu0 %3086  ;;  %v3325_v43 = vld [vmem:[#allocation3 + $0x1c8] sm:$0xff] }
 0x2c6   : > { %2399 = vrot.lane.b32.xlu1 %v2305_v35, %s4824_s10 }
 0x2c7   : > { %v3323_v24 = vld [vmem:[#allocation3 + $0x1b8] sm:$0xff] }
 0x2c8   : > { %3650 = vmatprep.mubr.f32.mxu1 %v3323_v24  ;;  %2908 = vrot.lane.b32.xlu0 %v2816_v29, %s4823_s29  ;;  %v1934_v57 = vpop.permute.xlu1 %1933 }
 0x2c9   : > { %3651 = vmatmul.mubr.f32.gmra.mrb[56].mxu1 %v3322_v36  ;;  %2008 = vst.msk [vmem:[#allocation3 + $0x210] sm:$0xff] %vm1985_vm4, %v1934_v57  ;;  %v3085_v56 = vpop.permute.xlu0 %3084 }
 0x2ca   : > { %2176 = vrot.lane.b32.xlu1 %v6266_v46, %s4823_s29 }
 0x2cb   : > { %v3326_v58 = vld [vmem:[#allocation3 + $0x1d0] sm:$0xff] }
 0x2cc   : > { %2686 = vrot.lane.b32.xlu0 %v6269_v10, %s4822_s26  ;;  %3655 = vmatprep.mubr.f32.mxu1 %v3326_v58  ;;  %v2159_v53 = vpop.permute.xlu1 %2158 }
 0x2cd   : > { %2233 = vst.msk [vmem:[#allocation3 + $0x210] sm:$0xff] %vm2210_vm5, %v2159_v53  ;;  %3656 = vmatmul.mubr.f32.gmra.mrb[58].mxu1 %v3325_v43  ;;  %v2895_v7 = vpop.permute.xlu0 %2894 }
 0x2ce   : > { %2401 = vrot.lane.b32.xlu1 %v2785_v9, %s4824_s10 }
 0x2d0   : > { %2690 = vrot.lane.b32.xlu0 %v6321_v12, %s4822_s26  ;;  %v2380_v46 = vpop.permute.xlu1 %2379 }
 0x2d1   : > { %2456 = vst.msk [vmem:[#allocation3 + $0x1e0] sm:$0xff] %vm2435_vm6, %v2380_v46  ;;  %v2673_v10 = vpop.permute.xlu0 %2672 }
 0x2d2   : > { %2746 = vst.msk [vmem:[#allocation3 + $0x218] sm:$0xff] %vm1985_vm4, %v2673_v10 }
 0x2d4   : > { %2914 = vrot.lane.b32.xlu0 %v2787_v62, %s4823_s29  ;;  %v2157_v3 = vpop.permute.xlu1 %2156 }
 0x2d5   : > { %2232 = vst.msk [vmem:[#allocation3 + $0x1f8] sm:$0xff] %vm2210_vm5, %v2157_v3  ;;  %v2893_v52 = vpop.permute.xlu0 %2892 }
 0x2d6   : > { %2457 = vst.msk [vmem:[#allocation3 + $0x1f8] sm:$0xff] %vm2435_vm6, %v2382_v50 }
 0x2d7   : > { %2968 = vst.msk [vmem:[#allocation3 + $0x1e8] sm:$0xff] %vm2210_vm5, %v2893_v52 }
 0x2d8   : > { %3160 = vst.msk [vmem:[#allocation3 + $0x1e8] sm:$0xff] %vm2435_vm6, %v3085_v56  ;;  %3106 = vrot.lane.b32.xlu0 %v3011_v42, %s4824_s10  ;;  %v1940_v12 = vpop.permute.xlu1 %1939  ;;  %v3328_v63 = vld [vmem:[#allocation3 + $0x1e0] sm:$0xff] }
 0x2d9   : > { %2011 = vst.msk [vmem:[#allocation3 + $0x258] sm:$0xff] %vm1985_vm4, %v1940_v12  ;;  %v2671_v39 = vpop.permute.xlu0 %2670 }
 0x2da   : > { %2745 = vst.msk [vmem:[#allocation3 + $0x200] sm:$0xff] %vm1985_vm4, %v2671_v39 }
 0x2db   : > { %2969 = vst.msk [vmem:[#allocation3 + $0x200] sm:$0xff] %vm2210_vm5, %v2895_v7 }
 0x2dc   : > { %3161 = vst.msk [vmem:[#allocation3 + $0x200] sm:$0xff] %vm2435_vm6, %v3087_v13  ;;  %v2386_v60 = vpop.permute.xlu1 %2385 }
 0x2dd   : > { %v3331_v27 = vld [vmem:[#allocation3 + $0x1f8] sm:$0xff] }
 0x2de   : > { %v3091_v23 = vpop.permute.xlu0 %3090 }
 0x2df   : > { %v3329_v2 = vld [vmem:[#allocation3 + $0x1e8] sm:$0xff] }
 0x2e0   : > { %3660 = vmatprep.mubr.f32.mxu1 %v3329_v2  ;;  %v1938_v59 = vpop.permute.xlu1 %1937 }
 0x2e1   : > { %3661 = vmatmul.mubr.f32.gmra.mrb[60].mxu1 %v3328_v63  ;;  %2010 = vst.msk [vmem:[#allocation3 + $0x240] sm:$0xff] %vm1985_vm4, %v1938_v59 }
 0x2e2   : > { %v3089_v0 = vpop.permute.xlu0 %3088  ;;  %v6598_v18 = vpop.f32.mrb[32].mxu0 }
 0x2e3   : > { %v3564_v16 = vpop.f32.mrb[33].mxu0  ;;  %v3332_v5 = vld [vmem:[#allocation3 + $0x200] sm:$0xff] }
 0x2e4   : > { %3665 = vmatprep.mubr.f32.mxu1 %v3332_v5  ;;  %v2163_v22 = vpop.permute.xlu1 %2162 }
 0x2e5   : > { %2235 = vst.msk [vmem:[#allocation3 + $0x240] sm:$0xff] %vm2210_vm5, %v2163_v22  ;;  %3666 = vmatmul.mubr.f32.gmra.mrb[62].mxu1 %v3331_v27 }
 0x2e6   : > { %v2899_v51 = vpop.permute.xlu0 %2898  ;;  %v6601_v40 = vpop.f32.mrb[34].mxu0 }
 0x2e7   : > { %v3569_v38 = vpop.f32.mrb[35].mxu0 }
 0x2e8   : > { %v2384_v26 = vpop.permute.xlu1 %2383 }
 0x2e9   : > { %2458 = vst.msk [vmem:[#allocation3 + $0x210] sm:$0xff] %vm2435_vm6, %v2384_v26 }
 0x2ea   : > { %v2677_v49 = vpop.permute.xlu0 %2676 }
 0x2eb   : > { %2748 = vst.msk [vmem:[#allocation3 + $0x248] sm:$0xff] %vm1985_vm4, %v2677_v49 }
 0x2ec   : > { %v2161_v14 = vpop.permute.xlu1 %2160 }
 0x2ed   : > { %2234 = vst.msk [vmem:[#allocation3 + $0x228] sm:$0xff] %vm2210_vm5, %v2161_v14 }
 0x2ee   : > { %2459 = vst.msk [vmem:[#allocation3 + $0x228] sm:$0xff] %vm2435_vm6, %v2386_v60  ;;  %v2897_v48 = vpop.permute.xlu0 %2896 }
 0x2ef   : > { %2970 = vst.msk [vmem:[#allocation3 + $0x218] sm:$0xff] %vm2210_vm5, %v2897_v48 }
 0x2f0   : > { %3162 = vst.msk [vmem:[#allocation3 + $0x218] sm:$0xff] %vm2435_vm6, %v3089_v0  ;;  %v1944_v45 = vpop.permute.xlu1 %1943  ;;  %v3334_v8 = vld [vmem:[#allocation3 + $0x210] sm:$0xff] }
 0x2f1   : > { %2013 = vst.msk [vmem:[#allocation3 + $0x288] sm:$0xff] %vm1985_vm4, %v1944_v45 }
 0x2f2   : > { %v2675_v20 = vpop.permute.xlu0 %2674 }
 0x2f3   : > { %2747 = vst.msk [vmem:[#allocation3 + $0x230] sm:$0xff] %vm1985_vm4, %v2675_v20 }
 0x2f4   : > { %2971 = vst.msk [vmem:[#allocation3 + $0x230] sm:$0xff] %vm2210_vm5, %v2899_v51  ;;  %v2390_v34 = vpop.permute.xlu1 %2389 }
 0x2f5   : > { %3163 = vst.msk [vmem:[#allocation3 + $0x230] sm:$0xff] %vm2435_vm6, %v3091_v23  ;;  %v3337_v6 = vld [vmem:[#allocation3 + $0x228] sm:$0xff] }
 0x2f6   : > { %v3095_v41 = vpop.permute.xlu0 %3094 }
 0x2f7   : > { %v3335_v30 = vld [vmem:[#allocation3 + $0x218] sm:$0xff] }
 0x2f8   : > { %3670 = vmatprep.mubr.f32.mxu1 %v3335_v30  ;;  %v1942_v11 = vpop.permute.xlu1 %1941 }
 0x2f9   : > { %3671 = vmatmul.mubr.f32.gmra.mrb[64].mxu1 %v3334_v8  ;;  %2012 = vst.msk [vmem:[#allocation3 + $0x270] sm:$0xff] %vm1985_vm4, %v1942_v11  ;;  %v6668_v8 = vld [vmem:[%s6856_s7] ss:$0 sm:$0xff] }
 0x2fa   : > { %v3093_v54 = vpop.permute.xlu0 %3092 }
 0x2fc   : > { %v3338_v28 = vld [vmem:[#allocation3 + $0x230] sm:$0xff]  ;;  %v2167_v37 = vpop.permute.xlu1 %2166 }
 0x2fd   : > { %3675 = vmatprep.mubr.f32.mxu1 %v3338_v28  ;;  %2237 = vst.msk [vmem:[#allocation3 + $0x270] sm:$0xff] %vm2210_vm5, %v2167_v37 }
 0x2fe   : > { %3676 = vmatmul.mubr.f32.gmra.mrb[66].mxu1 %v3337_v6  ;;  %v2903_v1 = vpop.permute.xlu0 %2902 }
 0x300   : > { %v2388_v21 = vpop.permute.xlu1 %2387 }
 0x301   : > { %2460 = vst.msk [vmem:[#allocation3 + $0x240] sm:$0xff] %vm2435_vm6, %v2388_v21 }
 0x302   : > { %v2681_v25 = vpop.permute.xlu0 %2680 }
 0x303   : > { %2750 = vst.msk [vmem:[#allocation3 + $0x278] sm:$0xff] %vm1985_vm4, %v2681_v25 }
 0x304   : > { %v2165_v9 = vpop.permute.xlu1 %2164 }
 0x305   : > { %2236 = vst.msk [vmem:[#allocation3 + $0x258] sm:$0xff] %vm2210_vm5, %v2165_v9 }
 0x306   : > { %2461 = vst.msk [vmem:[#allocation3 + $0x258] sm:$0xff] %vm2435_vm6, %v2390_v34  ;;  %v2901_v4 = vpop.permute.xlu0 %2900  ;;  %v6619_v44 = vpop.f32.mrb[36].mxu0 }
 0x307   : > { %2972 = vst.msk [vmem:[#allocation3 + $0x248] sm:$0xff] %vm2210_vm5, %v2901_v4  ;;  %v3574_v33 = vpop.f32.mrb[37].mxu0 }
 0x308   : > { %3164 = vst.msk [vmem:[#allocation3 + $0x248] sm:$0xff] %vm2435_vm6, %v3093_v54  ;;  %v1948_v32 = vpop.permute.xlu1 %1947  ;;  %v3340_v13 = vld [vmem:[#allocation3 + $0x240] sm:$0xff] }
 0x309   : > { %2015 = vst.msk [vmem:[#allocation3 + $0x2b8] sm:$0xff] %vm1985_vm4, %v1948_v32 }
 0x30a   : > { %v2679_v31 = vpop.permute.xlu0 %2678  ;;  %v6624_v47 = vpop.f32.mrb[38].mxu0 }
 0x30b   : > { %2749 = vst.msk [vmem:[#allocation3 + $0x260] sm:$0xff] %vm1985_vm4, %v2679_v31  ;;  %v3579_v55 = vpop.f32.mrb[39].mxu0 }
 0x30c   : > { %2973 = vst.msk [vmem:[#allocation3 + $0x260] sm:$0xff] %vm2210_vm5, %v2903_v1  ;;  %v2394_v50 = vpop.permute.xlu1 %2393 }
 0x30d   : > { %3165 = vst.msk [vmem:[#allocation3 + $0x260] sm:$0xff] %vm2435_vm6, %v3095_v41  ;;  %v3343_v56 = vld [vmem:[#allocation3 + $0x258] sm:$0xff] }
 0x30e   : > { %v3099_v35 = vpop.permute.xlu0 %3098 }
 0x30f   : > { %v3341_v19 = vld [vmem:[#allocation3 + $0x248] sm:$0xff] }
 0x310   : > { %3680 = vmatprep.mubr.f32.mxu1 %v3341_v19  ;;  %v1946_v24 = vpop.permute.xlu1 %1945 }
 0x311   : > { %3681 = vmatmul.mubr.f32.gmra.mrb[68].mxu1 %v3340_v13  ;;  %2014 = vst.msk [vmem:[#allocation3 + $0x2a0] sm:$0xff] %vm1985_vm4, %v1946_v24 }
 0x312   : > { %v3097_v29 = vpop.permute.xlu0 %3096 }
 0x314   : > { %v3344_v36 = vld [vmem:[#allocation3 + $0x260] sm:$0xff]  ;;  %v2171_v57 = vpop.permute.xlu1 %2170 }
 0x315   : > { %3685 = vmatprep.mubr.f32.mxu1 %v3344_v36  ;;  %2239 = vst.msk [vmem:[#allocation3 + $0x2a0] sm:$0xff] %vm2210_vm5, %v2171_v57 }
 0x316   : > { %3686 = vmatmul.mubr.f32.gmra.mrb[70].mxu1 %v3343_v56  ;;  %v2907_v58 = vpop.permute.xlu0 %2906 }
 0x318   : > { %v2392_v53 = vpop.permute.xlu1 %2391 }
 0x319   : > { %2462 = vst.msk [vmem:[#allocation3 + $0x270] sm:$0xff] %vm2435_vm6, %v2392_v53 }
 0x31a   : > { %v2685_v43 = vpop.permute.xlu0 %2684 }
 0x31b   : > { %2752 = vst.msk [vmem:[#allocation3 + $0x2a8] sm:$0xff] %vm1985_vm4, %v2685_v43 }
 0x31c   : > { %v2169_v15 = vpop.permute.xlu1 %2168 }
 0x31d   : > { %2238 = vst.msk [vmem:[#allocation3 + $0x288] sm:$0xff] %vm2210_vm5, %v2169_v15 }
 0x31e   : > { %2463 = vst.msk [vmem:[#allocation3 + $0x288] sm:$0xff] %vm2435_vm6, %v2394_v50  ;;  %v2905_v7 = vpop.permute.xlu0 %2904 }
 0x31f   : > { %2974 = vst.msk [vmem:[#allocation3 + $0x278] sm:$0xff] %vm2210_vm5, %v2905_v7 }
 0x320   : > { %3166 = vst.msk [vmem:[#allocation3 + $0x278] sm:$0xff] %vm2435_vm6, %v3097_v29  ;;  %v2398_v61 = vpop.permute.xlu1 %2397  ;;  %v3346_v52 = vld [vmem:[#allocation3 + $0x270] sm:$0xff] }
 0x322   : > { %v2683_v46 = vpop.permute.xlu0 %2682 }
 0x323   : > { %2751 = vst.msk [vmem:[#allocation3 + $0x290] sm:$0xff] %vm1985_vm4, %v2683_v46 }
 0x324   : > { %2975 = vst.msk [vmem:[#allocation3 + $0x290] sm:$0xff] %vm2210_vm5, %v2907_v58  ;;  %v1950_v10 = vpop.permute.xlu1 %1949 }
 0x325   : > { %3167 = vst.msk [vmem:[#allocation3 + $0x290] sm:$0xff] %vm2435_vm6, %v3099_v35  ;;  %v3349_v23 = vld [vmem:[#allocation3 + $0x288] sm:$0xff] }
 0x326   : > { %2016 = vst.msk [vmem:[#allocation3 + $0x2d0] sm:$0xff] %vm1985_vm4, %v1950_v10  ;;  %v3103_v62 = vpop.permute.xlu0 %3102 }
 0x327   : > { %v3347_v3 = vld [vmem:[#allocation3 + $0x278] sm:$0xff] }
 0x328   : > { %3690 = vmatprep.mubr.f32.mxu1 %v3347_v3  ;;  %v2175_v42 = vpop.permute.xlu1 %2174 }
 0x329   : > { %3691 = vmatmul.mubr.f32.gmra.mrb[72].mxu1 %v3346_v52  ;;  %2241 = vst.msk [vmem:[#allocation3 + $0x2d0] sm:$0xff] %vm2210_vm5, %v2175_v42 }
 0x32a   : > { %v3101_v12 = vpop.permute.xlu0 %3100 }
 0x32c   : > { %v3350_v39 = vld [vmem:[#allocation3 + $0x290] sm:$0xff]  ;;  %v2396_v60 = vpop.permute.xlu1 %2395 }
 0x32d   : > { %3695 = vmatprep.mubr.f32.mxu1 %v3350_v39  ;;  %2464 = vst.msk [vmem:[#allocation3 + $0x2a0] sm:$0xff] %vm2435_vm6, %v2396_v60 }
 0x32e   : > { %3696 = vmatmul.mubr.f32.gmra.mrb[74].mxu1 %v3349_v23  ;;  %v2911_v2 = vpop.permute.xlu0 %2910 }
 0x330   : > { %v2173_v63 = vpop.permute.xlu1 %2172 }
 0x331   : > { %2240 = vst.msk [vmem:[#allocation3 + $0x2b8] sm:$0xff] %vm2210_vm5, %v2173_v63 }
 0x332   : > { %2465 = vst.msk [vmem:[#allocation3 + $0x2b8] sm:$0xff] %vm2435_vm6, %v2398_v61  ;;  %v2689_v59 = vpop.permute.xlu0 %2688 }
 0x333   : > { %2754 = vst.msk [vmem:[#allocation3 + $0x2d8] sm:$0xff] %vm1985_vm4, %v2689_v59 }
 0x334   : > { %v1952_v0 = vpop.permute.xlu1 %1951  ;;  %v3352_v4 = vld [vmem:[#allocation3 + $0x2a0] sm:$0xff] }
 0x335   : > { %2017 = vst.msk [vmem:[#allocation3 + $0x2e8] sm:$0xff] %vm1985_vm4, %v1952_v0 }
 0x336   : > { %v2913_v16 = vpop.permute.xlu0 %2912  ;;  %v3582_v5 = vpop.f32.mrb[40].mxu0 }
 0x337   : > { %2978 = vst.msk [vmem:[#allocation3 + $0x2d8] sm:$0xff] %vm2210_vm5, %v2913_v16  ;;  %v3584_v22 = vpop.f32.mrb[41].mxu0 }
 0x338   : > { %3170 = vst.msk [vmem:[#allocation3 + $0x2d8] sm:$0xff] %vm2435_vm6, %v5972_v17  ;;  %v2400_v27 = vpop.permute.xlu1 %2399  ;;  %v6660_v17 = vld [vmem:[%s6855_s6] ss:$0 sm:$0xff] }
 0x339   : > { %2466 = vst.msk [vmem:[#allocation3 + $0x2d0] sm:$0xff] %vm2435_vm6, %v2400_v27  ;;  %v3355_v15 = vld [vmem:[#allocation3 + $0x2b8] sm:$0xff] }
 0x33a   : > { %v2909_v51 = vpop.permute.xlu0 %2908  ;;  %v3587_v38 = vpop.f32.mrb[42].mxu0 }
 0x33b   : > { %2976 = vst.msk [vmem:[#allocation3 + $0x2a8] sm:$0xff] %vm2210_vm5, %v2909_v51  ;;  %v3589_v26 = vpop.f32.mrb[43].mxu0 }
 0x33c   : > { %3168 = vst.msk [vmem:[#allocation3 + $0x2a8] sm:$0xff] %vm2435_vm6, %v3101_v12  ;;  %v2177_v49 = vpop.permute.xlu1 %2176 }
 0x33d   : > { %2242 = vst.msk [vmem:[#allocation3 + $0x2e8] sm:$0xff] %vm2210_vm5, %v2177_v49 }
 0x33e   : > { %v2687_v14 = vpop.permute.xlu0 %2686  ;;  %v6654_v48 = vpop.f32.mrb[32].mxu1 }
 0x33f   : > { %2753 = vst.msk [vmem:[#allocation3 + $0x2c0] sm:$0xff] %vm1985_vm4, %v2687_v14  ;;  %v4581_v45 = vpop.f32.mrb[44].mxu0  ;;  %v3594_v20 = vpop.f32.mrb[33].mxu1 }
 0x340   : > { %2977 = vst.msk [vmem:[#allocation3 + $0x2c0] sm:$0xff] %vm2210_vm5, %v2911_v2  ;;  %v3793_v34 = vadd.f32 %v4581_v45, %v6601_v40  ;;  %v3787_v41 = vpop.f32.mrb[45].mxu0  ;;  %v2402_v30 = vpop.permute.xlu1 %2401  ;;  %v3358_v16 = vld [vmem:[#allocation3 + $0x2d0] sm:$0xff] }
 0x341   : > { %3169 = vst.msk [vmem:[#allocation3 + $0x2c0] sm:$0xff] %vm2435_vm6, %v3103_v62  ;;  %v3788_v11 = vadd.f32 %v3787_v41, %v6598_v18  ;;  %2467 = vst.msk [vmem:[#allocation3 + $0x2e8] sm:$0xff] %vm2435_vm6, %v2402_v30  ;;  %v3359_v62 = vld [vmem:[#allocation3 + $0x2d8] sm:$0xff] }
 0x342   : > { %v3954_v54 = vmul.f32 %v6660_v17, %v3793_v34  ;;  %v2691_v28 = vpop.permute.xlu0 %2690  ;;  %v3597_v37 = vpop.f32.mrb[34].mxu1 }
 0x343   : > { %v3953_v6 = vmul.f32 %v6660_v17, %v3788_v11  ;;  %2755 = vst.msk [vmem:[#allocation3 + $0x2f0] sm:$0xff] %vm1985_vm4, %v2691_v28  ;;  %v4584_v40 = vpop.f32.mrb[46].mxu0  ;;  %v3599_v1 = vpop.f32.mrb[35].mxu1  ;;  %v3353_v21 = vld [vmem:[#allocation3 + $0x2a8] sm:$0xff] }
 0x344   : > { %v3993_v25 = vadd.f32 %v6668_v8, %v3954_v54  ;;  %v3803_v9 = vadd.f32 %v4584_v40, %v6624_v47  ;;  %3700 = vmatprep.mubr.f32.mxu1 %v3353_v21  ;;  %v3797_v18 = vpop.f32.mrb[47].mxu0 }
 0x345   : > { %v3992_v33 = vadd.f32 %v6668_v8, %v3953_v6  ;;  %v3798_v32 = vadd.f32 %v3797_v18, %v6619_v44  ;;  %3701 = vmatmul.mubr.f32.gmra.mrb[76].mxu1 %v3352_v4 }
 0x346   : > { %v4025_v31 = vmax.f32 %v3993_v25, 0.0  ;;  %v3956_v55 = vmul.f32 %v6660_v17, %v3803_v9  ;;  %v2915_v50 = vpop.permute.xlu0 %2914  ;;  %v3602_v35 = vpop.f32.mrb[36].mxu1 }
 0x347   : > { %v4024_v47 = vmax.f32 %v3992_v33, 0.0  ;;  %v3955_v19 = vmul.f32 %v6660_v17, %v3798_v32  ;;  %2979 = vst.msk [vmem:[#allocation3 + $0x2f0] sm:$0xff] %vm2210_vm5, %v2915_v50  ;;  %v4587_v13 = vpop.f32.mrb[48].mxu0  ;;  %v3604_v44 = vpop.f32.mrb[37].mxu1 }
 0x348   : > { %v4057_v24 = vmin.f32 %v4025_v31, 6.0  ;;  %v3995_v29 = vadd.f32 %v6668_v8, %v3956_v55  ;;  %v3813_v36 = vadd.f32 %v4587_v13, %v3587_v38  ;;  %v3807_v57 = vpop.f32.mrb[49].mxu0  ;;  %v3356_v56 = vld [vmem:[#allocation3 + $0x2c0] sm:$0xff]  ;;  %v3361_v18 = vld [vmem:[#allocation3 + $0x2e8] sm:$0xff] }
 0x349   : > { %v4056_v58 = vmin.f32 %v4024_v47, 6.0  ;;  %v3994_v53 = vadd.f32 %v6668_v8, %v3955_v19  ;;  %v3808_v43 = vadd.f32 %v3807_v57, %v3582_v5  ;;  %3705 = vmatprep.mubr.f32.mxu1 %v3356_v56 }
 0x34a   : > { %4089 = vst.msk [vmem:[%s6685_s30 + $0x8] sm:$0xff] %vm1079_vm2, %v4057_v24  ;;  %v4027_v7 = vmax.f32 %v3995_v29, 0.0  ;;  %v3958_v61 = vmul.f32 %v6660_v17, %v3813_v36  ;;  %3706 = vmatmul.mubr.f32.gmra.mrb[78].mxu1 %v3355_v15  ;;  %v3107_v46 = vpop.permute.xlu0 %3106  ;;  %v3607_v10 = vpop.f32.mrb[38].mxu1 }
 0x34b   : > { %4088 = vst.msk [vmem:[%s6685_s30] sm:$0xff] %vm1079_vm2, %v4056_v58  ;;  %v4026_v3 = vmax.f32 %v3994_v53, 0.0  ;;  %v3957_v52 = vmul.f32 %v6660_v17, %v3808_v43  ;;  %3710 = vmatprep.mubr.f32.mxu1 %v3359_v62  ;;  %v4590_v42 = vpop.f32.mrb[50].mxu0  ;;  %v3609_v12 = vpop.f32.mrb[39].mxu1 }
 0x34c   : > { %3171 = vst.msk [vmem:[#allocation3 + $0x2f0] sm:$0xff] %vm2435_vm6, %v3107_v46  ;;  %v4059_v39 = vmin.f32 %v4027_v7, 6.0  ;;  %v3997_v60 = vadd.f32 %v6668_v8, %v3958_v61  ;;  %v3823_v23 = vadd.f32 %v4590_v42, %v3597_v37  ;;  %v3817_v2 = vpop.f32.mrb[51].mxu0 }
 0x34d   : > { %v4058_v63 = vmin.f32 %v4026_v3, 6.0  ;;  %v3996_v59 = vadd.f32 %v6668_v8, %v3957_v52  ;;  %v3818_v0 = vadd.f32 %v3817_v2, %v6654_v48 }
 0x34e   : > { %4091 = vst.msk [vmem:[%s6685_s30 + $0x18] sm:$0xff] %vm1079_vm2, %v4059_v39  ;;  %v4029_v5 = vmax.f32 %v3997_v60, 0.0  ;;  %v3960_v22 = vmul.f32 %v6660_v17, %v3823_v23  ;;  %3711 = vmatmul.mubr.f32.gmra.mrb[80].mxu1 %v3358_v16  ;;  %v3612_v27 = vpop.f32.mrb[40].mxu1  ;;  %v4593_v51 = vpop.f32.mrb[52].mxu0 }
 0x34f   : > { %4090 = vst.msk [vmem:[%s6685_s30 + $0x10] sm:$0xff] %vm1079_vm2, %v4058_v63  ;;  %v4028_v38 = vmax.f32 %v3996_v59, 0.0  ;;  %v3959_v26 = vmul.f32 %v6660_v17, %v3818_v0  ;;  %v3833_v49 = vadd.f32 %v4593_v51, %v3607_v10  ;;  %v3614_v14 = vpop.f32.mrb[41].mxu1  ;;  %v3827_v45 = vpop.f32.mrb[53].mxu0 }
 0x350   : > { %v4061_v48 = vmin.f32 %v4029_v5, 6.0  ;;  %v3999_v20 = vadd.f32 %v6668_v8, %v3960_v22  ;;  %v3828_v34 = vadd.f32 %v3827_v45, %v3602_v35 }
 0x351   : > { %v4060_v41 = vmin.f32 %v4028_v38, 6.0  ;;  %v3998_v30 = vadd.f32 %v6668_v8, %v3959_v26  ;;  %v3962_v11 = vmul.f32 %v6660_v17, %v3833_v49 }
 0x352   : > { %4093 = vst.msk [vmem:[%s6685_s30 + $0x28] sm:$0xff] %vm1079_vm2, %v4061_v48  ;;  %v4031_v54 = vmax.f32 %v3999_v20, 0.0  ;;  %v3961_v28 = vmul.f32 %v6660_v17, %v3828_v34  ;;  %v3617_v37 = vpop.f32.mrb[42].mxu1  ;;  %v4596_v40 = vpop.f32.mrb[54].mxu0 }
 0x353   : > { %v3362_v6 = vld [vmem:[#allocation3 + $0x2f0] sm:$0xff]  ;;  %4092 = vst.msk [vmem:[%s6685_s30 + $0x20] sm:$0xff] %vm1079_vm2, %v4060_v41  ;;  %v4030_v1 = vmax.f32 %v3998_v30, 0.0  ;;  %v4001_v21 = vadd.f32 %v6668_v8, %v3962_v11  ;;  %v3843_v25 = vadd.f32 %v4596_v40, %v3617_v37  ;;  %v3619_v9 = vpop.f32.mrb[43].mxu1  ;;  %v3837_v4 = vpop.f32.mrb[55].mxu0 }
 0x354   : > { %3715 = vmatprep.mubr.f32.mxu1 %v3362_v6  ;;  %v4063_v33 = vmin.f32 %v4031_v54, 6.0  ;;  %v4000_v32 = vadd.f32 %v6668_v8, %v3961_v28  ;;  %v3838_v31 = vadd.f32 %v3837_v4, %v3612_v27 }
 0x355   : > { %3716 = vmatmul.mubr.f32.gmra.mrb[82].mxu1 %v3361_v18  ;;  %v4062_v55 = vmin.f32 %v4030_v1, 6.0  ;;  %v4033_v50 = vmax.f32 %v4001_v21, 0.0  ;;  %v3964_v35 = vmul.f32 %v6660_v17, %v3843_v25 }
 0x356   : > { %4095 = vst.msk [vmem:[%s6685_s30 + $0x38] sm:$0xff] %vm1079_vm2, %v4063_v33  ;;  %v4032_v47 = vmax.f32 %v4000_v32, 0.0  ;;  %v3963_v19 = vmul.f32 %v6660_v17, %v3838_v31  ;;  %v3622_v13 = vpop.f32.mrb[44].mxu1  ;;  %v4599_v44 = vpop.f32.mrb[56].mxu0 }
 0x357   : > { %4094 = vst.msk [vmem:[%s6685_s30 + $0x30] sm:$0xff] %vm1079_vm2, %v4062_v55  ;;  %v4065_v24 = vmin.f32 %v4033_v50, 6.0  ;;  %v4003_v29 = vadd.f32 %v6668_v8, %v3964_v35  ;;  %v3624_v36 = vpop.f32.mrb[45].mxu1  ;;  %v3847_v57 = vpop.f32.mrb[57].mxu0 }
 0x358   : > { %v4064_v56 = vmin.f32 %v4032_v47, 6.0  ;;  %v4002_v58 = vadd.f32 %v6668_v8, %v3963_v19  ;;  %v3848_v53 = vadd.f32 %v3847_v57, %v3622_v13 }
 0x359   : > { %4097 = vst.msk [vmem:[%s6685_s30 + $0x48] sm:$0xff] %vm1079_vm2, %v4065_v24  ;;  %v4035_v43 = vmax.f32 %v4003_v29, 0.0 }
 0x35a   : > { %4096 = vst.msk [vmem:[%s6685_s30 + $0x40] sm:$0xff] %vm1079_vm2, %v4064_v56  ;;  %v4034_v15 = vmax.f32 %v4002_v58, 0.0  ;;  %v3965_v7 = vmul.f32 %v6660_v17, %v3848_v53  ;;  %v3627_v61 = vpop.f32.mrb[46].mxu1  ;;  %v4602_v46 = vpop.f32.mrb[58].mxu0 }
 0x35b   : > { %v4067_v10 = vmin.f32 %v4035_v43, 6.0  ;;  %v3853_v62 = vadd.f32 %v4599_v44, %v3627_v61  ;;  %v3629_v3 = vpop.f32.mrb[47].mxu1  ;;  %v3857_v52 = vpop.f32.mrb[59].mxu0 }
 0x35c   : > { %v4066_v42 = vmin.f32 %v4034_v15, 6.0  ;;  %v4004_v12 = vadd.f32 %v6668_v8, %v3965_v7 }
 0x35d   : > { %4099 = vst.msk [vmem:[%s6685_s30 + $0x58] sm:$0xff] %vm1079_vm2, %v4067_v10  ;;  %v3966_v39 = vmul.f32 %v6660_v17, %v3853_v62 }
 0x35e   : > { %4098 = vst.msk [vmem:[%s6685_s30 + $0x50] sm:$0xff] %vm1079_vm2, %v4066_v42  ;;  %v4036_v60 = vmax.f32 %v4004_v12, 0.0  ;;  %v4605_v23 = vpop.f32.mrb[60].mxu0 }
 0x35f   : > { %v4005_v2 = vadd.f32 %v6668_v8, %v3966_v39  ;;  %v3867_v63 = vpop.f32.mrb[61].mxu0 }
 0x360   : > { %v4068_v59 = vmin.f32 %v4036_v60, 6.0 }
 0x361   : > { %v4037_v0 = vmax.f32 %v4005_v2, 0.0 }
 0x362   : > { %4100 = vst.msk [vmem:[%s6685_s30 + $0x60] sm:$0xff] %vm1079_vm2, %v4068_v59  ;;  %v4608_v16 = vpop.f32.mrb[62].mxu0 }
 0x363   : > { %v4069_v5 = vmin.f32 %v4037_v0, 6.0  ;;  %v3877_v22 = vpop.f32.mrb[63].mxu0 }
 0x365   : > { %4101 = vst.msk [vmem:[%s6685_s30 + $0x68] sm:$0xff] %vm1079_vm2, %v4069_v5 }
 0x366   : > { %v6741_v27 = vpop.f32.mrb[64].mxu0 }
 0x367   : > { %v3887_v51 = vpop.f32.mrb[65].mxu0 }
 0x36a   : > { %v6743_v38 = vpop.f32.mrb[66].mxu0 }
 0x36b   : > { %v3632_v26 = vpop.f32.mrb[48].mxu1  ;;  %v6745_v49 = vpop.f32.mrb[67].mxu0 }
 0x36c   : > { %v3858_v14 = vadd.f32 %v3857_v52, %v3632_v26  ;;  %v3634_v45 = vpop.f32.mrb[49].mxu1 }
 0x36e   : > { %v3967_v48 = vmul.f32 %v6660_v17, %v3858_v14  ;;  %v6748_v20 = vpop.f32.mrb[68].mxu0 }
 0x36f   : > { %v6750_v34 = vpop.f32.mrb[69].mxu0 }
 0x370   : > { %v4006_v41 = vadd.f32 %v6668_v8, %v3967_v48  ;;  %v3637_v30 = vpop.f32.mrb[50].mxu1 }
 0x371   : > { %v3863_v11 = vadd.f32 %v4602_v46, %v3637_v30  ;;  %v3639_v54 = vpop.f32.mrb[51].mxu1 }
 0x372   : > { %v4038_v28 = vmax.f32 %v4006_v41, 0.0  ;;  %v6753_v37 = vpop.f32.mrb[70].mxu0 }
 0x373   : > { %v3968_v6 = vmul.f32 %v6660_v17, %v3863_v11  ;;  %v6756_v40 = vpop.f32.mrb[71].mxu0 }
 0x374   : > { %v4070_v1 = vmin.f32 %v4038_v28, 6.0 }
 0x375   : > { %v4007_v21 = vadd.f32 %v6668_v8, %v3968_v6 }
 0x376   : > { %4102 = vst.msk [vmem:[%s6685_s30 + $0x70] sm:$0xff] %vm1079_vm2, %v4070_v1  ;;  %v6761_v25 = vpop.f32.mrb[72].mxu0 }
 0x377   : > { %v4039_v9 = vmax.f32 %v4007_v21, 0.0  ;;  %v6763_v18 = vpop.f32.mrb[73].mxu0 }
 0x379   : > { %v4071_v4 = vmin.f32 %v4039_v9, 6.0 }
 0x37b   : > { %4103 = vst.msk [vmem:[%s6685_s30 + $0x78] sm:$0xff] %vm1079_vm2, %v4071_v4 }
 0x384   : > { %v3642_v33 = vpop.f32.mrb[52].mxu1 }
 0x385   : > { %v3868_v32 = vadd.f32 %v3867_v63, %v3642_v33  ;;  %v3644_v31 = vpop.f32.mrb[53].mxu1 }
 0x387   : > { %v3969_v55 = vmul.f32 %v6660_v17, %v3868_v32 }
 0x388   : > { %v3647_v35 = vpop.f32.mrb[54].mxu1 }
 0x389   : > { %v4008_v50 = vadd.f32 %v6668_v8, %v3969_v55  ;;  %v3873_v47 = vadd.f32 %v4605_v23, %v3647_v35  ;;  %v3649_v19 = vpop.f32.mrb[55].mxu1 }
 0x38b   : > { %v4040_v13 = vmax.f32 %v4008_v50, 0.0  ;;  %v3970_v44 = vmul.f32 %v6660_v17, %v3873_v47 }
 0x38d   : > { %v4072_v24 = vmin.f32 %v4040_v13, 6.0  ;;  %v4009_v29 = vadd.f32 %v6668_v8, %v3970_v44 }
 0x38f   : > { %4104 = vst.msk [vmem:[%s6685_s30 + $0x80] sm:$0xff] %vm1079_vm2, %v4072_v24  ;;  %v4041_v36 = vmax.f32 %v4009_v29, 0.0 }
 0x391   : > { %v4073_v57 = vmin.f32 %v4041_v36, 6.0 }
 0x393   : > { %4105 = vst.msk [vmem:[%s6685_s30 + $0x88] sm:$0xff] %vm1079_vm2, %v4073_v57 }
 0x397   : > { %v6777_v10 = vpop.f32.mrb[74].mxu0 }
 0x398   : > { %v6779_v3 = vpop.f32.mrb[75].mxu0 }
 0x39c   : > { %v3652_v56 = vpop.f32.mrb[56].mxu1 }
 0x39d   : > { %v3878_v58 = vadd.f32 %v3877_v22, %v3652_v56  ;;  %v3654_v53 = vpop.f32.mrb[57].mxu1 }
 0x39f   : > { %v3971_v43 = vmul.f32 %v6660_v17, %v3878_v58 }
 0x3a0   : > { %v3657_v7 = vpop.f32.mrb[58].mxu1 }
 0x3a1   : > { %v4010_v15 = vadd.f32 %v6668_v8, %v3971_v43  ;;  %v3883_v61 = vadd.f32 %v4608_v16, %v3657_v7  ;;  %v3659_v46 = vpop.f32.mrb[59].mxu1 }
 0x3a3   : > { %v4042_v62 = vmax.f32 %v4010_v15, 0.0  ;;  %v3972_v52 = vmul.f32 %v6660_v17, %v3883_v61 }
 0x3a5   : > { %v4074_v42 = vmin.f32 %v4042_v62, 6.0  ;;  %v4011_v12 = vadd.f32 %v6668_v8, %v3972_v52 }
 0x3a7   : > { %4106 = vst.msk [vmem:[%s6685_s30 + $0x90] sm:$0xff] %vm1079_vm2, %v4074_v42  ;;  %v4043_v39 = vmax.f32 %v4011_v12, 0.0 }
 0x3a9   : > { %v4075_v60 = vmin.f32 %v4043_v39, 6.0 }
 0x3ab   : > { %4107 = vst.msk [vmem:[%s6685_s30 + $0x98] sm:$0xff] %vm1079_vm2, %v4075_v60 }
 0x3b4   : > { %v3662_v23 = vpop.f32.mrb[60].mxu1 }
 0x3b5   : > { %v3888_v2 = vadd.f32 %v3887_v51, %v3662_v23  ;;  %v3664_v63 = vpop.f32.mrb[61].mxu1 }
 0x3b7   : > { %v3973_v59 = vmul.f32 %v6660_v17, %v3888_v2 }
 0x3b8   : > { %v3667_v16 = vpop.f32.mrb[62].mxu1 }
 0x3b9   : > { %v4012_v0 = vadd.f32 %v6668_v8, %v3973_v59  ;;  %v3893_v5 = vadd.f32 %v6741_v27, %v3667_v16  ;;  %v3669_v22 = vpop.f32.mrb[63].mxu1 }
 0x3bb   : > { %v4044_v26 = vmax.f32 %v4012_v0, 0.0  ;;  %v3974_v14 = vmul.f32 %v6660_v17, %v3893_v5 }
 0x3bd   : > { %v4076_v45 = vmin.f32 %v4044_v26, 6.0  ;;  %v4013_v48 = vadd.f32 %v6668_v8, %v3974_v14 }
 0x3bf   : > { %4108 = vst.msk [vmem:[%s6685_s30 + $0xa0] sm:$0xff] %vm1079_vm2, %v4076_v45  ;;  %v4045_v41 = vmax.f32 %v4013_v48, 0.0 }
 0x3c1   : > { %v4077_v51 = vmin.f32 %v4045_v41, 6.0 }
 0x3c3   : > { %4109 = vst.msk [vmem:[%s6685_s30 + $0xa8] sm:$0xff] %vm1079_vm2, %v4077_v51 }
 0x3cc   : > { %v3672_v30 = vpop.f32.mrb[64].mxu1 }
 0x3cd   : > { %v3898_v11 = vadd.f32 %v6745_v49, %v3672_v30  ;;  %v3674_v54 = vpop.f32.mrb[65].mxu1 }
 0x3cf   : > { %v3975_v27 = vmul.f32 %v6660_v17, %v3898_v11 }
 0x3d1   : > { %v4014_v28 = vadd.f32 %v6668_v8, %v3975_v27  ;;  %v3677_v6 = vpop.f32.mrb[66].mxu1 }
 0x3d2   : > { %v3903_v1 = vadd.f32 %v6743_v38, %v3677_v6  ;;  %v3679_v21 = vpop.f32.mrb[67].mxu1 }
 0x3d3   : > { %v4046_v9 = vmax.f32 %v4014_v28, 0.0 }
 0x3d4   : > { %v3976_v4 = vmul.f32 %v6660_v17, %v3903_v1 }
 0x3d5   : > { %v4078_v33 = vmin.f32 %v4046_v9, 6.0 }
 0x3d6   : > { %v4015_v32 = vadd.f32 %v6668_v8, %v3976_v4 }
 0x3d7   : > { %4110 = vst.msk [vmem:[%s6685_s30 + $0xb0] sm:$0xff] %vm1079_vm2, %v4078_v33 }
 0x3d8   : > { %v4047_v31 = vmax.f32 %v4015_v32, 0.0 }
 0x3da   : > { %v4079_v49 = vmin.f32 %v4047_v31, 6.0 }
 0x3dc   : > { %4111 = vst.msk [vmem:[%s6685_s30 + $0xb8] sm:$0xff] %vm1079_vm2, %v4079_v49 }
 0x3e4   : > { %v3682_v55 = vpop.f32.mrb[68].mxu1 }
 0x3e5   : > { %v3908_v50 = vadd.f32 %v6750_v34, %v3682_v55  ;;  %v3684_v35 = vpop.f32.mrb[69].mxu1 }
 0x3e7   : > { %v3977_v38 = vmul.f32 %v6660_v17, %v3908_v50 }
 0x3e9   : > { %v4016_v47 = vadd.f32 %v6668_v8, %v3977_v38  ;;  %v3687_v19 = vpop.f32.mrb[70].mxu1 }
 0x3ea   : > { %v3913_v13 = vadd.f32 %v6748_v20, %v3687_v19  ;;  %v3689_v44 = vpop.f32.mrb[71].mxu1 }
 0x3eb   : > { %v4048_v24 = vmax.f32 %v4016_v47, 0.0 }
 0x3ec   : > { %v3978_v29 = vmul.f32 %v6660_v17, %v3913_v13 }
 0x3ed   : > { %v4080_v36 = vmin.f32 %v4048_v24, 6.0 }
 0x3ee   : > { %v4017_v57 = vadd.f32 %v6668_v8, %v3978_v29 }
 0x3ef   : > { %4112 = vst.msk [vmem:[%s6685_s30 + $0xc0] sm:$0xff] %vm1079_vm2, %v4080_v36 }
 0x3f0   : > { %v4049_v56 = vmax.f32 %v4017_v57, 0.0 }
 0x3f2   : > { %v4081_v34 = vmin.f32 %v4049_v56, 6.0 }
 0x3f4   : > { %4113 = vst.msk [vmem:[%s6685_s30 + $0xc8] sm:$0xff] %vm1079_vm2, %v4081_v34 }
 0x3fc   : > { %v3692_v58 = vpop.f32.mrb[72].mxu1 }
 0x3fd   : > { %v3918_v53 = vadd.f32 %v6756_v40, %v3692_v58  ;;  %v3694_v43 = vpop.f32.mrb[73].mxu1 }
 0x3ff   : > { %v3979_v20 = vmul.f32 %v6660_v17, %v3918_v53 }
 0x401   : > { %v4018_v15 = vadd.f32 %v6668_v8, %v3979_v20  ;;  %v3697_v7 = vpop.f32.mrb[74].mxu1 }
 0x402   : > { %v3923_v61 = vadd.f32 %v6753_v37, %v3697_v7  ;;  %v3699_v46 = vpop.f32.mrb[75].mxu1 }
 0x403   : > { %v4050_v62 = vmax.f32 %v4018_v15, 0.0 }
 0x404   : > { %v3980_v52 = vmul.f32 %v6660_v17, %v3923_v61 }
 0x405   : > { %v4082_v42 = vmin.f32 %v4050_v62, 6.0 }
 0x406   : > { %v4019_v12 = vadd.f32 %v6668_v8, %v3980_v52 }
 0x407   : > { %4114 = vst.msk [vmem:[%s6685_s30 + $0xd0] sm:$0xff] %vm1079_vm2, %v4082_v42 }
 0x408   : > { %v4051_v39 = vmax.f32 %v4019_v12, 0.0 }
 0x40a   : > { %v4083_v60 = vmin.f32 %v4051_v39, 6.0 }
 0x40c   : > { %4115 = vst.msk [vmem:[%s6685_s30 + $0xd8] sm:$0xff] %vm1079_vm2, %v4083_v60 }
 0x418   : > { %v3702_v40 = vpop.f32.mrb[76].mxu1 }
 0x419   : > { %v3928_v23 = vadd.f32 %v6763_v18, %v3702_v40  ;;  %v3704_v2 = vpop.f32.mrb[77].mxu1 }
 0x41b   : > { %v3981_v37 = vmul.f32 %v6660_v17, %v3928_v23 }
 0x41d   : > { %v4020_v63 = vadd.f32 %v6668_v8, %v3981_v37  ;;  %v3707_v59 = vpop.f32.mrb[78].mxu1 }
 0x41e   : > { %v3933_v0 = vadd.f32 %v6761_v25, %v3707_v59  ;;  %v3709_v16 = vpop.f32.mrb[79].mxu1 }
 0x41f   : > { %v4052_v5 = vmax.f32 %v4020_v63, 0.0 }
 0x420   : > { %v3982_v22 = vmul.f32 %v6660_v17, %v3933_v0 }
 0x421   : > { %v4084_v26 = vmin.f32 %v4052_v5, 6.0  ;;  %v3712_v14 = vpop.f32.mrb[80].mxu1 }
 0x422   : > { %v4021_v45 = vadd.f32 %v6668_v8, %v3982_v22  ;;  %v3938_v18 = vadd.f32 %v6779_v3, %v3712_v14  ;;  %v3714_v48 = vpop.f32.mrb[81].mxu1 }
 0x423   : > { %4116 = vst.msk [vmem:[%s6685_s30 + $0xe0] sm:$0xff] %vm1079_vm2, %v4084_v26 }
 0x424   : > { %v4053_v41 = vmax.f32 %v4021_v45, 0.0  ;;  %v3983_v51 = vmul.f32 %v6660_v17, %v3938_v18 }
 0x426   : > { %v4085_v30 = vmin.f32 %v4053_v41, 6.0  ;;  %v4022_v25 = vadd.f32 %v6668_v8, %v3983_v51 }
 0x428   : > { %v3717_v11 = vpop.f32.mrb[82].mxu1  ;;  %4117 = vst.msk [vmem:[%s6685_s30 + $0xe8] sm:$0xff] %vm1079_vm2, %v4085_v30  ;;  %v4054_v54 = vmax.f32 %v4022_v25, 0.0 }
 0x429   : > { %v3943_v27 = vadd.f32 %v6777_v10, %v3717_v11  ;;  %v3719_v28 = vpop.f32.mrb[83].mxu1 }
 0x42a   : > { %v4086_v6 = vmin.f32 %v4054_v54, 6.0 }
 0x42b   : > { %v3984_v3 = vmul.f32 %v6660_v17, %v3943_v27 }
 0x42c   : > { %4118 = vst.msk [vmem:[%s6685_s30 + $0xf0] sm:$0xff] %vm1079_vm2, %v4086_v6 }
 0x42d   : > { %v4023_v1 = vadd.f32 %v6668_v8, %v3984_v3 }
 0x42f   : > { %v4055_v21 = vmax.f32 %v4023_v1, 0.0 }
 0x431   : > { %v4087_v9 = vmin.f32 %v4055_v21, 6.0 }
 0x433   : > { %4119 = vst.msk [vmem:[%s6685_s30 + $0xf8] sm:$0xff] %vm1079_vm2, %v4087_v9 }
 0x434 PF: > { %s19_s27 = sadd.s32 1, %s4817_s27  }
 0x435   : > { %p16_p1 = scmp.ge.s32.totalorder %s19_s27, 4  }
 0x437   :  { %18 = sbr.rel (!%p16_p1) target bundleno = 1 (0x1), region = 90 }
 0x43e   :  { %4141 = vsyncpa [#allocation5], 1 }
 0x43f   :  { %4143 = vsyncpa [#allocation5 + $0x1], 1 }

</bundles_post_ra>
